<compile_context>
chip_gen: v5e
topology: v5e:2x2
jax: 0.10.0
libtpu: 0.0.40
codegen_flags: <defaults>
</compile_context>

<pallas_src>
import functools

import jax
import jax.numpy as jnp
from jax.experimental import pallas as pl
from jax.experimental.pallas import tpu as pltpu


# ----------------------------------------------------------------------------
# Pallas kernel 1: fused matmul + bias + activation (used for each conv after
# im2col).  bf16 operands on the MXU, f32 accumulate / bias / activation.
# ----------------------------------------------------------------------------
def _matmul_bias_act_kernel(x_ref, w_ref, b_ref, o_ref, *, act):
    y = jnp.dot(x_ref[...], w_ref[...], preferred_element_type=jnp.float32)
    y = y + b_ref[...]                      # (1, N) bias broadcasts over rows
    if act == "relu":
        y = jnp.maximum(y, 0.0)
    elif act == "tanh":
        y = jnp.tanh(y)
    o_ref[...] = y.astype(o_ref.dtype)


def matmul_bias_act(x, w, b2, *, act="none", out_dtype=jnp.bfloat16, m_split=1):
    """act(x @ w + b):  x (M,K) bf16, w (K,N) bf16, b2 (1,N) f32.

    m_split > 1 adds a parallel grid over M so the block can shard across the
    two TensorCores on v7x; otherwise a single whole-array block is used
    (full-dim blocks are exempt from the (8,128) divisibility rule).
    """
    M, K = x.shape
    Kw, N = w.shape
    assert K == Kw and b2.shape == (1, N)

    if m_split > 1:
        mt = -(-M // m_split)          # ceil(M / m_split)
        mt = -(-mt // 16) * 16         # round up to bf16 sublane-pair multiple
        if mt >= M:
            mt, grid_m = M, 1
        else:
            grid_m = pl.cdiv(M, mt)
    else:
        mt, grid_m = M, 1

    return pl.pallas_call(
        functools.partial(_matmul_bias_act_kernel, act=act),
        out_shape=jax.ShapeDtypeStruct((M, N), out_dtype),
        grid=(grid_m,),
        in_specs=[
            pl.BlockSpec((mt, K), lambda i: (i, 0)),
            pl.BlockSpec((K, N), lambda i: (0, 0)),
            pl.BlockSpec((1, N), lambda i: (0, 0)),
        ],
        out_specs=pl.BlockSpec((mt, N), lambda i: (i, 0)),
        compiler_params=pltpu.CompilerParams(
            dimension_semantics=("parallel",),
            vmem_limit_bytes=16 << 20,
        ),
    )(x, w, b2)


# ----------------------------------------------------------------------------
# Pallas kernel 2: fused post-conv tail.  One call replaces cnn_fc, sp_fc1,
# sp_fc2, the concat, fc1 and fc2 — intermediates never leave VMEM/vregs.
# ----------------------------------------------------------------------------
def _tail_kernel(img_ref, st_ref,
                 cfw_ref, cfb_ref,
                 s1w_ref, s1b_ref, s2w_ref, s2b_ref,
                 f1wi_ref, f1ws_ref, f1b_ref,
                 f2w_ref, f2b_ref,
                 o_ref):
    f32, bf16 = jnp.float32, jnp.bfloat16

    # ImageCNN.fc + ReLU : (B,1568)@(1568,512)
    img_feat = jnp.dot(img_ref[...], cfw_ref[...], preferred_element_type=f32)
    img_feat = jnp.maximum(img_feat + cfb_ref[...], 0.0)

    # StateProcessor: tanh(fc1) -> tanh(fc2)
    s = jnp.tanh(jnp.dot(st_ref[...], s1w_ref[...], preferred_element_type=f32)
                 + s1b_ref[...])
    st_feat = jnp.tanh(jnp.dot(s.astype(bf16), s2w_ref[...],
                               preferred_element_type=f32) + s2b_ref[...])

    # Heads: torch.cat((img, st)) @ W1  ==  img @ W1[:512] + st @ W1[512:]
    h = (jnp.dot(img_feat.astype(bf16), f1wi_ref[...], preferred_element_type=f32)
         + jnp.dot(st_feat.astype(bf16), f1ws_ref[...], preferred_element_type=f32)
         + f1b_ref[...])
    h = jnp.tanh(h)

    out = jnp.dot(h.astype(bf16), f2w_ref[...], preferred_element_type=f32) + f2b_ref[...]
    o_ref[...] = out.astype(o_ref.dtype)


def tail_pallas(img_flat, state, p):
    B = img_flat.shape[0]
    operands = (
        img_flat, state,
        p["cnn_fc_w"], p["cnn_fc_b"],
        p["sp_fc1_w"], p["sp_fc1_b"],
        p["sp_fc2_w"], p["sp_fc2_b"],
        p["fc1_w_img"], p["fc1_w_st"], p["fc1_b"],
        p["fc2_w"], p["fc2_b"],
    )
    in_specs = [pl.BlockSpec(a.shape, lambda i: (0, 0)) for a in operands]  # all 2-D
    return pl.pallas_call(
        _tail_kernel,
        out_shape=jax.ShapeDtypeStruct((B, 4), jnp.float32),
        grid=(1,),
        in_specs=in_specs,
        out_specs=pl.BlockSpec((B, 4), lambda i: (0, 0)),
        compiler_params=pltpu.CompilerParams(
            dimension_semantics=("arbitrary",),
            vmem_limit_bytes=16 << 20,
        ),
    )(*operands)


# ----------------------------------------------------------------------------
# Glue: im2col via XLA strided slices (tiny tensors; kept outside the kernel —
# in-kernel strided-slice im2col would need layout-hostile in-VMEM reshapes).
# ----------------------------------------------------------------------------
def _im2col_nhwc(x, k, s):
    """x:(B,H,W,C) -> (B*Ho*Wo, k*k*C); column order (kh, kw, c) matching the
    (kh, kw, cin, cout) conv-weight layout prepared at init."""
    B, H, W, C = x.shape
    Ho = (H - k) // s + 1
    Wo = (W - k) // s + 1
    cols = []
    for kh in range(k):
        for kw in range(k):
            cols.append(x[:, kh:kh + s * Ho:s, kw:kw + s * Wo:s, :])
    patches = jnp.concatenate(cols, axis=-1)            # (B, Ho, Wo, k*k*C)
    return patches.reshape(B * Ho * Wo, k * k * C), Ho, Wo


# ----------------------------------------------------------------------------
# Parameters: raw (PyTorch layout) + one-time kernel-layout preparation.
# ----------------------------------------------------------------------------
def init_params(key):
    """Raw parameters in PyTorch layout (conv OIHW, linear stored (in, out))."""
    ks = jax.random.split(key, 16)
    sc = 0.05

    def norm(k, shape):
        return sc * jax.random.normal(k, shape, dtype=jnp.float32)

    return {
        "conv1_w": norm(ks[0], (32, 3, 8, 8)),   "conv1_b": norm(ks[1], (32,)),
        "conv2_w": norm(ks[2], (64, 32, 4, 4)),  "conv2_b": norm(ks[3], (64,)),
        "conv3_w": norm(ks[4], (32, 64, 3, 3)),  "conv3_b": norm(ks[5], (32,)),
        "cnn_fc_w": norm(ks[6], (32 * 7 * 7, 512)), "cnn_fc_b": norm(ks[7], (512,)),
        "sp_fc1_w": norm(ks[8], (8, 64)),   "sp_fc1_b": norm(ks[9], (64,)),
        "sp_fc2_w": norm(ks[10], (64, 64)), "sp_fc2_b": norm(ks[11], (64,)),
        "fc1_w": norm(ks[12], (512 + 64, 128)), "fc1_b": norm(ks[13], (128,)),
        "fc2_w": norm(ks[14], (128, 4)),        "fc2_b": norm(ks[15], (4,)),
    }


def prepare_params(raw):
    """One-time layout work (hoisted out of the forward pass):
    conv weights -> (kh*kw*Cin, Cout) bf16 matmul mats, cnn_fc rows -> NHWC
    flatten order, fc1 split into image/state blocks, biases -> (1,N) f32."""
    bf16 = jnp.bfloat16

    def conv_mat(w_oihw):
        co, ci, kh, kw = w_oihw.shape
        return jnp.transpose(w_oihw, (2, 3, 1, 0)).reshape(kh * kw * ci, co).astype(bf16)

    def bias2(b):
        return b.reshape(1, -1).astype(jnp.float32)

    # cnn_fc rows are indexed (c, h, w) (PyTorch NCHW flatten); permute to
    # (h, w, c) so the NHWC conv3 activation flattens directly (no transpose).
    cnn_fc_w = raw["cnn_fc_w"].reshape(32, 7, 7, 512)
    cnn_fc_w = jnp.transpose(cnn_fc_w, (1, 2, 0, 3)).reshape(32 * 7 * 7, 512)

    return {
        "conv1_w": conv_mat(raw["conv1_w"]), "conv1_b": bias2(raw["conv1_b"]),
        "conv2_w": conv_mat(raw["conv2_w"]), "conv2_b": bias2(raw["conv2_b"]),
        "conv3_w": conv_mat(raw["conv3_w"]), "conv3_b": bias2(raw["conv3_b"]),
        "cnn_fc_w": cnn_fc_w.astype(bf16),   "cnn_fc_b": bias2(raw["cnn_fc_b"]),
        "sp_fc1_w": raw["sp_fc1_w"].astype(bf16), "sp_fc1_b": bias2(raw["sp_fc1_b"]),
        "sp_fc2_w": raw["sp_fc2_w"].astype(bf16), "sp_fc2_b": bias2(raw["sp_fc2_b"]),
        "fc1_w_img": raw["fc1_w"][:512].astype(bf16),
        "fc1_w_st":  raw["fc1_w"][512:].astype(bf16),
        "fc1_b": bias2(raw["fc1_b"]),
        "fc2_w": raw["fc2_w"].astype(bf16), "fc2_b": bias2(raw["fc2_b"]),
    }


# ----------------------------------------------------------------------------
# Forward pass (same semantics as ACGDNetwork.forward).
# ----------------------------------------------------------------------------
def acgd_forward(params, image_nchw, state):
    B = image_nchw.shape[0]

    # NCHW -> NHWC once, cast to bf16 (native MXU input dtype).
    x = jnp.transpose(image_nchw, (0, 2, 3, 1)).astype(jnp.bfloat16)

    # --- ImageCNN convs: im2col + fused MXU matmul/bias/ReLU kernels ---
    p1, h1, w1 = _im2col_nhwc(x, 8, 4)                                   # (B*400, 192)
    y1 = matmul_bias_act(p1, params["conv1_w"], params["conv1_b"],
                         act="relu", m_split=2)                          # (B*400, 32)
    x1 = y1.reshape(B, h1, w1, 32)                                       # (B,20,20,32)

    p2, h2, w2 = _im2col_nhwc(x1, 4, 2)                                  # (B*81, 512)
    y2 = matmul_bias_act(p2, params["conv2_w"], params["conv2_b"], act="relu")
    x2 = y2.reshape(B, h2, w2, 64)                                       # (B,9,9,64)

    p3, h3, w3 = _im2col_nhwc(x2, 3, 1)                                  # (B*49, 576)
    y3 = matmul_bias_act(p3, params["conv3_w"], params["conv3_b"], act="relu")
    img_flat = y3.reshape(B, h3 * w3 * 32)   # NHWC flatten; cnn_fc_w rows pre-permuted

    # --- Fused tail: cnn_fc+ReLU, state MLP, fc1(tanh), fc2 — one kernel ---
    return tail_pallas(img_flat, state.astype(jnp.bfloat16), params)


if __name__ == "__main__":
    key = jax.random.PRNGKey(0)
    k_param, k_img, k_state = jax.random.split(key, 3)

    params = prepare_params(init_params(k_param))

    B = 2
    # 84x84 is forced by the module: cnn_fc expects 32*7*7 features after conv3.
    image = jax.random.normal(k_img, (B, 3, 84, 84), dtype=jnp.float32)
    state = jax.random.normal(k_state, (B, 8), dtype=jnp.float32)

    fwd = jax.jit(acgd_forward)
    out = jax.block_until_ready(fwd(params, image, state))

    assert out.shape == (B, 4), out.shape
    assert out.dtype == jnp.float32
    assert bool(jnp.all(jnp.isfinite(out)))

    print("KERNEL_OK")
</pallas_src>

<mosaic_0001>
module attributes {stable_mosaic.version = 11 : i64} {
  func.func @_matmul_bias_act_kernel(%arg0: i32, %arg1: memref<400x192xbf16, #tpu.memory_space<vmem>>, %arg2: memref<192x32xbf16, #tpu.memory_space<vmem>>, %arg3: memref<1x32xf32, #tpu.memory_space<vmem>>, %arg4: memref<400x32xbf16, #tpu.memory_space<vmem>>) attributes {dimension_semantics = [#tpu.dimension_semantics<parallel>], iteration_bounds = array<i64: 2>, scalar_prefetch = 0 : i64, scratch_operands = 0 : i64, tpu.core_type = #tpu.core_type<tc>, window_params = [{transform_indices = @transform_0, window_bounds = array<i64: 400, 192>}, {pipeline_mode = #tpu.pipeline_mode<synchronous>, transform_indices = @transform_1, window_bounds = array<i64: 192, 32>}, {pipeline_mode = #tpu.pipeline_mode<synchronous>, transform_indices = @transform_2, window_bounds = array<i64: 1, 32>}, {transform_indices = @transform_3, window_bounds = array<i64: 400, 32>}]} {
    %c0 = arith.constant 0 : index
    %c0_0 = arith.constant 0 : index
    %0 = vector.load %arg1[%c0, %c0_0] : memref<400x192xbf16, #tpu.memory_space<vmem>>, vector<400x192xbf16>
    %c0_1 = arith.constant 0 : index
    %c0_2 = arith.constant 0 : index
    %1 = vector.load %arg2[%c0_1, %c0_2] : memref<192x32xbf16, #tpu.memory_space<vmem>>, vector<192x32xbf16>
    %cst = arith.constant dense<0.000000e+00> : vector<400x32xf32>
    %2 = tpu.matmul %0, %1, %cst {dimension_numbers = #tpu.dot_dimension_numbers<[1], [0], [0], [1], [0, 0, 1, 1], [], []>} : vector<400x192xbf16>, vector<192x32xbf16>, vector<400x32xf32> -> vector<400x32xf32>
    %c0_3 = arith.constant 0 : index
    %c0_4 = arith.constant 0 : index
    %3 = vector.load %arg3[%c0_3, %c0_4] : memref<1x32xf32, #tpu.memory_space<vmem>>, vector<1x32xf32>
    %4 = vector.broadcast %3 : vector<1x32xf32> to vector<400x32xf32>
    %5 = arith.addf %2, %4 : vector<400x32xf32>
    %cst_5 = arith.constant 0.000000e+00 : f32
    %6 = vector.broadcast %cst_5 : f32 to vector<400x32xf32>
    %7 = arith.maximumf %5, %6 : vector<400x32xf32>
    %8 = arith.truncf %7 : vector<400x32xf32> to vector<400x32xbf16>
    %c0_6 = arith.constant 0 : index
    %c0_7 = arith.constant 0 : index
    %9 = vector.load %arg4[%c0_6, %c0_7] : memref<400x32xbf16, #tpu.memory_space<vmem>>, vector<400x32xbf16>
    tpu.vector_store %arg4[%c0_6, %c0_7], %8 {strides = array<i32>} : memref<400x32xbf16, #tpu.memory_space<vmem>>, vector<400x32xbf16>,
    return
  }
  func.func @transform_0(%arg0: i32) -> (i32, i32) {
    %c0_i32 = arith.constant 0 : i32
    %c0_i32_0 = arith.constant 0 : i32
    return %arg0, %c0_i32 : i32, i32
  }
  func.func @transform_1(%arg0: i32) -> (i32, i32) {
    %c0_i32 = arith.constant 0 : i32
    %c0_i32_0 = arith.constant 0 : i32
    %c0_i32_1 = arith.constant 0 : i32
    return %c0_i32, %c0_i32_0 : i32, i32
  }
  func.func @transform_2(%arg0: i32) -> (i32, i32) {
    %c0_i32 = arith.constant 0 : i32
    %c0_i32_0 = arith.constant 0 : i32
    %c0_i32_1 = arith.constant 0 : i32
    return %c0_i32, %c0_i32_0 : i32, i32
  }
  func.func @transform_3(%arg0: i32) -> (i32, i32) {
    %c0_i32 = arith.constant 0 : i32
    %c0_i32_0 = arith.constant 0 : i32
    return %arg0, %c0_i32 : i32, i32
  }
}

module attributes {stable_mosaic.version = 11 : i64} {
  func.func @_matmul_bias_act_kernel(%arg0: i32, %arg1: memref<162x512xbf16, #tpu.memory_space<vmem>>, %arg2: memref<512x64xbf16, #tpu.memory_space<vmem>>, %arg3: memref<1x64xf32, #tpu.memory_space<vmem>>, %arg4: memref<162x64xbf16, #tpu.memory_space<vmem>>) attributes {dimension_semantics = [#tpu.dimension_semantics<parallel>], iteration_bounds = array<i64: 1>, scalar_prefetch = 0 : i64, scratch_operands = 0 : i64, tpu.core_type = #tpu.core_type<tc>, window_params = [{transform_indices = @transform_0, window_bounds = array<i64: 162, 512>}, {pipeline_mode = #tpu.pipeline_mode<synchronous>, transform_indices = @transform_1, window_bounds = array<i64: 512, 64>}, {pipeline_mode = #tpu.pipeline_mode<synchronous>, transform_indices = @transform_2, window_bounds = array<i64: 1, 64>}, {transform_indices = @transform_3, window_bounds = array<i64: 162, 64>}]} {
    %c0 = arith.constant 0 : index
    %c0_0 = arith.constant 0 : index
    %0 = vector.load %arg1[%c0, %c0_0] : memref<162x512xbf16, #tpu.memory_space<vmem>>, vector<162x512xbf16>
    %c0_1 = arith.constant 0 : index
    %c0_2 = arith.constant 0 : index
    %1 = vector.load %arg2[%c0_1, %c0_2] : memref<512x64xbf16, #tpu.memory_space<vmem>>, vector<512x64xbf16>
    %cst = arith.constant dense<0.000000e+00> : vector<162x64xf32>
    %2 = tpu.matmul %0, %1, %cst {dimension_numbers = #tpu.dot_dimension_numbers<[1], [0], [0], [1], [0, 0, 1, 1], [], []>} : vector<162x512xbf16>, vector<512x64xbf16>, vector<162x64xf32> -> vector<162x64xf32>
    %c0_3 = arith.constant 0 : index
    %c0_4 = arith.constant 0 : index
    %3 = vector.load %arg3[%c0_3, %c0_4] : memref<1x64xf32, #tpu.memory_space<vmem>>, vector<1x64xf32>
    %4 = vector.broadcast %3 : vector<1x64xf32> to vector<162x64xf32>
    %5 = arith.addf %2, %4 : vector<162x64xf32>
    %cst_5 = arith.constant 0.000000e+00 : f32
    %6 = vector.broadcast %cst_5 : f32 to vector<162x64xf32>
    %7 = arith.maximumf %5, %6 : vector<162x64xf32>
    %8 = arith.truncf %7 : vector<162x64xf32> to vector<162x64xbf16>
    %c0_6 = arith.constant 0 : index
    %c0_7 = arith.constant 0 : index
    %9 = vector.load %arg4[%c0_6, %c0_7] : memref<162x64xbf16, #tpu.memory_space<vmem>>, vector<162x64xbf16>
    tpu.vector_store %arg4[%c0_6, %c0_7], %8 {strides = array<i32>} : memref<162x64xbf16, #tpu.memory_space<vmem>>, vector<162x64xbf16>,
    return
  }
  func.func @transform_0(%arg0: i32) -> (i32, i32) {
    %c0_i32 = arith.constant 0 : i32
    %c0_i32_0 = arith.constant 0 : i32
    return %arg0, %c0_i32 : i32, i32
  }
  func.func @transform_1(%arg0: i32) -> (i32, i32) {
    %c0_i32 = arith.constant 0 : i32
    %c0_i32_0 = arith.constant 0 : i32
    %c0_i32_1 = arith.constant 0 : i32
    return %c0_i32, %c0_i32_0 : i32, i32
  }
  func.func @transform_2(%arg0: i32) -> (i32, i32) {
    %c0_i32 = arith.constant 0 : i32
    %c0_i32_0 = arith.constant 0 : i32
    %c0_i32_1 = arith.constant 0 : i32
    return %c0_i32, %c0_i32_0 : i32, i32
  }
  func.func @transform_3(%arg0: i32) -> (i32, i32) {
    %c0_i32 = arith.constant 0 : i32
    %c0_i32_0 = arith.constant 0 : i32
    return %arg0, %c0_i32 : i32, i32
  }
}

module attributes {stable_mosaic.version = 11 : i64} {
  func.func @_matmul_bias_act_kernel(%arg0: i32, %arg1: memref<98x576xbf16, #tpu.memory_space<vmem>>, %arg2: memref<576x32xbf16, #tpu.memory_space<vmem>>, %arg3: memref<1x32xf32, #tpu.memory_space<vmem>>, %arg4: memref<98x32xbf16, #tpu.memory_space<vmem>>) attributes {dimension_semantics = [#tpu.dimension_semantics<parallel>], iteration_bounds = array<i64: 1>, scalar_prefetch = 0 : i64, scratch_operands = 0 : i64, tpu.core_type = #tpu.core_type<tc>, window_params = [{transform_indices = @transform_0, window_bounds = array<i64: 98, 576>}, {pipeline_mode = #tpu.pipeline_mode<synchronous>, transform_indices = @transform_1, window_bounds = array<i64: 576, 32>}, {pipeline_mode = #tpu.pipeline_mode<synchronous>, transform_indices = @transform_2, window_bounds = array<i64: 1, 32>}, {transform_indices = @transform_3, window_bounds = array<i64: 98, 32>}]} {
    %c0 = arith.constant 0 : index
    %c0_0 = arith.constant 0 : index
    %0 = vector.load %arg1[%c0, %c0_0] : memref<98x576xbf16, #tpu.memory_space<vmem>>, vector<98x576xbf16>
    %c0_1 = arith.constant 0 : index
    %c0_2 = arith.constant 0 : index
    %1 = vector.load %arg2[%c0_1, %c0_2] : memref<576x32xbf16, #tpu.memory_space<vmem>>, vector<576x32xbf16>
    %cst = arith.constant dense<0.000000e+00> : vector<98x32xf32>
    %2 = tpu.matmul %0, %1, %cst {dimension_numbers = #tpu.dot_dimension_numbers<[1], [0], [0], [1], [0, 0, 1, 1], [], []>} : vector<98x576xbf16>, vector<576x32xbf16>, vector<98x32xf32> -> vector<98x32xf32>
    %c0_3 = arith.constant 0 : index
    %c0_4 = arith.constant 0 : index
    %3 = vector.load %arg3[%c0_3, %c0_4] : memref<1x32xf32, #tpu.memory_space<vmem>>, vector<1x32xf32>
    %4 = vector.broadcast %3 : vector<1x32xf32> to vector<98x32xf32>
    %5 = arith.addf %2, %4 : vector<98x32xf32>
    %cst_5 = arith.constant 0.000000e+00 : f32
    %6 = vector.broadcast %cst_5 : f32 to vector<98x32xf32>
    %7 = arith.maximumf %5, %6 : vector<98x32xf32>
    %8 = arith.truncf %7 : vector<98x32xf32> to vector<98x32xbf16>
    %c0_6 = arith.constant 0 : index
    %c0_7 = arith.constant 0 : index
    %9 = vector.load %arg4[%c0_6, %c0_7] : memref<98x32xbf16, #tpu.memory_space<vmem>>, vector<98x32xbf16>
    tpu.vector_store %arg4[%c0_6, %c0_7], %8 {strides = array<i32>} : memref<98x32xbf16, #tpu.memory_space<vmem>>, vector<98x32xbf16>,
    return
  }
  func.func @transform_0(%arg0: i32) -> (i32, i32) {
    %c0_i32 = arith.constant 0 : i32
    %c0_i32_0 = arith.constant 0 : i32
    return %arg0, %c0_i32 : i32, i32
  }
  func.func @transform_1(%arg0: i32) -> (i32, i32) {
    %c0_i32 = arith.constant 0 : i32
    %c0_i32_0 = arith.constant 0 : i32
    %c0_i32_1 = arith.constant 0 : i32
    return %c0_i32, %c0_i32_0 : i32, i32
  }
  func.func @transform_2(%arg0: i32) -> (i32, i32) {
    %c0_i32 = arith.constant 0 : i32
    %c0_i32_0 = arith.constant 0 : i32
    %c0_i32_1 = arith.constant 0 : i32
    return %c0_i32, %c0_i32_0 : i32, i32
  }
  func.func @transform_3(%arg0: i32) -> (i32, i32) {
    %c0_i32 = arith.constant 0 : i32
    %c0_i32_0 = arith.constant 0 : i32
    return %arg0, %c0_i32 : i32, i32
  }
}

module attributes {stable_mosaic.version = 11 : i64} {
  func.func @_tail_kernel(%arg0: i32, %arg1: memref<2x1568xbf16, #tpu.memory_space<vmem>>, %arg2: memref<2x8xbf16, #tpu.memory_space<vmem>>, %arg3: memref<1568x512xbf16, #tpu.memory_space<vmem>>, %arg4: memref<1x512xf32, #tpu.memory_space<vmem>>, %arg5: memref<8x64xbf16, #tpu.memory_space<vmem>>, %arg6: memref<1x64xf32, #tpu.memory_space<vmem>>, %arg7: memref<64x64xbf16, #tpu.memory_space<vmem>>, %arg8: memref<1x64xf32, #tpu.memory_space<vmem>>, %arg9: memref<512x128xbf16, #tpu.memory_space<vmem>>, %arg10: memref<64x128xbf16, #tpu.memory_space<vmem>>, %arg11: memref<1x128xf32, #tpu.memory_space<vmem>>, %arg12: memref<128x4xbf16, #tpu.memory_space<vmem>>, %arg13: memref<1x4xf32, #tpu.memory_space<vmem>>, %arg14: memref<2x4xf32, #tpu.memory_space<vmem>>) attributes {dimension_semantics = [#tpu.dimension_semantics<arbitrary>], iteration_bounds = array<i64: 1>, scalar_prefetch = 0 : i64, scratch_operands = 0 : i64, tpu.core_type = #tpu.core_type<tc>, window_params = [{pipeline_mode = #tpu.pipeline_mode<synchronous>, transform_indices = @transform_0, window_bounds = array<i64: 2, 1568>}, {pipeline_mode = #tpu.pipeline_mode<synchronous>, transform_indices = @transform_1, window_bounds = array<i64: 2, 8>}, {pipeline_mode = #tpu.pipeline_mode<synchronous>, transform_indices = @transform_2, window_bounds = array<i64: 1568, 512>}, {pipeline_mode = #tpu.pipeline_mode<synchronous>, transform_indices = @transform_3, window_bounds = array<i64: 1, 512>}, {pipeline_mode = #tpu.pipeline_mode<synchronous>, transform_indices = @transform_4, window_bounds = array<i64: 8, 64>}, {pipeline_mode = #tpu.pipeline_mode<synchronous>, transform_indices = @transform_5, window_bounds = array<i64: 1, 64>}, {pipeline_mode = #tpu.pipeline_mode<synchronous>, transform_indices = @transform_6, window_bounds = array<i64: 64, 64>}, {pipeline_mode = #tpu.pipeline_mode<synchronous>, transform_indices = @transform_7, window_bounds = array<i64: 1, 64>}, {pipeline_mode = #tpu.pipeline_mode<synchronous>, transform_indices = @transform_8, window_bounds = array<i64: 512, 128>}, {pipeline_mode = #tpu.pipeline_mode<synchronous>, transform_indices = @transform_9, window_bounds = array<i64: 64, 128>}, {pipeline_mode = #tpu.pipeline_mode<synchronous>, transform_indices = @transform_10, window_bounds = array<i64: 1, 128>}, {pipeline_mode = #tpu.pipeline_mode<synchronous>, transform_indices = @transform_11, window_bounds = array<i64: 128, 4>}, {pipeline_mode = #tpu.pipeline_mode<synchronous>, transform_indices = @transform_12, window_bounds = array<i64: 1, 4>}, {pipeline_mode = #tpu.pipeline_mode<synchronous>, transform_indices = @transform_13, window_bounds = array<i64: 2, 4>}]} {
    %c0 = arith.constant 0 : index
    %c0_0 = arith.constant 0 : index
    %0 = vector.load %arg1[%c0, %c0_0] : memref<2x1568xbf16, #tpu.memory_space<vmem>>, vector<2x1568xbf16>
    %c0_1 = arith.constant 0 : index
    %c0_2 = arith.constant 0 : index
    %1 = vector.load %arg3[%c0_1, %c0_2] : memref<1568x512xbf16, #tpu.memory_space<vmem>>, vector<1568x512xbf16>
    %cst = arith.constant dense<0.000000e+00> : vector<2x512xf32>
    %2 = tpu.matmul %0, %1, %cst {dimension_numbers = #tpu.dot_dimension_numbers<[1], [0], [0], [1], [0, 0, 1, 1], [], []>} : vector<2x1568xbf16>, vector<1568x512xbf16>, vector<2x512xf32> -> vector<2x512xf32>
    %c0_3 = arith.constant 0 : index
    %c0_4 = arith.constant 0 : index
    %3 = vector.load %arg4[%c0_3, %c0_4] : memref<1x512xf32, #tpu.memory_space<vmem>>, vector<1x512xf32>
    %4 = vector.broadcast %3 : vector<1x512xf32> to vector<2x512xf32>
    %5 = arith.addf %2, %4 : vector<2x512xf32>
    %cst_5 = arith.constant 0.000000e+00 : f32
    %6 = vector.broadcast %cst_5 : f32 to vector<2x512xf32>
    %7 = arith.maximumf %5, %6 : vector<2x512xf32>
    %c0_6 = arith.constant 0 : index
    %c0_7 = arith.constant 0 : index
    %8 = vector.load %arg2[%c0_6, %c0_7] : memref<2x8xbf16, #tpu.memory_space<vmem>>, vector<2x8xbf16>
    %c0_8 = arith.constant 0 : index
    %c0_9 = arith.constant 0 : index
    %9 = vector.load %arg5[%c0_8, %c0_9] : memref<8x64xbf16, #tpu.memory_space<vmem>>, vector<8x64xbf16>
    %cst_10 = arith.constant dense<0.000000e+00> : vector<2x64xf32>
    %10 = tpu.matmul %8, %9, %cst_10 {dimension_numbers = #tpu.dot_dimension_numbers<[1], [0], [0], [1], [0, 0, 1, 1], [], []>} : vector<2x8xbf16>, vector<8x64xbf16>, vector<2x64xf32> -> vector<2x64xf32>
    %c0_11 = arith.constant 0 : index
    %c0_12 = arith.constant 0 : index
    %11 = vector.load %arg6[%c0_11, %c0_12] : memref<1x64xf32, #tpu.memory_space<vmem>>, vector<1x64xf32>
    %12 = vector.broadcast %11 : vector<1x64xf32> to vector<2x64xf32>
    %13 = arith.addf %10, %12 : vector<2x64xf32>
    %14 = math.tanh %13 : vector<2x64xf32>
    %15 = arith.truncf %14 : vector<2x64xf32> to vector<2x64xbf16>
    %c0_13 = arith.constant 0 : index
    %c0_14 = arith.constant 0 : index
    %16 = vector.load %arg7[%c0_13, %c0_14] : memref<64x64xbf16, #tpu.memory_space<vmem>>, vector<64x64xbf16>
    %cst_15 = arith.constant dense<0.000000e+00> : vector<2x64xf32>
    %17 = tpu.matmul %15, %16, %cst_15 {dimension_numbers = #tpu.dot_dimension_numbers<[1], [0], [0], [1], [0, 0, 1, 1], [], []>} : vector<2x64xbf16>, vector<64x64xbf16>, vector<2x64xf32> -> vector<2x64xf32>
    %c0_16 = arith.constant 0 : index
    %c0_17 = arith.constant 0 : index
    %18 = vector.load %arg8[%c0_16, %c0_17] : memref<1x64xf32, #tpu.memory_space<vmem>>, vector<1x64xf32>
    %19 = vector.broadcast %18 : vector<1x64xf32> to vector<2x64xf32>
    %20 = arith.addf %17, %19 : vector<2x64xf32>
    %21 = math.tanh %20 : vector<2x64xf32>
    %22 = arith.truncf %7 : vector<2x512xf32> to vector<2x512xbf16>
    %c0_18 = arith.constant 0 : index
    %c0_19 = arith.constant 0 : index
    %23 = vector.load %arg9[%c0_18, %c0_19] : memref<512x128xbf16, #tpu.memory_space<vmem>>, vector<512x128xbf16>
    %cst_20 = arith.constant dense<0.000000e+00> : vector<2x128xf32>
    %24 = tpu.matmul %22, %23, %cst_20 {dimension_numbers = #tpu.dot_dimension_numbers<[1], [0], [0], [1], [0, 0, 1, 1], [], []>} : vector<2x512xbf16>, vector<512x128xbf16>, vector<2x128xf32> -> vector<2x128xf32>
    %25 = arith.truncf %21 : vector<2x64xf32> to vector<2x64xbf16>
    %c0_21 = arith.constant 0 : index
    %c0_22 = arith.constant 0 : index
    %26 = vector.load %arg10[%c0_21, %c0_22] : memref<64x128xbf16, #tpu.memory_space<vmem>>, vector<64x128xbf16>
    %cst_23 = arith.constant dense<0.000000e+00> : vector<2x128xf32>
    %27 = tpu.matmul %25, %26, %cst_23 {dimension_numbers = #tpu.dot_dimension_numbers<[1], [0], [0], [1], [0, 0, 1, 1], [], []>} : vector<2x64xbf16>, vector<64x128xbf16>, vector<2x128xf32> -> vector<2x128xf32>
    %28 = arith.addf %24, %27 : vector<2x128xf32>
    %c0_24 = arith.constant 0 : index
    %c0_25 = arith.constant 0 : index
    %29 = vector.load %arg11[%c0_24, %c0_25] : memref<1x128xf32, #tpu.memory_space<vmem>>, vector<1x128xf32>
    %30 = vector.broadcast %29 : vector<1x128xf32> to vector<2x128xf32>
    %31 = arith.addf %28, %30 : vector<2x128xf32>
    %32 = math.tanh %31 : vector<2x128xf32>
    %33 = arith.truncf %32 : vector<2x128xf32> to vector<2x128xbf16>
    %c0_26 = arith.constant 0 : index
    %c0_27 = arith.constant 0 : index
    %34 = vector.load %arg12[%c0_26, %c0_27] : memref<128x4xbf16, #tpu.memory_space<vmem>>, vector<128x4xbf16>
    %cst_28 = arith.constant dense<0.000000e+00> : vector<2x4xf32>
    %35 = tpu.matmul %33, %34, %cst_28 {dimension_numbers = #tpu.dot_dimension_numbers<[1], [0], [0], [1], [0, 0, 1, 1], [], []>} : vector<2x128xbf16>, vector<128x4xbf16>, vector<2x4xf32> -> vector<2x4xf32>
    %c0_29 = arith.constant 0 : index
    %c0_30 = arith.constant 0 : index
    %36 = vector.load %arg13[%c0_29, %c0_30] : memref<1x4xf32, #tpu.memory_space<vmem>>, vector<1x4xf32>
    %37 = vector.broadcast %36 : vector<1x4xf32> to vector<2x4xf32>
    %38 = arith.addf %35, %37 : vector<2x4xf32>
    %c0_31 = arith.constant 0 : index
    %c0_32 = arith.constant 0 : index
    %39 = vector.load %arg14[%c0_31, %c0_32] : memref<2x4xf32, #tpu.memory_space<vmem>>, vector<2x4xf32>
    tpu.vector_store %arg14[%c0_31, %c0_32], %38 {strides = array<i32>} : memref<2x4xf32, #tpu.memory_space<vmem>>, vector<2x4xf32>,
    return
  }
  func.func @transform_0(%arg0: i32) -> (i32, i32) {
    %c0_i32 = arith.constant 0 : i32
    %c0_i32_0 = arith.constant 0 : i32
    %c0_i32_1 = arith.constant 0 : i32
    return %c0_i32, %c0_i32_0 : i32, i32
  }
  func.func @transform_1(%arg0: i32) -> (i32, i32) {
    %c0_i32 = arith.constant 0 : i32
    %c0_i32_0 = arith.constant 0 : i32
    %c0_i32_1 = arith.constant 0 : i32
    return %c0_i32, %c0_i32_0 : i32, i32
  }
  func.func @transform_2(%arg0: i32) -> (i32, i32) {
    %c0_i32 = arith.constant 0 : i32
    %c0_i32_0 = arith.constant 0 : i32
    %c0_i32_1 = arith.constant 0 : i32
    return %c0_i32, %c0_i32_0 : i32, i32
  }
  func.func @transform_3(%arg0: i32) -> (i32, i32) {
    %c0_i32 = arith.constant 0 : i32
    %c0_i32_0 = arith.constant 0 : i32
    %c0_i32_1 = arith.constant 0 : i32
    return %c0_i32, %c0_i32_0 : i32, i32
  }
  func.func @transform_4(%arg0: i32) -> (i32, i32) {
    %c0_i32 = arith.constant 0 : i32
    %c0_i32_0 = arith.constant 0 : i32
    %c0_i32_1 = arith.constant 0 : i32
    return %c0_i32, %c0_i32_0 : i32, i32
  }
  func.func @transform_5(%arg0: i32) -> (i32, i32) {
    %c0_i32 = arith.constant 0 : i32
    %c0_i32_0 = arith.constant 0 : i32
    %c0_i32_1 = arith.constant 0 : i32
    return %c0_i32, %c0_i32_0 : i32, i32
  }
  func.func @transform_6(%arg0: i32) -> (i32, i32) {
    %c0_i32 = arith.constant 0 : i32
    %c0_i32_0 = arith.constant 0 : i32
    %c0_i32_1 = arith.constant 0 : i32
    return %c0_i32, %c0_i32_0 : i32, i32
  }
  func.func @transform_7(%arg0: i32) -> (i32, i32) {
    %c0_i32 = arith.constant 0 : i32
    %c0_i32_0 = arith.constant 0 : i32
    %c0_i32_1 = arith.constant 0 : i32
    return %c0_i32, %c0_i32_0 : i32, i32
  }
  func.func @transform_8(%arg0: i32) -> (i32, i32) {
    %c0_i32 = arith.constant 0 : i32
    %c0_i32_0 = arith.constant 0 : i32
    %c0_i32_1 = arith.constant 0 : i32
    return %c0_i32, %c0_i32_0 : i32, i32
  }
  func.func @transform_9(%arg0: i32) -> (i32, i32) {
    %c0_i32 = arith.constant 0 : i32
    %c0_i32_0 = arith.constant 0 : i32
    %c0_i32_1 = arith.constant 0 : i32
    return %c0_i32, %c0_i32_0 : i32, i32
  }
  func.func @transform_10(%arg0: i32) -> (i32, i32) {
    %c0_i32 = arith.constant 0 : i32
    %c0_i32_0 = arith.constant 0 : i32
    %c0_i32_1 = arith.constant 0 : i32
    return %c0_i32, %c0_i32_0 : i32, i32
  }
  func.func @transform_11(%arg0: i32) -> (i32, i32) {
    %c0_i32 = arith.constant 0 : i32
    %c0_i32_0 = arith.constant 0 : i32
    %c0_i32_1 = arith.constant 0 : i32
    return %c0_i32, %c0_i32_0 : i32, i32
  }
  func.func @transform_12(%arg0: i32) -> (i32, i32) {
    %c0_i32 = arith.constant 0 : i32
    %c0_i32_0 = arith.constant 0 : i32
    %c0_i32_1 = arith.constant 0 : i32
    return %c0_i32, %c0_i32_0 : i32, i32
  }
  func.func @transform_13(%arg0: i32) -> (i32, i32) {
    %c0_i32 = arith.constant 0 : i32
    %c0_i32_0 = arith.constant 0 : i32
    %c0_i32_1 = arith.constant 0 : i32
    return %c0_i32, %c0_i32_0 : i32, i32
  }
}

</mosaic_0001>

<bundles_post_ra>
// kernel: acgd_forward.4
= control target key start
LH: loop header
LB: loop body
LE: loop exit
PB: predicated region body
PF: predicated region fallthrough
CT: control target
= control target key end

     0   :  { %s1499_s12 = smov 0   ;;  %s1870_s0 = inlined_call_operand.vmem [shape: bf16[800,192], index: 0, kind: input, shape index: {}]   ;;  %s1871_s1 = inlined_call_operand.vmem [shape: bf16[192,32], index: 1, kind: input, shape index: {}]   ;;  %s1872_s2 = inlined_call_operand.vmem [shape: f32[1,32], index: 2, kind: input, shape index: {}]   ;;  %s1873_s3 = inlined_call_operand.vmem [shape: bf16[800,32], index: 3, kind: output, shape index: {}]  }
   0x1 LB: > { %s1104_s13 = sadd.s32 4294967295, %s1477_s12   ;;  %p1108_p0 = scmp.ge.s32.totalorder %s1477_s12, 1  ;;  %s1477_s12 = sphi %s1499_s12, %s13_s12  }
   0x2   : > { %p139_p1 = scmp.lt.s32.totalorder %s1477_s12, 3 }
   0x4   : > { %p140_p2 = pnand %p1108_p0, %p139_p1 }
   0x5   : > { %s164_s18 = smul.u32 (!%p140_p2), 50, %s1104_s13 }
   0x6   : > { %143 = sbr.rel (%p140_p2) target bundleno = 385 (0x181), region = 32 }
   0x7   : > { %p165_p3 = scmp.lt.s32.totalorder (!%p140_p2), %s164_s18, 99 }
   0xb   : > { %v1445_v0 = vld [vmem:[%s1871_s1 + $0x38] sm:$0xff]  ;;  %v1444_v2 = vld [vmem:[%s1871_s1 + $0x30] sm:$0xff]  ;;  %s1875_s18 = smov (!%p165_p3, %s164_s18), 99  ;;  %v1443_v4 = vld [vmem:[%s1871_s1 + $0x28] sm:$0xff]  ;;  %vm553_vm0 = vcmask 523264   ;;  %vm997_vm1 = vcmask 257024  }
   0xc   : > { %v1449_v1 = vld [vmem:[%s1871_s1 + $0x58] sm:$0xff]  ;;  %629 = vmatpush.bf16.msra.mxu0 %v1445_v0  ;;  %1450 = vmatpush.bf16.msra.mxu2 %v1445_v0  ;;  %v1448_v3 = vld [vmem:[%s1871_s1 + $0x50] sm:$0xff]  ;;  %s1387_s25 = sshll.u32 %s1875_s18, 3  ;;  %v1447_v5 = vld [vmem:[%s1871_s1 + $0x48] sm:$0xff]  ;;  %s1111_s20 = sshll.u32 %s1875_s18, 2 }
   0xd   : > { %767 = vmatpush.bf16.msra.mxu1 %v1449_v1  ;;  %1458 = vmatpush.bf16.msra.mxu3 %v1449_v1  ;;  %s1531_s30 = scalar_lea.vmem %s1870_s0, %s1387_s25  ;;  %v1442_v6 = vld [vmem:[%s1871_s1 + $0x20] sm:$0xff]  ;;  %v1441_v13 = vld [vmem:[%s1871_s1 + $0x18] sm:$0xff]  ;;  %v1440_v15 = vld [vmem:[%s1871_s1 + $0x10] sm:$0xff]  ;;  %s1661_s23 = scalar_lea.vmem %s1873_s3, %s1111_s20 }
   0xe   : > { %v1446_v7 = vld [vmem:[%s1871_s1 + $0x40] sm:$0xff]  ;;  %v1116_v9 = vld [vmem:[%s1531_s30 + $0x8] sm:$0xf0]  ;;  %v1414_v10 = vld [vmem:[%s1531_s30 + $0xd4] sm:$0xf] }
   0xf   : > { %v1388_v8 = vld [vmem:[%s1531_s30 + $0x4] sm:$0xf]  ;;  %v1220_v11 = vld [vmem:[%s1531_s30 + $0xd8] sm:$0xf0]  ;;  %v1439_v16 = vld [vmem:[%s1871_s1 + $0x8] sm:$0xff] }
  0x10   : > { %630 = vmatpush.bf16.msra.mxu0 %v1444_v2  ;;  %1451 = vmatpush.bf16.msra.mxu2 %v1444_v2  ;;  %v1119_v12 = vor.u32 %v1388_v8, %v1116_v9  ;;  %v1223_v14 = vor.u32 %v1414_v10, %v1220_v11  ;;  %v1438_v17 = vld [vmem:[%s1871_s1] sm:$0xff]  ;;  %v1389_v19 = vld [vmem:[%s1531_s30 + $0x4] sm:$0xf0]  ;;  %v1390_v22 = vld [vmem:[%s1531_s30 + $0x14] sm:$0xf] }
  0x11   : > { %768 = vmatpush.bf16.msra.mxu1 %v1448_v3  ;;  %1459 = vmatpush.bf16.msra.mxu3 %v1448_v3  ;;  %v1114_v18 = vld [vmem:[%s1531_s30] sm:$0xf]  ;;  %v1413_v21 = vld [vmem:[%s1531_s30 + $0xc4] sm:$0xf0]  ;;  %v1124_v23 = vld [vmem:[%s1531_s30 + $0x18] sm:$0xf0] }
  0x12   : > { %v1210_v20 = vld [vmem:[%s1531_s30 + $0xc0] sm:$0xf]  ;;  %v1416_v24 = vld [vmem:[%s1531_s30 + $0xe4] sm:$0xf]  ;;  %v1228_v25 = vld [vmem:[%s1531_s30 + $0xe8] sm:$0xf0]  ;;  %v1115_v26 = vor.u32 %v1389_v19, %v1114_v18  ;;  %v1127_v28 = vor.u32 %v1390_v22, %v1124_v23 }
  0x13   : > { %v1211_v27 = vor.u32 %v1413_v21, %v1210_v20  ;;  %v1231_v29 = vor.u32 %v1416_v24, %v1228_v25  ;;  %v1122_v30 = vld [vmem:[%s1531_s30 + $0x10] sm:$0xf]  ;;  %v1391_v31 = vld [vmem:[%s1531_s30 + $0x14] sm:$0xf0]  ;;  %v1392_v34 = vld [vmem:[%s1531_s30 + $0x24] sm:$0xf] }
  0x14   : > { %631 = vmatpush.bf16.msra.mxu0 %v1443_v4  ;;  %1452 = vmatpush.bf16.msra.mxu2 %v1443_v4  ;;  %v1218_v32 = vld [vmem:[%s1531_s30 + $0xd0] sm:$0xf]  ;;  %v1415_v33 = vld [vmem:[%s1531_s30 + $0xd4] sm:$0xf0]  ;;  %v1132_v35 = vld [vmem:[%s1531_s30 + $0x28] sm:$0xf0]  ;;  %v1123_v38 = vor.u32 %v1391_v31, %v1122_v30 }
  0x15   : > { %769 = vmatpush.bf16.msra.mxu1 %v1447_v5  ;;  %1460 = vmatpush.bf16.msra.mxu3 %v1447_v5  ;;  %v1418_v36 = vld [vmem:[%s1531_s30 + $0xf4] sm:$0xf]  ;;  %v1236_v37 = vld [vmem:[%s1531_s30 + $0xf8] sm:$0xf0]  ;;  %v1219_v39 = vor.u32 %v1415_v33, %v1218_v32  ;;  %v1135_v40 = vor.u32 %v1392_v34, %v1132_v35  ;;  %v1130_v42 = vld [vmem:[%s1531_s30 + $0x20] sm:$0xf] }
  0x16   : > { %v1239_v41 = vor.u32 %v1418_v36, %v1236_v37  ;;  %v1393_v43 = vld [vmem:[%s1531_s30 + $0x24] sm:$0xf0]  ;;  %v1226_v44 = vld [vmem:[%s1531_s30 + $0xe0] sm:$0xf]  ;;  %v1394_v46 = vld [vmem:[%s1531_s30 + $0x34] sm:$0xf] }
  0x17   : > { %v1417_v45 = vld [vmem:[%s1531_s30 + $0xe4] sm:$0xf0]  ;;  %v1140_v47 = vld [vmem:[%s1531_s30 + $0x38] sm:$0xf0]  ;;  %v1420_v48 = vld [vmem:[%s1531_s30 + $0x104] sm:$0xf]  ;;  %v1131_v50 = vor.u32 %v1393_v43, %v1130_v42 }
  0x18   : > { %632 = vmatpush.bf16.msra.mxu0 %v1442_v6  ;;  %1453 = vmatpush.bf16.msra.mxu2 %v1442_v6  ;;  %v1244_v49 = vld [vmem:[%s1531_s30 + $0x108] sm:$0xf0]  ;;  %v1227_v51 = vor.u32 %v1417_v45, %v1226_v44  ;;  %v1143_v52 = vor.u32 %v1394_v46, %v1140_v47  ;;  %v1138_v54 = vld [vmem:[%s1531_s30 + $0x30] sm:$0xf]  ;;  %v1395_v55 = vld [vmem:[%s1531_s30 + $0x34] sm:$0xf0] }
  0x19   : > { %770 = vmatpush.bf16.msra.mxu1 %v1446_v7  ;;  %1461 = vmatpush.bf16.msra.mxu3 %v1446_v7  ;;  %v1247_v53 = vor.u32 %v1420_v48, %v1244_v49  ;;  %v1234_v56 = vld [vmem:[%s1531_s30 + $0xf0] sm:$0xf]  ;;  %v1419_v57 = vld [vmem:[%s1531_s30 + $0xf4] sm:$0xf0]  ;;  %v1396_v58 = vld [vmem:[%s1531_s30 + $0x44] sm:$0xf]  ;;  %v1139_v62 = vor.u32 %v1395_v55, %v1138_v54 }
  0x1a   : > { %v1148_v59 = vld [vmem:[%s1531_s30 + $0x48] sm:$0xf0]  ;;  %v1422_v60 = vld [vmem:[%s1531_s30 + $0x114] sm:$0xf]  ;;  %v1252_v61 = vld [vmem:[%s1531_s30 + $0x118] sm:$0xf0]  ;;  %v1235_v63 = vor.u32 %v1419_v57, %v1234_v56 }
  0x1b   : > { %v1151_v0 = vor.u32 %v1396_v58, %v1148_v59  ;;  %v1255_v1 = vor.u32 %v1422_v60, %v1252_v61  ;;  %v1146_v2 = vld [vmem:[%s1531_s30 + $0x40] sm:$0xf]  ;;  %v1397_v3 = vld [vmem:[%s1531_s30 + $0x44] sm:$0xf0]  ;;  %v1398_v6 = vld [vmem:[%s1531_s30 + $0x54] sm:$0xf] }
  0x1c   : > { %1360 = vmatmul.msk.bf16.vlgmr.msra.gmra.mxu1 %vm553_vm0, %v1119_v12  ;;  %633 = vmatpush.bf16.msra.mxu0 %v1441_v13  ;;  %v1242_v4 = vld [vmem:[%s1531_s30 + $0x100] sm:$0xf]  ;;  %v1421_v5 = vld [vmem:[%s1531_s30 + $0x104] sm:$0xf0]  ;;  %v1156_v7 = vld [vmem:[%s1531_s30 + $0x58] sm:$0xf0]  ;;  %v1147_v10 = vor.u32 %v1397_v3, %v1146_v2 }
  0x1d   : > { %1454 = vmatpush.bf16.msra.mxu2 %v1441_v13  ;;  %1373 = vmatmul.msk.bf16.vlgmr.msra.gmra.mxu3 %vm553_vm0, %v1223_v14  ;;  %v1424_v8 = vld [vmem:[%s1531_s30 + $0x124] sm:$0xf]  ;;  %v1260_v9 = vld [vmem:[%s1531_s30 + $0x128] sm:$0xf0]  ;;  %v1243_v11 = vor.u32 %v1421_v5, %v1242_v4  ;;  %v1159_v12 = vor.u32 %v1398_v6, %v1156_v7  ;;  %v1154_v14 = vld [vmem:[%s1531_s30 + $0x50] sm:$0xf] }
  0x1e   : > { %v1263_v13 = vor.u32 %v1424_v8, %v1260_v9  ;;  %v1400_v18 = vld [vmem:[%s1531_s30 + $0x64] sm:$0xf]  ;;  %v1164_v19 = vld [vmem:[%s1531_s30 + $0x68] sm:$0xf0]  ;;  %v1426_v20 = vld [vmem:[%s1531_s30 + $0x134] sm:$0xf] }
  0x1f   : > { %v1268_v21 = vld [vmem:[%s1531_s30 + $0x138] sm:$0xf0]  ;;  %v1167_v24 = vor.u32 %v1400_v18, %v1164_v19  ;;  %v1402_v30 = vld [vmem:[%s1531_s30 + $0x74] sm:$0xf]  ;;  %v1428_v32 = vld [vmem:[%s1531_s30 + $0x144] sm:$0xf] }
  0x20   : > { %634 = vmatpush.bf16.msra.mxu0 %v1440_v15  ;;  %v1271_v25 = vor.u32 %v1426_v20, %v1268_v21  ;;  %v1172_v31 = vld [vmem:[%s1531_s30 + $0x78] sm:$0xf0]  ;;  %v1276_v33 = vld [vmem:[%s1531_s30 + $0x148] sm:$0xf0]  ;;  %v1404_v42 = vld [vmem:[%s1531_s30 + $0x84] sm:$0xf] }
  0x21   : > { %1455 = vmatpush.bf16.msra.mxu2 %v1440_v15  ;;  %v1399_v15 = vld [vmem:[%s1531_s30 + $0x54] sm:$0xf0]  ;;  %v1175_v36 = vor.u32 %v1402_v30, %v1172_v31  ;;  %v1279_v37 = vor.u32 %v1428_v32, %v1276_v33  ;;  %v1180_v43 = vld [vmem:[%s1531_s30 + $0x88] sm:$0xf0]  ;;  %v1430_v44 = vld [vmem:[%s1531_s30 + $0x154] sm:$0xf] }
  0x22   : > { %v1155_v22 = vor.u32 %v1399_v15, %v1154_v14  ;;  %v1284_v45 = vld [vmem:[%s1531_s30 + $0x158] sm:$0xf0]  ;;  %v1183_v48 = vor.u32 %v1404_v42, %v1180_v43  ;;  %v1178_v54 = vld [vmem:[%s1531_s30 + $0x80] sm:$0xf]  ;;  %v1405_v55 = vld [vmem:[%s1531_s30 + $0x84] sm:$0xf0] }
  0x23   : > { %v1274_v56 = vld [vmem:[%s1531_s30 + $0x140] sm:$0xf]  ;;  %v1429_v57 = vld [vmem:[%s1531_s30 + $0x144] sm:$0xf0]  ;;  %v1406_v58 = vld [vmem:[%s1531_s30 + $0x94] sm:$0xf] }
  0x24   : > { %635 = vmatpush.bf16.msra.mxu0 %v1439_v16  ;;  %v1188_v59 = vld [vmem:[%s1531_s30 + $0x98] sm:$0xf0]  ;;  %v1432_v60 = vld [vmem:[%s1531_s30 + $0x164] sm:$0xf]  ;;  %v1292_v61 = vld [vmem:[%s1531_s30 + $0x168] sm:$0xf0] }
  0x25   : > { %1456 = vmatpush.bf16.msra.mxu2 %v1439_v16  ;;  %v1250_v16 = vld [vmem:[%s1531_s30 + $0x110] sm:$0xf]  ;;  %v1295_v5 = vor.u32 %v1432_v60, %v1292_v61  ;;  %v1431_v18 = vld [vmem:[%s1531_s30 + $0x154] sm:$0xf0]  ;;  %v1408_v20 = vld [vmem:[%s1531_s30 + $0xa4] sm:$0xf] }
  0x26   : > { %v1186_v15 = vld [vmem:[%s1531_s30 + $0x90] sm:$0xf]  ;;  %v1196_v21 = vld [vmem:[%s1531_s30 + $0xa8] sm:$0xf0] }
  0x28   : > { %636 = vmatpush.bf16.msra.mxu0 %v1438_v17 }
  0x29   : > { %1457 = vmatpush.bf16.msra.mxu2 %v1438_v17  ;;  %v1423_v17 = vld [vmem:[%s1531_s30 + $0x114] sm:$0xf0] }
  0x2a   : > { %v1251_v23 = vor.u32 %v1423_v17, %v1250_v16  ;;  %v1407_v16 = vld [vmem:[%s1531_s30 + $0x94] sm:$0xf0]  ;;  %v1282_v17 = vld [vmem:[%s1531_s30 + $0x150] sm:$0xf] }
  0x2b   : > { %637 = vmatmul.bf16.vlgmr.msra.gmra.mxu0 %v1115_v26  ;;  %v1162_v26 = vld [vmem:[%s1531_s30 + $0x60] sm:$0xf] }
  0x2c   : > { %697 = vmatmul.bf16.vlgmr.msra.gmra.mxu2 %v1211_v27  ;;  %1361 = vmatmul.msk.bf16.gmra.mxu1 %vm553_vm0, %v1127_v28  ;;  %v1401_v27 = vld [vmem:[%s1531_s30 + $0x64] sm:$0xf0]  ;;  %v1258_v28 = vld [vmem:[%s1531_s30 + $0x120] sm:$0xf] }
  0x2d   : > { %1374 = vmatmul.msk.bf16.gmra.mxu3 %vm553_vm0, %v1231_v29  ;;  %v1425_v29 = vld [vmem:[%s1531_s30 + $0x124] sm:$0xf0]  ;;  %v1163_v34 = vor.u32 %v1401_v27, %v1162_v26  ;;  %v1187_v26 = vor.u32 %v1407_v16, %v1186_v15 }
  0x2e   : > { %v1259_v35 = vor.u32 %v1425_v29, %v1258_v28  ;;  %v1283_v28 = vor.u32 %v1431_v18, %v1282_v17  ;;  %v1199_v29 = vor.u32 %v1408_v20, %v1196_v21  ;;  %v1202_v20 = vld [vmem:[%s1531_s30 + $0xb0] sm:$0xf]  ;;  %v1411_v21 = vld [vmem:[%s1531_s30 + $0xb4] sm:$0xf0] }
  0x3b   : > { %642 = vmatmul.bf16.gmra.mxu0 %v1123_v38  ;;  %v1170_v38 = vld [vmem:[%s1531_s30 + $0x70] sm:$0xf] }
  0x3c   : > { %702 = vmatmul.bf16.gmra.mxu2 %v1219_v39  ;;  %1362 = vmatmul.msk.bf16.gmra.mxu1 %vm553_vm0, %v1135_v40  ;;  %v1403_v39 = vld [vmem:[%s1531_s30 + $0x74] sm:$0xf0]  ;;  %v1266_v40 = vld [vmem:[%s1531_s30 + $0x130] sm:$0xf] }
  0x3d   : > { %1375 = vmatmul.msk.bf16.gmra.mxu3 %vm553_vm0, %v1239_v41  ;;  %v1427_v41 = vld [vmem:[%s1531_s30 + $0x134] sm:$0xf0]  ;;  %v1171_v46 = vor.u32 %v1403_v39, %v1170_v38 }
  0x3e   : > { %v1267_v47 = vor.u32 %v1427_v41, %v1266_v40 }
  0x4b   : > { %647 = vmatmul.bf16.gmra.mxu0 %v1131_v50  ;;  %v1287_v50 = vor.u32 %v1430_v44, %v1284_v45  ;;  %v1194_v45 = vld [vmem:[%s1531_s30 + $0xa0] sm:$0xf] }
  0x4c   : > { %707 = vmatmul.bf16.gmra.mxu2 %v1227_v51  ;;  %1363 = vmatmul.msk.bf16.gmra.mxu1 %vm553_vm0, %v1143_v52 }
  0x4d   : > { %1376 = vmatmul.msk.bf16.gmra.mxu3 %vm553_vm0, %v1247_v53  ;;  %v1642_v53 = vld [vmem:[%s1872_s2] ss:$0 sm:$0xff] }
  0x5b   : > { %652 = vmatmul.bf16.gmra.mxu0 %v1139_v62  ;;  %v1179_v62 = vor.u32 %v1405_v55, %v1178_v54  ;;  %v1204_v54 = vld [vmem:[%s1531_s30 + $0xb8] sm:$0xf0] }
  0x5c   : > { %712 = vmatmul.bf16.gmra.mxu2 %v1235_v63  ;;  %1364 = vmatmul.msk.bf16.gmra.mxu1 %vm553_vm0, %v1151_v0  ;;  %v1275_v0 = vor.u32 %v1429_v57, %v1274_v56  ;;  %v1436_v56 = vld [vmem:[%s1531_s30 + $0x184] sm:$0xf]  ;;  %v1308_v57 = vld [vmem:[%s1531_s30 + $0x188] sm:$0xf0] }
  0x5d   : > { %1377 = vmatmul.msk.bf16.gmra.mxu3 %vm553_vm0, %v1255_v1  ;;  %v1191_v1 = vor.u32 %v1406_v58, %v1188_v59 }
  0x6b   : > { %657 = vmatmul.bf16.gmra.mxu0 %v1147_v10 }
  0x6c   : > { %717 = vmatmul.bf16.gmra.mxu2 %v1243_v11  ;;  %1365 = vmatmul.msk.bf16.gmra.mxu1 %vm553_vm0, %v1159_v12 }
  0x6d   : > { %1378 = vmatmul.msk.bf16.gmra.mxu3 %vm553_vm0, %v1263_v13 }
  0x7b   : > { %662 = vmatmul.bf16.gmra.mxu0 %v1155_v22  ;;  %v1434_v22 = vld [vmem:[%s1531_s30 + $0x174] sm:$0xf] }
  0x7c   : > { %722 = vmatmul.bf16.gmra.mxu2 %v1251_v23  ;;  %1366 = vmatmul.msk.bf16.gmra.mxu1 %vm553_vm0, %v1167_v24  ;;  %v1300_v23 = vld [vmem:[%s1531_s30 + $0x178] sm:$0xf0] }
  0x7d   : > { %1379 = vmatmul.msk.bf16.gmra.mxu3 %vm553_vm0, %v1271_v25  ;;  %v1303_v33 = vor.u32 %v1434_v22, %v1300_v23  ;;  %v1298_v23 = vld [vmem:[%s1531_s30 + $0x170] sm:$0xf] }
  0x8b   : > { %667 = vmatmul.bf16.gmra.mxu0 %v1163_v34 }
  0x8c   : > { %727 = vmatmul.bf16.gmra.mxu2 %v1259_v35  ;;  %1367 = vmatmul.msk.bf16.gmra.mxu1 %vm553_vm0, %v1175_v36 }
  0x8d   : > { %1380 = vmatmul.msk.bf16.gmra.mxu3 %vm553_vm0, %v1279_v37 }
  0x99   : > { %v772_v49 = vpop.f32.mrf.mxu1 }
  0x9b   : > { %672 = vmatmul.bf16.gmra.mxu0 %v1171_v46  ;;  %v1409_v46 = vld [vmem:[%s1531_s30 + $0xa4] sm:$0xf0] }
  0x9c   : > { %732 = vmatmul.bf16.gmra.mxu2 %v1267_v47  ;;  %1368 = vmatmul.msk.bf16.gmra.mxu1 %vm553_vm0, %v1183_v48  ;;  %v1290_v48 = vld [vmem:[%s1531_s30 + $0x160] sm:$0xf]  ;;  %v1195_v60 = vor.u32 %v1409_v46, %v1194_v45 }
  0x9d   : > { %1381 = vmatmul.msk.bf16.gmra.mxu3 %vm553_vm0, %v1287_v50 }
  0xa0   : > { %v1637_v51 = vpop.f32.mrf.mxu3 }
  0xa1   : > { %v774_v52 = vpop.f32.mrf.mxu1 }
  0xa8   : > { %v638_v63 = vpop.f32.mrf.mxu0  ;;  %v1652_v2 = vpop.f32.mrf.mxu3 }
  0xa9   : > { %v639_v3 = vadd.f32 %v1642_v53, %v638_v63  ;;  %v777_v4 = vpop.f32.mrf.mxu1 }
  0xab   : > { %v773_v6 = vadd.f32 %v772_v49, %v639_v3  ;;  %677 = vmatmul.bf16.gmra.mxu0 %v1179_v62  ;;  %v1433_v49 = vld [vmem:[%s1531_s30 + $0x164] sm:$0xf0] }
  0xac   : > { %737 = vmatmul.bf16.gmra.mxu2 %v1275_v0  ;;  %1369 = vmatmul.msk.bf16.gmra.mxu1 %vm553_vm0, %v1191_v1  ;;  %v1291_v62 = vor.u32 %v1433_v49, %v1290_v48 }
  0xad   : > { %v897_v7 = vmax.f32 %v773_v6, 0.0  ;;  %1382 = vmatmul.msk.bf16.gmra.mxu3 %vm553_vm0, %v1295_v5 }
  0xaf   : > { %v947_v8 = vpack.c.bf16 %v897_v7, %v897_v7  ;;  %v1663_v9 = vpop.f32.mrf.mxu2 }
  0xb0   : > { %v640_v10 = vpop.f32.mrf.mxu0  ;;  %v1665_v11 = vpop.f32.mrf.mxu3 }
  0xb1   : > { %998 = vst.msk [vmem:[%s1661_s23] sm:$0xf] %vm997_vm1, %v947_v8  ;;  %v641_v12 = vadd.f32 %v1642_v53, %v640_v10  ;;  %v779_v13 = vpop.f32.mrf.mxu1 }
  0xb3   : > { %v775_v14 = vadd.f32 %v774_v52, %v641_v12  ;;  %v1410_v52 = vld [vmem:[%s1531_s30 + $0xb4] sm:$0xf] }
  0xb4   : > { %v1207_v63 = vor.u32 %v1410_v52, %v1204_v54 }
  0xb5   : > { %v898_v19 = vmax.f32 %v775_v14, 0.0 }
  0xb7   : > { %v948_v24 = vpack.c.bf16 %v898_v19, %v898_v19  ;;  %v1678_v25 = vpop.f32.mrf.mxu2 }
  0xb8   : > { %v643_v27 = vpop.f32.mrf.mxu0  ;;  %v1680_v30 = vpop.f32.mrf.mxu3 }
  0xb9   : > { %999 = vst.msk [vmem:[%s1661_s23 + $0x4] sm:$0xf] %vm997_vm1, %v948_v24  ;;  %v644_v31 = vadd.f32 %v1642_v53, %v643_v27  ;;  %v782_v32 = vpop.f32.mrf.mxu1  ;;  %v1435_v24 = vld [vmem:[%s1531_s30 + $0x174] sm:$0xf0]  ;;  %v1412_v27 = vld [vmem:[%s1531_s30 + $0xc4] sm:$0xf] }
  0xbb   : > { %v778_v34 = vadd.f32 %v777_v4, %v644_v31  ;;  %682 = vmatmul.bf16.gmra.mxu0 %v1187_v26  ;;  %v1311_v4 = vor.u32 %v1436_v56, %v1308_v57 }
  0xbc   : > { %742 = vmatmul.bf16.gmra.mxu2 %v1283_v28  ;;  %1370 = vmatmul.msk.bf16.gmra.mxu1 %vm553_vm0, %v1199_v29  ;;  %v1212_v28 = vld [vmem:[%s1531_s30 + $0xc8] sm:$0xf0] }
  0xbd   : > { %v899_v35 = vmax.f32 %v778_v34, 0.0  ;;  %1383 = vmatmul.msk.bf16.gmra.mxu3 %vm553_vm0, %v1303_v33  ;;  %v1203_v33 = vor.u32 %v1411_v21, %v1202_v20 }
  0xbf   : > { %v949_v36 = vpack.c.bf16 %v899_v35, %v899_v35  ;;  %v703_v37 = vpop.f32.mrf.mxu2 }
  0xc0   : > { %v704_v38 = vadd.f32 %v1642_v53, %v703_v37  ;;  %v645_v39 = vpop.f32.mrf.mxu0  ;;  %v1688_v40 = vpop.f32.mrf.mxu3 }
  0xc1   : > { %1000 = vst.msk [vmem:[%s1661_s23 + $0x8] sm:$0xf] %vm997_vm1, %v949_v36  ;;  %v646_v41 = vadd.f32 %v1642_v53, %v645_v39  ;;  %v784_v42 = vpop.f32.mrf.mxu1  ;;  %v1215_v36 = vor.u32 %v1412_v27, %v1212_v28 }
  0xc2   : > { %v838_v43 = vadd.f32 %v1637_v51, %v704_v38 }
  0xc3   : > { %v780_v44 = vadd.f32 %v779_v13, %v646_v41 }
  0xc4   : > { %v923_v47 = vmax.f32 %v838_v43, 0.0 }
  0xc5   : > { %v900_v50 = vmax.f32 %v780_v44, 0.0 }
  0xc6   : > { %v973_v55 = vpack.c.bf16 %v923_v47, %v923_v47 }
  0xc7   : > { %v950_v58 = vpack.c.bf16 %v900_v50, %v900_v50  ;;  %v705_v59 = vpop.f32.mrf.mxu2 }
  0xc8   : > { %1024 = vst.msk [vmem:[%s1661_s23 + $0x68] sm:$0xf] %vm997_vm1, %v973_v55  ;;  %v706_v51 = vadd.f32 %v1642_v53, %v705_v59  ;;  %v648_v61 = vpop.f32.mrf.mxu0  ;;  %v1705_v0 = vpop.f32.mrf.mxu3  ;;  %v1437_v59 = vld [vmem:[%s1531_s30 + $0x184] sm:$0xf0] }
  0xc9   : > { %1001 = vst.msk [vmem:[%s1661_s23 + $0xc] sm:$0xf] %vm997_vm1, %v950_v58  ;;  %v649_v1 = vadd.f32 %v1642_v53, %v648_v61  ;;  %v787_v3 = vpop.f32.mrf.mxu1  ;;  %v1306_v58 = vld [vmem:[%s1531_s30 + $0x180] sm:$0xf] }
  0xca   : > { %v840_v5 = vadd.f32 %v1652_v2, %v706_v51 }
  0xcb   : > { %v783_v6 = vadd.f32 %v782_v32, %v649_v1  ;;  %687 = vmatmul.bf16.gmra.mxu0 %v1195_v60  ;;  %v1307_v1 = vor.u32 %v1437_v59, %v1306_v58 }
  0xcc   : > { %v924_v7 = vmax.f32 %v840_v5, 0.0  ;;  %747 = vmatmul.bf16.gmra.mxu2 %v1291_v62  ;;  %1371 = vmatmul.msk.bf16.gmra.mxu1 %vm553_vm0, %v1207_v63 }
  0xcd   : > { %v901_v8 = vmax.f32 %v783_v6, 0.0  ;;  %1384 = vmatmul.msk.bf16.gmra.mxu3 %vm553_vm0, %v1311_v4 }
  0xce   : > { %v974_v10 = vpack.c.bf16 %v924_v7, %v924_v7 }
  0xcf   : > { %v951_v12 = vpack.c.bf16 %v901_v8, %v901_v8  ;;  %v708_v13 = vpop.f32.mrf.mxu2 }
  0xd0   : > { %1025 = vst.msk [vmem:[%s1661_s23 + $0x6c] sm:$0xf] %vm997_vm1, %v974_v10  ;;  %v709_v2 = vadd.f32 %v1642_v53, %v708_v13  ;;  %v650_v14 = vpop.f32.mrf.mxu0  ;;  %v1716_v15 = vpop.f32.mrf.mxu3 }
  0xd1   : > { %1002 = vst.msk [vmem:[%s1661_s23 + $0x10] sm:$0xf] %vm997_vm1, %v951_v12  ;;  %v651_v16 = vadd.f32 %v1642_v53, %v650_v14  ;;  %v789_v17 = vpop.f32.mrf.mxu1 }
  0xd2   : > { %v843_v18 = vadd.f32 %v1665_v11, %v709_v2  ;;  %v1299_v11 = vor.u32 %v1435_v24, %v1298_v23 }
  0xd3   : > { %v785_v19 = vadd.f32 %v784_v42, %v651_v16 }
  0xd4   : > { %v925_v22 = vmax.f32 %v843_v18, 0.0 }
  0xd5   : > { %v902_v26 = vmax.f32 %v785_v19, 0.0 }
  0xd6   : > { %v975_v29 = vpack.c.bf16 %v925_v22, %v925_v22 }
  0xd7   : > { %v952_v31 = vpack.c.bf16 %v902_v26, %v902_v26  ;;  %v710_v32 = vpop.f32.mrf.mxu2 }
  0xd8   : > { %1026 = vst.msk [vmem:[%s1661_s23 + $0x70] sm:$0xf] %vm997_vm1, %v975_v29  ;;  %v711_v34 = vadd.f32 %v1642_v53, %v710_v32  ;;  %v653_v35 = vpop.f32.mrf.mxu0  ;;  %v1734_v39 = vpop.f32.mrf.mxu3 }
  0xd9   : > { %1003 = vst.msk [vmem:[%s1661_s23 + $0x14] sm:$0xf] %vm997_vm1, %v952_v31  ;;  %v654_v37 = vadd.f32 %v1642_v53, %v653_v35  ;;  %v792_v38 = vpop.f32.mrf.mxu1 }
  0xda   : > { %v845_v41 = vadd.f32 %v1680_v30, %v711_v34 }
  0xdb   : > { %v788_v42 = vadd.f32 %v787_v3, %v654_v37  ;;  %692 = vmatmul.bf16.gmra.mxu0 %v1203_v33 }
  0xdc   : > { %v926_v43 = vmax.f32 %v845_v41, 0.0  ;;  %752 = vmatmul.bf16.gmra.mxu2 %v1299_v11  ;;  %1372 = vmatmul.msk.bf16.gmra.mxu1 %vm553_vm0, %v1215_v36 }
  0xdd   : > { %v903_v44 = vmax.f32 %v788_v42, 0.0 }
  0xde   : > { %v976_v45 = vpack.c.bf16 %v926_v43, %v926_v43 }
  0xdf   : > { %v953_v46 = vpack.c.bf16 %v903_v44, %v903_v44  ;;  %v713_v47 = vpop.f32.mrf.mxu2 }
  0xe0   : > { %1027 = vst.msk [vmem:[%s1661_s23 + $0x74] sm:$0xf] %vm997_vm1, %v976_v45  ;;  %v714_v48 = vadd.f32 %v1642_v53, %v713_v47  ;;  %v655_v49 = vpop.f32.mrf.mxu0  ;;  %v857_v55 = vpop.f32.mrf.mxu3 }
  0xe1   : > { %1004 = vst.msk [vmem:[%s1661_s23 + $0x18] sm:$0xf] %vm997_vm1, %v953_v46  ;;  %v656_v30 = vadd.f32 %v1642_v53, %v655_v49  ;;  %v794_v50 = vpop.f32.mrf.mxu1 }
  0xe2   : > { %v848_v52 = vadd.f32 %v1688_v40, %v714_v48 }
  0xe3   : > { %v790_v54 = vadd.f32 %v789_v17, %v656_v30 }
  0xe4   : > { %v927_v56 = vmax.f32 %v848_v52, 0.0 }
  0xe5   : > { %v904_v57 = vmax.f32 %v790_v54, 0.0 }
  0xe6   : > { %v977_v60 = vpack.c.bf16 %v927_v56, %v927_v56 }
  0xe7   : > { %v954_v51 = vpack.c.bf16 %v904_v57, %v904_v57  ;;  %v715_v61 = vpop.f32.mrf.mxu2 }
  0xe8   : > { %1028 = vst.msk [vmem:[%s1661_s23 + $0x78] sm:$0xf] %vm997_vm1, %v977_v60  ;;  %v716_v62 = vadd.f32 %v1642_v53, %v715_v61  ;;  %v658_v63 = vpop.f32.mrf.mxu0  ;;  %v859_v8 = vpop.f32.mrf.mxu3 }
  0xe9   : > { %1005 = vst.msk [vmem:[%s1661_s23 + $0x1c] sm:$0xf] %vm997_vm1, %v954_v51  ;;  %v659_v40 = vadd.f32 %v1642_v53, %v658_v63  ;;  %v797_v3 = vpop.f32.mrf.mxu1 }
  0xea   : > { %v850_v4 = vadd.f32 %v1705_v0, %v716_v62 }
  0xeb   : > { %v793_v5 = vadd.f32 %v792_v38, %v659_v40 }
  0xec   : > { %v928_v6 = vmax.f32 %v850_v4, 0.0  ;;  %757 = vmatmul.bf16.gmra.mxu2 %v1307_v1 }
  0xed   : > { %v905_v7 = vmax.f32 %v793_v5, 0.0 }
  0xee   : > { %v978_v10 = vpack.c.bf16 %v928_v6, %v928_v6 }
  0xef   : > { %v955_v12 = vpack.c.bf16 %v905_v7, %v905_v7  ;;  %v718_v13 = vpop.f32.mrf.mxu2 }
  0xf0   : > { %1029 = vst.msk [vmem:[%s1661_s23 + $0x7c] sm:$0xf] %vm997_vm1, %v978_v10  ;;  %v719_v2 = vadd.f32 %v1642_v53, %v718_v13  ;;  %v660_v14 = vpop.f32.mrf.mxu0  ;;  %v862_v24 = vpop.f32.mrf.mxu3 }
  0xf1   : > { %1006 = vst.msk [vmem:[%s1661_s23 + $0x20] sm:$0xf] %vm997_vm1, %v955_v12  ;;  %v661_v16 = vadd.f32 %v1642_v53, %v660_v14  ;;  %v799_v0 = vpop.f32.mrf.mxu1 }
  0xf2   : > { %v853_v17 = vadd.f32 %v1716_v15, %v719_v2 }
  0xf3   : > { %v795_v18 = vadd.f32 %v794_v50, %v661_v16 }
  0xf4   : > { %v929_v19 = vmax.f32 %v853_v17, 0.0 }
  0xf5   : > { %v906_v20 = vmax.f32 %v795_v18, 0.0 }
  0xf6   : > { %v979_v21 = vpack.c.bf16 %v929_v19, %v929_v19 }
  0xf7   : > { %v956_v22 = vpack.c.bf16 %v906_v20, %v906_v20  ;;  %v720_v23 = vpop.f32.mrf.mxu2 }
  0xf8   : > { %1030 = vst.msk [vmem:[%s1661_s23 + $0x80] sm:$0xf] %vm997_vm1, %v979_v21  ;;  %v721_v26 = vadd.f32 %v1642_v53, %v720_v23  ;;  %v663_v27 = vpop.f32.mrf.mxu0  ;;  %v864_v42 = vpop.f32.mrf.mxu3 }
  0xf9   : > { %1007 = vst.msk [vmem:[%s1661_s23 + $0x24] sm:$0xf] %vm997_vm1, %v956_v22  ;;  %v664_v28 = vadd.f32 %v1642_v53, %v663_v27  ;;  %v802_v29 = vpop.f32.mrf.mxu1 }
  0xfa   : > { %v855_v15 = vadd.f32 %v1734_v39, %v721_v26 }
  0xfb   : > { %v798_v31 = vadd.f32 %v797_v3, %v664_v28 }
  0xfc   : > { %v930_v32 = vmax.f32 %v855_v15, 0.0 }
  0xfd   : > { %v907_v33 = vmax.f32 %v798_v31, 0.0 }
  0xfe   : > { %v980_v34 = vpack.c.bf16 %v930_v32, %v930_v32 }
  0xff   : > { %v957_v35 = vpack.c.bf16 %v907_v33, %v907_v33  ;;  %v723_v11 = vpop.f32.mrf.mxu2 }
 0x100   : > { %1031 = vst.msk [vmem:[%s1661_s23 + $0x84] sm:$0xf] %vm997_vm1, %v980_v34  ;;  %v724_v36 = vadd.f32 %v1642_v53, %v723_v11  ;;  %v665_v37 = vpop.f32.mrf.mxu0  ;;  %v867_v56 = vpop.f32.mrf.mxu3 }
 0x101   : > { %1008 = vst.msk [vmem:[%s1661_s23 + $0x28] sm:$0xf] %vm997_vm1, %v957_v35  ;;  %v666_v38 = vadd.f32 %v1642_v53, %v665_v37  ;;  %v804_v41 = vpop.f32.mrf.mxu1 }
 0x102   : > { %v858_v39 = vadd.f32 %v857_v55, %v724_v36 }
 0x103   : > { %v800_v43 = vadd.f32 %v799_v0, %v666_v38 }
 0x104   : > { %v931_v44 = vmax.f32 %v858_v39, 0.0 }
 0x105   : > { %v908_v45 = vmax.f32 %v800_v43, 0.0 }
 0x106   : > { %v981_v46 = vpack.c.bf16 %v931_v44, %v931_v44 }
 0x107   : > { %v958_v47 = vpack.c.bf16 %v908_v45, %v908_v45  ;;  %v725_v48 = vpop.f32.mrf.mxu2 }
 0x108   : > { %1032 = vst.msk [vmem:[%s1661_s23 + $0x88] sm:$0xf] %vm997_vm1, %v981_v46  ;;  %v726_v49 = vadd.f32 %v1642_v53, %v725_v48  ;;  %v668_v30 = vpop.f32.mrf.mxu0  ;;  %v869_v6 = vpop.f32.mrf.mxu3 }
 0x109   : > { %1009 = vst.msk [vmem:[%s1661_s23 + $0x2c] sm:$0xf] %vm997_vm1, %v958_v47  ;;  %v669_v50 = vadd.f32 %v1642_v53, %v668_v30  ;;  %v807_v52 = vpop.f32.mrf.mxu1 }
 0x10a   : > { %v860_v54 = vadd.f32 %v859_v8, %v726_v49 }
 0x10b   : > { %v803_v55 = vadd.f32 %v802_v29, %v669_v50 }
 0x10c   : > { %v932_v57 = vmax.f32 %v860_v54, 0.0 }
 0x10d   : > { %v909_v58 = vmax.f32 %v803_v55, 0.0 }
 0x10e   : > { %v982_v59 = vpack.c.bf16 %v932_v57, %v932_v57 }
 0x10f   : > { %v959_v60 = vpack.c.bf16 %v909_v58, %v909_v58  ;;  %v728_v51 = vpop.f32.mrf.mxu2 }
 0x110   : > { %1033 = vst.msk [vmem:[%s1661_s23 + $0x8c] sm:$0xf] %vm997_vm1, %v982_v59  ;;  %v729_v61 = vadd.f32 %v1642_v53, %v728_v51  ;;  %v670_v62 = vpop.f32.mrf.mxu0  ;;  %v872_v22 = vpop.f32.mrf.mxu3 }
 0x111   : > { %1010 = vst.msk [vmem:[%s1661_s23 + $0x30] sm:$0xf] %vm997_vm1, %v959_v60  ;;  %v671_v63 = vadd.f32 %v1642_v53, %v670_v62  ;;  %v809_v1 = vpop.f32.mrf.mxu1 }
 0x112   : > { %v863_v40 = vadd.f32 %v862_v24, %v729_v61 }
 0x113   : > { %v805_v3 = vadd.f32 %v804_v41, %v671_v63 }
 0x114   : > { %v933_v4 = vmax.f32 %v863_v40, 0.0 }
 0x115   : > { %v910_v5 = vmax.f32 %v805_v3, 0.0 }
 0x116   : > { %v983_v7 = vpack.c.bf16 %v933_v4, %v933_v4 }
 0x117   : > { %v960_v8 = vpack.c.bf16 %v910_v5, %v910_v5  ;;  %v730_v10 = vpop.f32.mrf.mxu2 }
 0x118   : > { %1034 = vst.msk [vmem:[%s1661_s23 + $0x90] sm:$0xf] %vm997_vm1, %v983_v7  ;;  %v731_v12 = vadd.f32 %v1642_v53, %v730_v10  ;;  %v673_v13 = vpop.f32.mrf.mxu0  ;;  %v874_v38 = vpop.f32.mrf.mxu3 }
 0x119   : > { %1011 = vst.msk [vmem:[%s1661_s23 + $0x34] sm:$0xf] %vm997_vm1, %v960_v8  ;;  %v674_v2 = vadd.f32 %v1642_v53, %v673_v13  ;;  %v812_v14 = vpop.f32.mrf.mxu1 }
 0x11a   : > { %v865_v16 = vadd.f32 %v864_v42, %v731_v12 }
 0x11b   : > { %v808_v0 = vadd.f32 %v807_v52, %v674_v2 }
 0x11c   : > { %v934_v17 = vmax.f32 %v865_v16, 0.0 }
 0x11d   : > { %v911_v18 = vmax.f32 %v808_v0, 0.0 }
 0x11e   : > { %v984_v19 = vpack.c.bf16 %v934_v17, %v934_v17 }
 0x11f   : > { %v961_v20 = vpack.c.bf16 %v911_v18, %v911_v18  ;;  %v733_v21 = vpop.f32.mrf.mxu2 }
 0x120   : > { %1035 = vst.msk [vmem:[%s1661_s23 + $0x94] sm:$0xf] %vm997_vm1, %v984_v19  ;;  %v734_v23 = vadd.f32 %v1642_v53, %v733_v21  ;;  %v675_v24 = vpop.f32.mrf.mxu0  ;;  %v877_v54 = vpop.f32.mrf.mxu3 }
 0x121   : > { %1012 = vst.msk [vmem:[%s1661_s23 + $0x38] sm:$0xf] %vm997_vm1, %v961_v20  ;;  %v676_v26 = vadd.f32 %v1642_v53, %v675_v24  ;;  %v814_v27 = vpop.f32.mrf.mxu1 }
 0x122   : > { %v868_v28 = vadd.f32 %v867_v56, %v734_v23 }
 0x123   : > { %v810_v29 = vadd.f32 %v809_v1, %v676_v26 }
 0x124   : > { %v935_v15 = vmax.f32 %v868_v28, 0.0 }
 0x125   : > { %v912_v31 = vmax.f32 %v810_v29, 0.0 }
 0x126   : > { %v985_v32 = vpack.c.bf16 %v935_v15, %v935_v15 }
 0x127   : > { %v962_v33 = vpack.c.bf16 %v912_v31, %v912_v31  ;;  %v735_v34 = vpop.f32.mrf.mxu2 }
 0x128   : > { %1036 = vst.msk [vmem:[%s1661_s23 + $0x98] sm:$0xf] %vm997_vm1, %v985_v32  ;;  %v736_v35 = vadd.f32 %v1642_v53, %v735_v34  ;;  %v678_v11 = vpop.f32.mrf.mxu0  ;;  %v879_v4 = vpop.f32.mrf.mxu3 }
 0x129   : > { %1013 = vst.msk [vmem:[%s1661_s23 + $0x3c] sm:$0xf] %vm997_vm1, %v962_v33  ;;  %v679_v36 = vadd.f32 %v1642_v53, %v678_v11  ;;  %v817_v37 = vpop.f32.mrf.mxu1 }
 0x12a   : > { %v870_v41 = vadd.f32 %v869_v6, %v736_v35 }
 0x12b   : > { %v813_v42 = vadd.f32 %v812_v14, %v679_v36 }
 0x12c   : > { %v936_v39 = vmax.f32 %v870_v41, 0.0 }
 0x12d   : > { %v913_v43 = vmax.f32 %v813_v42, 0.0 }
 0x12e   : > { %v986_v44 = vpack.c.bf16 %v936_v39, %v936_v39 }
 0x12f   : > { %v963_v45 = vpack.c.bf16 %v913_v43, %v913_v43  ;;  %v738_v46 = vpop.f32.mrf.mxu2 }
 0x130   : > { %1037 = vst.msk [vmem:[%s1661_s23 + $0x9c] sm:$0xf] %vm997_vm1, %v986_v44  ;;  %v739_v47 = vadd.f32 %v1642_v53, %v738_v46  ;;  %v680_v48 = vpop.f32.mrf.mxu0  ;;  %v882_v20 = vpop.f32.mrf.mxu3 }
 0x131   : > { %1014 = vst.msk [vmem:[%s1661_s23 + $0x40] sm:$0xf] %vm997_vm1, %v963_v45  ;;  %v681_v49 = vadd.f32 %v1642_v53, %v680_v48  ;;  %v819_v30 = vpop.f32.mrf.mxu1  ;;  %v699_v45 = vadd.f32 %v1642_v53, %v1663_v9 }
 0x132   : > { %v873_v50 = vadd.f32 %v872_v22, %v739_v47 }
 0x133   : > { %v815_v52 = vadd.f32 %v814_v27, %v681_v49 }
 0x134   : > { %v937_v55 = vmax.f32 %v873_v50, 0.0 }
 0x135   : > { %v914_v56 = vmax.f32 %v815_v52, 0.0 }
 0x136   : > { %v987_v57 = vpack.c.bf16 %v937_v55, %v937_v55 }
 0x137   : > { %v964_v58 = vpack.c.bf16 %v914_v56, %v914_v56  ;;  %v740_v59 = vpop.f32.mrf.mxu2 }
 0x138   : > { %1038 = vst.msk [vmem:[%s1661_s23 + $0xa0] sm:$0xf] %vm997_vm1, %v987_v57  ;;  %v741_v60 = vadd.f32 %v1642_v53, %v740_v59  ;;  %v683_v51 = vpop.f32.mrf.mxu0  ;;  %v884_v36 = vpop.f32.mrf.mxu3 }
 0x139   : > { %1015 = vst.msk [vmem:[%s1661_s23 + $0x44] sm:$0xf] %vm997_vm1, %v964_v58  ;;  %v684_v61 = vadd.f32 %v1642_v53, %v683_v51  ;;  %v822_v62 = vpop.f32.mrf.mxu1  ;;  %v701_v51 = vadd.f32 %v1642_v53, %v1678_v25 }
 0x13a   : > { %v875_v63 = vadd.f32 %v874_v38, %v741_v60 }
 0x13b   : > { %v818_v1 = vadd.f32 %v817_v37, %v684_v61 }
 0x13c   : > { %v938_v40 = vmax.f32 %v875_v63, 0.0 }
 0x13d   : > { %v915_v3 = vmax.f32 %v818_v1, 0.0 }
 0x13e   : > { %v988_v5 = vpack.c.bf16 %v938_v40, %v938_v40 }
 0x13f   : > { %v965_v6 = vpack.c.bf16 %v915_v3, %v915_v3  ;;  %v743_v7 = vpop.f32.mrf.mxu2 }
 0x140   : > { %1039 = vst.msk [vmem:[%s1661_s23 + $0xa4] sm:$0xf] %vm997_vm1, %v988_v5  ;;  %v744_v8 = vadd.f32 %v1642_v53, %v743_v7  ;;  %v685_v10 = vpop.f32.mrf.mxu0 }
 0x141   : > { %1016 = vst.msk [vmem:[%s1661_s23 + $0x48] sm:$0xf] %vm997_vm1, %v965_v6  ;;  %v686_v12 = vadd.f32 %v1642_v53, %v685_v10  ;;  %v824_v13 = vpop.f32.mrf.mxu1 }
 0x142   : > { %v878_v2 = vadd.f32 %v877_v54, %v744_v8  ;;  %v887_v54 = vpop.f32.mrf.mxu3 }
 0x143   : > { %v820_v14 = vadd.f32 %v819_v30, %v686_v12 }
 0x144   : > { %v939_v16 = vmax.f32 %v878_v2, 0.0 }
 0x145   : > { %v916_v0 = vmax.f32 %v820_v14, 0.0 }
 0x146   : > { %v989_v17 = vpack.c.bf16 %v939_v16, %v939_v16 }
 0x147   : > { %v966_v18 = vpack.c.bf16 %v916_v0, %v916_v0  ;;  %v745_v19 = vpop.f32.mrf.mxu2 }
 0x148   : > { %1040 = vst.msk [vmem:[%s1661_s23 + $0xa8] sm:$0xf] %vm997_vm1, %v989_v17  ;;  %v746_v21 = vadd.f32 %v1642_v53, %v745_v19  ;;  %v688_v22 = vpop.f32.mrf.mxu0 }
 0x149   : > { %1017 = vst.msk [vmem:[%s1661_s23 + $0x4c] sm:$0xf] %vm997_vm1, %v966_v18  ;;  %v689_v23 = vadd.f32 %v1642_v53, %v688_v22  ;;  %v827_v24 = vpop.f32.mrf.mxu1 }
 0x14a   : > { %v880_v26 = vadd.f32 %v879_v4, %v746_v21  ;;  %v889_v7 = vpop.f32.mrf.mxu3 }
 0x14b   : > { %v823_v27 = vadd.f32 %v822_v62, %v689_v23 }
 0x14c   : > { %v940_v28 = vmax.f32 %v880_v26, 0.0 }
 0x14d   : > { %v917_v29 = vmax.f32 %v823_v27, 0.0 }
 0x14e   : > { %v990_v15 = vpack.c.bf16 %v940_v28, %v940_v28 }
 0x14f   : > { %v967_v31 = vpack.c.bf16 %v917_v29, %v917_v29  ;;  %v748_v32 = vpop.f32.mrf.mxu2 }
 0x150   : > { %1041 = vst.msk [vmem:[%s1661_s23 + $0xac] sm:$0xf] %vm997_vm1, %v990_v15  ;;  %v749_v33 = vadd.f32 %v1642_v53, %v748_v32  ;;  %v690_v34 = vpop.f32.mrf.mxu0 }
 0x151   : > { %1018 = vst.msk [vmem:[%s1661_s23 + $0x50] sm:$0xf] %vm997_vm1, %v967_v31  ;;  %v691_v35 = vadd.f32 %v1642_v53, %v690_v34  ;;  %v829_v11 = vpop.f32.mrf.mxu1 }
 0x152   : > { %v883_v37 = vadd.f32 %v882_v20, %v749_v33  ;;  %v892_v17 = vpop.f32.mrf.mxu3 }
 0x153   : > { %v825_v38 = vadd.f32 %v824_v13, %v691_v35 }
 0x154   : > { %v941_v41 = vmax.f32 %v883_v37, 0.0 }
 0x155   : > { %v918_v42 = vmax.f32 %v825_v38, 0.0 }
 0x156   : > { %v991_v39 = vpack.c.bf16 %v941_v41, %v941_v41 }
 0x157   : > { %v968_v43 = vpack.c.bf16 %v918_v42, %v918_v42  ;;  %v750_v44 = vpop.f32.mrf.mxu2 }
 0x158   : > { %1042 = vst.msk [vmem:[%s1661_s23 + $0xb0] sm:$0xf] %vm997_vm1, %v991_v39  ;;  %v751_v46 = vadd.f32 %v1642_v53, %v750_v44  ;;  %v693_v47 = vpop.f32.mrf.mxu0 }
 0x159   : > { %1019 = vst.msk [vmem:[%s1661_s23 + $0x54] sm:$0xf] %vm997_vm1, %v968_v43  ;;  %v694_v48 = vadd.f32 %v1642_v53, %v693_v47  ;;  %v832_v49 = vpop.f32.mrf.mxu1 }
 0x15a   : > { %v885_v30 = vadd.f32 %v884_v36, %v751_v46  ;;  %v833_v50 = vadd.f32 %v832_v49, %v699_v45  ;;  %v894_v26 = vpop.f32.mrf.mxu3 }
 0x15b   : > { %v828_v52 = vadd.f32 %v827_v24, %v694_v48 }
 0x15c   : > { %v942_v55 = vmax.f32 %v885_v30, 0.0  ;;  %v921_v56 = vmax.f32 %v833_v50, 0.0 }
 0x15d   : > { %v919_v9 = vmax.f32 %v828_v52, 0.0 }
 0x15e   : > { %v992_v57 = vpack.c.bf16 %v942_v55, %v942_v55  ;;  %v971_v58 = vpack.c.bf16 %v921_v56, %v921_v56 }
 0x15f   : > { %v969_v59 = vpack.c.bf16 %v919_v9, %v919_v9  ;;  %v753_v60 = vpop.f32.mrf.mxu2 }
 0x160   : > { %1043 = vst.msk [vmem:[%s1661_s23 + $0xb4] sm:$0xf] %vm997_vm1, %v992_v57  ;;  %v754_v61 = vadd.f32 %v1642_v53, %v753_v60  ;;  %v695_v62 = vpop.f32.mrf.mxu0 }
 0x161   : > { %1020 = vst.msk [vmem:[%s1661_s23 + $0x58] sm:$0xf] %vm997_vm1, %v969_v59  ;;  %v696_v63 = vadd.f32 %v1642_v53, %v695_v62  ;;  %v834_v1 = vpop.f32.mrf.mxu1 }
 0x162   : > { %1022 = vst.msk [vmem:[%s1661_s23 + $0x60] sm:$0xf] %vm997_vm1, %v971_v58  ;;  %v888_v40 = vadd.f32 %v887_v54, %v754_v61  ;;  %v835_v3 = vadd.f32 %v834_v1, %v701_v51 }
 0x163   : > { %v830_v4 = vadd.f32 %v829_v11, %v696_v63 }
 0x164   : > { %v943_v5 = vmax.f32 %v888_v40, 0.0  ;;  %v922_v25 = vmax.f32 %v835_v3, 0.0 }
 0x165   : > { %v920_v6 = vmax.f32 %v830_v4, 0.0 }
 0x166   : > { %v993_v8 = vpack.c.bf16 %v943_v5, %v943_v5  ;;  %v972_v10 = vpack.c.bf16 %v922_v25, %v922_v25 }
 0x167   : > { %v970_v12 = vpack.c.bf16 %v920_v6, %v920_v6  ;;  %v755_v13 = vpop.f32.mrf.mxu2 }
 0x168   : > { %1044 = vst.msk [vmem:[%s1661_s23 + $0xb8] sm:$0xf] %vm997_vm1, %v993_v8  ;;  %v756_v2 = vadd.f32 %v1642_v53, %v755_v13 }
 0x169   : > { %1021 = vst.msk [vmem:[%s1661_s23 + $0x5c] sm:$0xf] %vm997_vm1, %v970_v12 }
 0x16a   : > { %1023 = vst.msk [vmem:[%s1661_s23 + $0x64] sm:$0xf] %vm997_vm1, %v972_v10  ;;  %v890_v14 = vadd.f32 %v889_v7, %v756_v2 }
 0x16c   : > { %v944_v16 = vmax.f32 %v890_v14, 0.0 }
 0x16e   : > { %v994_v0 = vpack.c.bf16 %v944_v16, %v944_v16 }
 0x16f   : > { %v758_v18 = vpop.f32.mrf.mxu2 }
 0x170   : > { %1045 = vst.msk [vmem:[%s1661_s23 + $0xbc] sm:$0xf] %vm997_vm1, %v994_v0  ;;  %v759_v19 = vadd.f32 %v1642_v53, %v758_v18 }
 0x172   : > { %v893_v20 = vadd.f32 %v892_v17, %v759_v19 }
 0x174   : > { %v945_v21 = vmax.f32 %v893_v20, 0.0 }
 0x176   : > { %v995_v22 = vpack.c.bf16 %v945_v21, %v945_v21 }
 0x177   : > { %v760_v23 = vpop.f32.mrf.mxu2 }
 0x178   : > { %1046 = vst.msk [vmem:[%s1661_s23 + $0xc0] sm:$0xf] %vm997_vm1, %v995_v22  ;;  %v761_v24 = vadd.f32 %v1642_v53, %v760_v23 }
 0x17a   : > { %v895_v27 = vadd.f32 %v894_v26, %v761_v24 }
 0x17c   : > { %v946_v28 = vmax.f32 %v895_v27, 0.0 }
 0x17e   : > { %v996_v29 = vpack.c.bf16 %v946_v28, %v946_v28 }
 0x180   : > { %1047 = vst.msk [vmem:[%s1661_s23 + $0xc4] sm:$0xf] %vm997_vm1, %v996_v29 }
 0x181 PF: > { %s13_s12 = sadd.s32 1, %s1477_s12  }
 0x182   : > { %p10_p4 = scmp.ge.s32.totalorder %s13_s12, 4  }
 0x184   :  { %12 = sbr.rel (!%p10_p4) target bundleno = 1 (0x1), region = 62 }

// kernel: acgd_forward.5
= control target key start
LH: loop header
LB: loop body
LE: loop exit
PB: predicated region body
PF: predicated region fallthrough
CT: control target
= control target key end

     0   :  { %vm824_vm0 = vcmask 519168   ;;  %vm845_vm1 = vcmask 516096   ;;  %s1683_s1 = inlined_call_operand.vmem [shape: bf16[512,64], index: 1, kind: input, shape index: {}]   ;;  %s1684_s2 = inlined_call_operand.vmem [shape: f32[1,64], index: 2, kind: input, shape index: {}]   ;;  %s1685_s0 = inlined_call_operand.vmem [shape: bf16[162,512], index: 0, kind: input, shape index: {}]   ;;  %s1686_s3 = inlined_call_operand.vmem [shape: bf16[162,64], index: 3, kind: output, shape index: {}]  }
   0x1   :  { %v1186_v0 = vld [vmem:[%s1683_s1 + $0x38] sm:$0xff]  ;;  %v1185_v4 = vld [vmem:[%s1683_s1 + $0x30] sm:$0xff]  ;;  %v1184_v8 = vld [vmem:[%s1683_s1 + $0x28] sm:$0xff] }
   0x2   :  { %v1194_v1 = vld [vmem:[%s1683_s1 + $0x78] sm:$0xff]  ;;  %530 = vmatpush.bf16.msra.mxu0 %v1186_v0  ;;  %v1193_v5 = vld [vmem:[%s1683_s1 + $0x70] sm:$0xff]  ;;  %v1192_v9 = vld [vmem:[%s1683_s1 + $0x68] sm:$0xff] }
   0x3   :  { %v1202_v2 = vld [vmem:[%s1683_s1 + $0xb8] sm:$0xff]  ;;  %593 = vmatpush.bf16.msra.mxu1 %v1194_v1  ;;  %v1201_v6 = vld [vmem:[%s1683_s1 + $0xb0] sm:$0xff]  ;;  %v1200_v10 = vld [vmem:[%s1683_s1 + $0xa8] sm:$0xff] }
   0x4   :  { %v1210_v3 = vld [vmem:[%s1683_s1 + $0xf8] sm:$0xff]  ;;  %656 = vmatpush.bf16.msra.mxu2 %v1202_v2  ;;  %v1209_v7 = vld [vmem:[%s1683_s1 + $0xf0] sm:$0xff]  ;;  %v1208_v11 = vld [vmem:[%s1683_s1 + $0xe8] sm:$0xff] }
   0x5   :  { %719 = vmatpush.bf16.msra.mxu3 %v1210_v3  ;;  %v1183_v12 = vld [vmem:[%s1683_s1 + $0x20] sm:$0xff]  ;;  %v1182_v16 = vld [vmem:[%s1683_s1 + $0x18] sm:$0xff]  ;;  %v1181_v20 = vld [vmem:[%s1683_s1 + $0x10] sm:$0xff] }
   0x6   :  { %531 = vmatpush.bf16.msra.mxu0 %v1185_v4  ;;  %v1191_v13 = vld [vmem:[%s1683_s1 + $0x60] sm:$0xff]  ;;  %v1190_v17 = vld [vmem:[%s1683_s1 + $0x58] sm:$0xff]  ;;  %v1189_v21 = vld [vmem:[%s1683_s1 + $0x50] sm:$0xff] }
   0x7   :  { %594 = vmatpush.bf16.msra.mxu1 %v1193_v5  ;;  %v1199_v14 = vld [vmem:[%s1683_s1 + $0xa0] sm:$0xff]  ;;  %v1198_v18 = vld [vmem:[%s1683_s1 + $0x98] sm:$0xff]  ;;  %v1197_v22 = vld [vmem:[%s1683_s1 + $0x90] sm:$0xff] }
   0x8   :  { %657 = vmatpush.bf16.msra.mxu2 %v1201_v6  ;;  %v1207_v15 = vld [vmem:[%s1683_s1 + $0xe0] sm:$0xff]  ;;  %v1206_v19 = vld [vmem:[%s1683_s1 + $0xd8] sm:$0xff]  ;;  %v1205_v23 = vld [vmem:[%s1683_s1 + $0xd0] sm:$0xff] }
   0x9   :  { %720 = vmatpush.bf16.msra.mxu3 %v1209_v7  ;;  %v1180_v24 = vld [vmem:[%s1683_s1 + $0x8] sm:$0xff]  ;;  %v1179_v28 = vld [vmem:[%s1683_s1] sm:$0xff]  ;;  %v1141_v33 = vld [vmem:[%s1685_s0 + $0xc] sm:$0xf0] }
   0xa   :  { %532 = vmatpush.bf16.msra.mxu0 %v1184_v8  ;;  %v1188_v25 = vld [vmem:[%s1683_s1 + $0x48] sm:$0xff]  ;;  %v1187_v29 = vld [vmem:[%s1683_s1 + $0x40] sm:$0xff]  ;;  %v855_v35 = vld [vmem:[%s1685_s0 + $0x10] sm:$0xf0] }
   0xb   :  { %595 = vmatpush.bf16.msra.mxu1 %v1192_v9  ;;  %v1196_v26 = vld [vmem:[%s1683_s1 + $0x88] sm:$0xff]  ;;  %v1195_v30 = vld [vmem:[%s1683_s1 + $0x80] sm:$0xff]  ;;  %v1142_v37 = vld [vmem:[%s1685_s0 + $0x14] sm:$0xf0] }
   0xc   :  { %658 = vmatpush.bf16.msra.mxu2 %v1200_v10  ;;  %v1204_v27 = vld [vmem:[%s1683_s1 + $0xc8] sm:$0xff]  ;;  %v1203_v31 = vld [vmem:[%s1683_s1 + $0xc0] sm:$0xff]  ;;  %v863_v39 = vld [vmem:[%s1685_s0 + $0x18] sm:$0xf0] }
   0xd   :  { %721 = vmatpush.bf16.msra.mxu3 %v1208_v11  ;;  %v853_v32 = vld [vmem:[%s1685_s0] sm:$0xf]  ;;  %v1139_v34 = vld [vmem:[%s1685_s0 + $0x4] sm:$0xf]  ;;  %v861_v36 = vld [vmem:[%s1685_s0 + $0x8] sm:$0xf] }
   0xe   :  { %533 = vmatpush.bf16.msra.mxu0 %v1183_v12  ;;  %v1140_v38 = vld [vmem:[%s1685_s0 + $0xc] sm:$0xf]  ;;  %v854_v40 = vor.u32 %v1141_v33, %v853_v32  ;;  %v858_v41 = vor.u32 %v1139_v34, %v855_v35  ;;  %v862_v42 = vor.u32 %v1142_v37, %v861_v36  ;;  %v869_v44 = vld [vmem:[%s1685_s0 + $0x20] sm:$0xf]  ;;  %v1145_v45 = vld [vmem:[%s1685_s0 + $0x2c] sm:$0xf0] }
   0xf   :  { %596 = vmatpush.bf16.msra.mxu1 %v1191_v13  ;;  %v866_v43 = vor.u32 %v1140_v38, %v863_v39  ;;  %v1143_v46 = vld [vmem:[%s1685_s0 + $0x24] sm:$0xf]  ;;  %v871_v47 = vld [vmem:[%s1685_s0 + $0x30] sm:$0xf0]  ;;  %v877_v48 = vld [vmem:[%s1685_s0 + $0x28] sm:$0xf]  ;;  %v870_v52 = vor.u32 %v1145_v45, %v869_v44 }
  0x10   :  { %659 = vmatpush.bf16.msra.mxu2 %v1199_v14  ;;  %v1146_v49 = vld [vmem:[%s1685_s0 + $0x34] sm:$0xf0]  ;;  %v1144_v50 = vld [vmem:[%s1685_s0 + $0x2c] sm:$0xf]  ;;  %v879_v51 = vld [vmem:[%s1685_s0 + $0x38] sm:$0xf0]  ;;  %v874_v53 = vor.u32 %v1143_v46, %v871_v47 }
  0x11   :  { %722 = vmatpush.bf16.msra.mxu3 %v1207_v15  ;;  %v878_v54 = vor.u32 %v1146_v49, %v877_v48  ;;  %v882_v55 = vor.u32 %v1144_v50, %v879_v51  ;;  %v885_v56 = vld [vmem:[%s1685_s0 + $0x40] sm:$0xf]  ;;  %v1149_v57 = vld [vmem:[%s1685_s0 + $0x4c] sm:$0xf0]  ;;  %v1147_v58 = vld [vmem:[%s1685_s0 + $0x44] sm:$0xf] }
  0x12   :  { %534 = vmatpush.bf16.msra.mxu0 %v1182_v16  ;;  %v887_v59 = vld [vmem:[%s1685_s0 + $0x50] sm:$0xf0]  ;;  %v893_v60 = vld [vmem:[%s1685_s0 + $0x48] sm:$0xf]  ;;  %v1150_v61 = vld [vmem:[%s1685_s0 + $0x54] sm:$0xf0]  ;;  %v886_v0 = vor.u32 %v1149_v57, %v885_v56 }
  0x13   :  { %597 = vmatpush.bf16.msra.mxu1 %v1190_v17  ;;  %v1148_v62 = vld [vmem:[%s1685_s0 + $0x4c] sm:$0xf]  ;;  %v895_v63 = vld [vmem:[%s1685_s0 + $0x58] sm:$0xf0]  ;;  %v890_v1 = vor.u32 %v1147_v58, %v887_v59  ;;  %v894_v2 = vor.u32 %v1150_v61, %v893_v60  ;;  %v901_v4 = vld [vmem:[%s1685_s0 + $0x60] sm:$0xf] }
  0x14   :  { %660 = vmatpush.bf16.msra.mxu2 %v1198_v18  ;;  %v898_v3 = vor.u32 %v1148_v62, %v895_v63  ;;  %v1153_v5 = vld [vmem:[%s1685_s0 + $0x6c] sm:$0xf0]  ;;  %v1151_v6 = vld [vmem:[%s1685_s0 + $0x64] sm:$0xf]  ;;  %v903_v7 = vld [vmem:[%s1685_s0 + $0x70] sm:$0xf0] }
  0x15   :  { %723 = vmatpush.bf16.msra.mxu3 %v1206_v19  ;;  %v909_v8 = vld [vmem:[%s1685_s0 + $0x68] sm:$0xf]  ;;  %v1154_v9 = vld [vmem:[%s1685_s0 + $0x74] sm:$0xf0]  ;;  %v1152_v10 = vld [vmem:[%s1685_s0 + $0x6c] sm:$0xf]  ;;  %v902_v12 = vor.u32 %v1153_v5, %v901_v4  ;;  %v906_v13 = vor.u32 %v1151_v6, %v903_v7 }
  0x16   :  { %535 = vmatpush.bf16.msra.mxu0 %v1181_v20  ;;  %v911_v11 = vld [vmem:[%s1685_s0 + $0x78] sm:$0xf0]  ;;  %v910_v14 = vor.u32 %v1154_v9, %v909_v8  ;;  %v917_v16 = vld [vmem:[%s1685_s0 + $0x80] sm:$0xf]  ;;  %v1157_v17 = vld [vmem:[%s1685_s0 + $0x8c] sm:$0xf0] }
  0x17   :  { %598 = vmatpush.bf16.msra.mxu1 %v1189_v21  ;;  %v914_v15 = vor.u32 %v1152_v10, %v911_v11  ;;  %v1155_v18 = vld [vmem:[%s1685_s0 + $0x84] sm:$0xf]  ;;  %v919_v19 = vld [vmem:[%s1685_s0 + $0x90] sm:$0xf0]  ;;  %v925_v20 = vld [vmem:[%s1685_s0 + $0x88] sm:$0xf] }
  0x18   :  { %661 = vmatpush.bf16.msra.mxu2 %v1197_v22  ;;  %v1158_v21 = vld [vmem:[%s1685_s0 + $0x94] sm:$0xf0]  ;;  %v1156_v22 = vld [vmem:[%s1685_s0 + $0x8c] sm:$0xf]  ;;  %v941_v32 = vld [vmem:[%s1685_s0 + $0xa8] sm:$0xf] }
  0x19   :  { %724 = vmatpush.bf16.msra.mxu3 %v1205_v23  ;;  %v927_v23 = vld [vmem:[%s1685_s0 + $0x98] sm:$0xf0]  ;;  %v1162_v33 = vld [vmem:[%s1685_s0 + $0xb4] sm:$0xf0]  ;;  %v1160_v34 = vld [vmem:[%s1685_s0 + $0xac] sm:$0xf] }
  0x1a   :  { %536 = vmatpush.bf16.msra.mxu0 %v1180_v24  ;;  %v918_v24 = vor.u32 %v1157_v17, %v917_v16  ;;  %v943_v35 = vld [vmem:[%s1685_s0 + $0xb8] sm:$0xf0]  ;;  %v942_v38 = vor.u32 %v1162_v33, %v941_v32  ;;  %v957_v44 = vld [vmem:[%s1685_s0 + $0xc8] sm:$0xf]  ;;  %v1166_v45 = vld [vmem:[%s1685_s0 + $0xd4] sm:$0xf0] }
  0x1b   :  { %599 = vmatpush.bf16.msra.mxu1 %v1188_v25  ;;  %v922_v25 = vor.u32 %v1155_v18, %v919_v19  ;;  %v946_v39 = vor.u32 %v1160_v34, %v943_v35  ;;  %v1164_v46 = vld [vmem:[%s1685_s0 + $0xcc] sm:$0xf]  ;;  %v959_v47 = vld [vmem:[%s1685_s0 + $0xd8] sm:$0xf0]  ;;  %v958_v50 = vor.u32 %v1166_v45, %v957_v44  ;;  %v973_v56 = vld [vmem:[%s1685_s0 + $0xe8] sm:$0xf] }
  0x1c   :  { %662 = vmatpush.bf16.msra.mxu2 %v1196_v26  ;;  %v926_v26 = vor.u32 %v1158_v21, %v925_v20  ;;  %v962_v51 = vor.u32 %v1164_v46, %v959_v47  ;;  %v1170_v57 = vld [vmem:[%s1685_s0 + $0xf4] sm:$0xf0]  ;;  %v1168_v58 = vld [vmem:[%s1685_s0 + $0xec] sm:$0xf]  ;;  %v975_v59 = vld [vmem:[%s1685_s0 + $0xf8] sm:$0xf0] }
  0x1d   :  { %725 = vmatpush.bf16.msra.mxu3 %v1204_v27  ;;  %v930_v27 = vor.u32 %v1156_v22, %v927_v23  ;;  %v974_v62 = vor.u32 %v1170_v57, %v973_v56  ;;  %v978_v63 = vor.u32 %v1168_v58, %v975_v59  ;;  %v983_v4 = vld [vmem:[%s1685_s0 + $0x110] sm:$0xf0]  ;;  %v989_v5 = vld [vmem:[%s1685_s0 + $0x108] sm:$0xf]  ;;  %v1174_v6 = vld [vmem:[%s1685_s0 + $0x114] sm:$0xf0] }
  0x1e   :  { %537 = vmatpush.bf16.msra.mxu0 %v1179_v28  ;;  %v933_v28 = vld [vmem:[%s1685_s0 + $0xa0] sm:$0xf]  ;;  %v1172_v7 = vld [vmem:[%s1685_s0 + $0x10c] sm:$0xf]  ;;  %v991_v8 = vld [vmem:[%s1685_s0 + $0x118] sm:$0xf0] }
  0x1f   :  { %600 = vmatpush.bf16.msra.mxu1 %v1187_v29  ;;  %v1161_v29 = vld [vmem:[%s1685_s0 + $0xac] sm:$0xf0]  ;;  %v1007_v32 = vld [vmem:[%s1685_s0 + $0x138] sm:$0xf0] }
  0x20   :  { %663 = vmatpush.bf16.msra.mxu2 %v1195_v30  ;;  %v1159_v30 = vld [vmem:[%s1685_s0 + $0xa4] sm:$0xf]  ;;  %v934_v36 = vor.u32 %v1161_v29, %v933_v28  ;;  %v999_v28 = vld [vmem:[%s1685_s0 + $0x130] sm:$0xf0]  ;;  %v1005_v29 = vld [vmem:[%s1685_s0 + $0x128] sm:$0xf] }
  0x21   :  { %726 = vmatpush.bf16.msra.mxu3 %v1203_v31  ;;  %538 = vmatmul.bf16.vlgmr.msra.gmra.mxu0 %v854_v40  ;;  %v935_v31 = vld [vmem:[%s1685_s0 + $0xb0] sm:$0xf0]  ;;  %v949_v40 = vld [vmem:[%s1685_s0 + $0xc0] sm:$0xf] }
  0x22   :  { %601 = vmatmul.bf16.vlgmr.msra.gmra.mxu1 %v858_v41  ;;  %v938_v37 = vor.u32 %v1159_v30, %v935_v31  ;;  %v1165_v41 = vld [vmem:[%s1685_s0 + $0xcc] sm:$0xf0]  ;;  %v1178_v30 = vld [vmem:[%s1685_s0 + $0x134] sm:$0xf0]  ;;  %v1176_v31 = vld [vmem:[%s1685_s0 + $0x12c] sm:$0xf] }
  0x23   :  { %664 = vmatmul.bf16.vlgmr.msra.gmra.mxu2 %v862_v42  ;;  %v1163_v42 = vld [vmem:[%s1685_s0 + $0xc4] sm:$0xf]  ;;  %v950_v48 = vor.u32 %v1165_v41, %v949_v40 }
  0x24   :  { %727 = vmatmul.bf16.vlgmr.msra.gmra.mxu3 %v866_v43  ;;  %v951_v43 = vld [vmem:[%s1685_s0 + $0xd0] sm:$0xf0] }
  0x25   :  { %v954_v49 = vor.u32 %v1163_v42, %v951_v43  ;;  %v1006_v42 = vor.u32 %v1178_v30, %v1005_v29  ;;  %v1010_v43 = vor.u32 %v1176_v31, %v1007_v32 }
  0x31   :  { %543 = vmatmul.bf16.gmra.mxu0 %v870_v52  ;;  %v965_v52 = vld [vmem:[%s1685_s0 + $0xe0] sm:$0xf] }
  0x32   :  { %606 = vmatmul.bf16.gmra.mxu1 %v874_v53  ;;  %v1169_v53 = vld [vmem:[%s1685_s0 + $0xec] sm:$0xf0] }
  0x33   :  { %669 = vmatmul.bf16.gmra.mxu2 %v878_v54  ;;  %v1167_v54 = vld [vmem:[%s1685_s0 + $0xe4] sm:$0xf]  ;;  %v966_v60 = vor.u32 %v1169_v53, %v965_v52 }
  0x34   :  { %732 = vmatmul.bf16.gmra.mxu3 %v882_v55  ;;  %v967_v55 = vld [vmem:[%s1685_s0 + $0xf0] sm:$0xf0] }
  0x35   :  { %v970_v61 = vor.u32 %v1167_v54, %v967_v55  ;;  %v54_v54 = vld [vmem:[%s1685_s0 + $0x140] sm:$0x11]  ;;  %v55_v55 = vld [vmem:[%s1685_s0 + $0x148] sm:$0x11] }
  0x36   :  { %v246_v58 = vunpack.c.l.b16 %v54_v54  ;;  %v247_v59 = vunpack.c.h.b16 %v54_v54 }
  0x41   :  { %548 = vmatmul.bf16.gmra.mxu0 %v886_v0  ;;  %v1523_v0 = vld [vmem:[%s1684_s2] ss:$0 sm:$0xff] }
  0x42   :  { %611 = vmatmul.bf16.gmra.mxu1 %v890_v1  ;;  %v981_v1 = vld [vmem:[%s1685_s0 + $0x100] sm:$0xf] }
  0x43   :  { %674 = vmatmul.bf16.gmra.mxu2 %v894_v2  ;;  %v1173_v2 = vld [vmem:[%s1685_s0 + $0x10c] sm:$0xf0] }
  0x44   :  { %737 = vmatmul.bf16.gmra.mxu3 %v898_v3  ;;  %v1171_v3 = vld [vmem:[%s1685_s0 + $0x104] sm:$0xf]  ;;  %v982_v9 = vor.u32 %v1173_v2, %v981_v1 }
  0x45   :  { %v986_v10 = vor.u32 %v1171_v3, %v983_v4  ;;  %v290_v4 = vpack.c.b16 %v246_v58, %v246_v58 }
  0x51   :  { %553 = vmatmul.bf16.gmra.mxu0 %v902_v12 }
  0x52   :  { %616 = vmatmul.bf16.gmra.mxu1 %v906_v13  ;;  %v990_v13 = vor.u32 %v1174_v6, %v989_v5  ;;  %v291_v5 = vpack.c.b16 %v247_v59, %v247_v59 }
  0x53   :  { %679 = vmatmul.bf16.gmra.mxu2 %v910_v14  ;;  %v994_v14 = vor.u32 %v1172_v7, %v991_v8 }
  0x54   :  { %742 = vmatmul.bf16.gmra.mxu3 %v914_v15 }
  0x61   :  { %558 = vmatmul.bf16.gmra.mxu0 %v918_v24  ;;  %v997_v24 = vld [vmem:[%s1685_s0 + $0x120] sm:$0xf] }
  0x62   :  { %621 = vmatmul.bf16.gmra.mxu1 %v922_v25  ;;  %v1177_v25 = vld [vmem:[%s1685_s0 + $0x12c] sm:$0xf0] }
  0x63   :  { %684 = vmatmul.bf16.gmra.mxu2 %v926_v26  ;;  %v1175_v26 = vld [vmem:[%s1685_s0 + $0x124] sm:$0xf] }
  0x64   :  { %747 = vmatmul.bf16.gmra.mxu3 %v930_v27 }
  0x71   :  { %563 = vmatmul.bf16.gmra.mxu0 %v934_v36 }
  0x72   :  { %626 = vmatmul.bf16.gmra.mxu1 %v938_v37  ;;  %v998_v37 = vor.u32 %v1177_v25, %v997_v24 }
  0x73   :  { %689 = vmatmul.bf16.gmra.mxu2 %v942_v38  ;;  %v1002_v38 = vor.u32 %v1175_v26, %v999_v28 }
  0x74   :  { %752 = vmatmul.bf16.gmra.mxu3 %v946_v39 }
  0x81   :  { %568 = vmatmul.bf16.gmra.mxu0 %v950_v48 }
  0x82   :  { %631 = vmatmul.bf16.gmra.mxu1 %v954_v49 }
  0x83   :  { %694 = vmatmul.bf16.gmra.mxu2 %v958_v50 }
  0x84   :  { %757 = vmatmul.bf16.gmra.mxu3 %v962_v51 }
  0x91   :  { %573 = vmatmul.bf16.gmra.mxu0 %v966_v60 }
  0x92   :  { %636 = vmatmul.bf16.gmra.mxu1 %v970_v61  ;;  %v248_v61 = vunpack.c.l.b16 %v55_v55 }
  0x93   :  { %699 = vmatmul.bf16.gmra.mxu2 %v974_v62  ;;  %v249_v62 = vunpack.c.h.b16 %v55_v55 }
  0x94   :  { %762 = vmatmul.bf16.gmra.mxu3 %v978_v63 }
  0x9e   :  { %v539_v11 = vpop.f32.mrf.mxu0 }
  0x9f   :  { %v602_v12 = vpop.f32.mrf.mxu1  ;;  %v540_v15 = vadd.f32 %v1523_v0, %v539_v11 }
  0xa1   :  { %578 = vmatmul.bf16.gmra.mxu0 %v982_v9  ;;  %v603_v16 = vadd.f32 %v602_v12, %v540_v15  ;;  %v292_v9 = vpack.c.b16 %v248_v61, %v248_v61 }
  0xa2   :  { %641 = vmatmul.bf16.gmra.mxu1 %v986_v10  ;;  %v293_v10 = vpack.c.b16 %v249_v62, %v249_v62 }
  0xa3   :  { %704 = vmatmul.bf16.gmra.mxu2 %v990_v13 }
  0xa4   :  { %767 = vmatmul.bf16.gmra.mxu3 %v994_v14 }
  0xa6   :  { %v665_v17 = vpop.f32.mrf.mxu2  ;;  %v541_v20 = vpop.f32.mrf.mxu0 }
  0xa7   :  { %v728_v18 = vpop.f32.mrf.mxu3  ;;  %v666_v19 = vadd.f32 %v665_v17, %v603_v16  ;;  %v604_v21 = vpop.f32.mrf.mxu1  ;;  %v542_v23 = vadd.f32 %v1523_v0, %v541_v20 }
  0xa9   :  { %v729_v22 = vadd.f32 %v728_v18, %v666_v19  ;;  %v605_v34 = vadd.f32 %v604_v21, %v542_v23 }
  0xab   :  { %v782_v27 = vmax.f32 %v729_v22, 0.0 }
  0xad   :  { %v803_v33 = vpack.c.bf16 %v782_v27, %v782_v27 }
  0xae   :  { %v667_v35 = vpop.f32.mrf.mxu2  ;;  %v544_v40 = vpop.f32.mrf.mxu0 }
  0xaf   :  { %v730_v36 = vpop.f32.mrf.mxu3  ;;  %825 = vst.msk [vmem:[%s1686_s3] sm:$0xf] %vm824_vm0, %v803_v33  ;;  %v668_v39 = vadd.f32 %v667_v35, %v605_v34  ;;  %v607_v41 = vpop.f32.mrf.mxu1  ;;  %v545_v44 = vadd.f32 %v1523_v0, %v544_v40 }
  0xb1   :  { %v731_v45 = vadd.f32 %v730_v36, %v668_v39  ;;  %583 = vmatmul.bf16.gmra.mxu0 %v998_v37  ;;  %v608_v47 = vadd.f32 %v607_v41, %v545_v44 }
  0xb2   :  { %646 = vmatmul.bf16.gmra.mxu1 %v1002_v38 }
  0xb3   :  { %v783_v46 = vmax.f32 %v731_v45, 0.0  ;;  %709 = vmatmul.bf16.gmra.mxu2 %v1006_v42 }
  0xb4   :  { %772 = vmatmul.bf16.gmra.mxu3 %v1010_v43 }
  0xb5   :  { %v804_v48 = vpack.c.bf16 %v783_v46, %v783_v46 }
  0xb6   :  { %v670_v49 = vpop.f32.mrf.mxu2  ;;  %v546_v52 = vpop.f32.mrf.mxu0 }
  0xb7   :  { %v733_v50 = vpop.f32.mrf.mxu3  ;;  %826 = vst.msk [vmem:[%s1686_s3 + $0x4] sm:$0xf] %vm824_vm0, %v804_v48  ;;  %v671_v51 = vadd.f32 %v670_v49, %v608_v47  ;;  %v609_v53 = vpop.f32.mrf.mxu1  ;;  %v547_v57 = vadd.f32 %v1523_v0, %v546_v52 }
  0xb9   :  { %v734_v56 = vadd.f32 %v733_v50, %v671_v51  ;;  %v610_v1 = vadd.f32 %v609_v53, %v547_v57 }
  0xbb   :  { %v784_v60 = vmax.f32 %v734_v56, 0.0 }
  0xbd   :  { %v805_v63 = vpack.c.bf16 %v784_v60, %v784_v60 }
  0xbe   :  { %v672_v2 = vpop.f32.mrf.mxu2  ;;  %v549_v7 = vpop.f32.mrf.mxu0 }
  0xbf   :  { %v735_v3 = vpop.f32.mrf.mxu3  ;;  %827 = vst.msk [vmem:[%s1686_s3 + $0x8] sm:$0xf] %vm824_vm0, %v805_v63  ;;  %v673_v6 = vadd.f32 %v672_v2, %v610_v1  ;;  %v612_v8 = vpop.f32.mrf.mxu1  ;;  %v550_v11 = vadd.f32 %v1523_v0, %v549_v7 }
  0xc1   :  { %v736_v12 = vadd.f32 %v735_v3, %v673_v6  ;;  %588 = vmatmul.bf16.gmra.mxu0 %v290_v4  ;;  %v613_v14 = vadd.f32 %v612_v8, %v550_v11 }
  0xc2   :  { %651 = vmatmul.bf16.gmra.mxu1 %v291_v5 }
  0xc3   :  { %v785_v13 = vmax.f32 %v736_v12, 0.0  ;;  %714 = vmatmul.bf16.gmra.mxu2 %v292_v9 }
  0xc4   :  { %777 = vmatmul.bf16.gmra.mxu3 %v293_v10 }
  0xc5   :  { %v806_v15 = vpack.c.bf16 %v785_v13, %v785_v13 }
  0xc6   :  { %v675_v16 = vpop.f32.mrf.mxu2  ;;  %v551_v19 = vpop.f32.mrf.mxu0 }
  0xc7   :  { %v738_v17 = vpop.f32.mrf.mxu3  ;;  %828 = vst.msk [vmem:[%s1686_s3 + $0xc] sm:$0xf] %vm824_vm0, %v806_v15  ;;  %v676_v18 = vadd.f32 %v675_v16, %v613_v14  ;;  %v614_v20 = vpop.f32.mrf.mxu1  ;;  %v552_v22 = vadd.f32 %v1523_v0, %v551_v19 }
  0xc9   :  { %v739_v21 = vadd.f32 %v738_v17, %v676_v18  ;;  %v615_v25 = vadd.f32 %v614_v20, %v552_v22 }
  0xcb   :  { %v786_v23 = vmax.f32 %v739_v21, 0.0 }
  0xcd   :  { %v807_v24 = vpack.c.bf16 %v786_v23, %v786_v23 }
  0xce   :  { %v677_v26 = vpop.f32.mrf.mxu2  ;;  %v554_v29 = vpop.f32.mrf.mxu0 }
  0xcf   :  { %v740_v27 = vpop.f32.mrf.mxu3  ;;  %829 = vst.msk [vmem:[%s1686_s3 + $0x10] sm:$0xf] %vm824_vm0, %v807_v24  ;;  %v678_v28 = vadd.f32 %v677_v26, %v615_v25  ;;  %v617_v30 = vpop.f32.mrf.mxu1  ;;  %v555_v31 = vadd.f32 %v1523_v0, %v554_v29 }
  0xd1   :  { %v741_v32 = vadd.f32 %v740_v27, %v678_v28  ;;  %v618_v34 = vadd.f32 %v617_v30, %v555_v31 }
  0xd3   :  { %v787_v33 = vmax.f32 %v741_v32, 0.0 }
  0xd5   :  { %v808_v35 = vpack.c.bf16 %v787_v33, %v787_v33 }
  0xd6   :  { %v680_v36 = vpop.f32.mrf.mxu2  ;;  %v556_v39 = vpop.f32.mrf.mxu0 }
  0xd7   :  { %v743_v37 = vpop.f32.mrf.mxu3  ;;  %830 = vst.msk [vmem:[%s1686_s3 + $0x14] sm:$0xf] %vm824_vm0, %v808_v35  ;;  %v681_v38 = vadd.f32 %v680_v36, %v618_v34  ;;  %v619_v40 = vpop.f32.mrf.mxu1  ;;  %v557_v42 = vadd.f32 %v1523_v0, %v556_v39 }
  0xd9   :  { %v744_v41 = vadd.f32 %v743_v37, %v681_v38  ;;  %v620_v45 = vadd.f32 %v619_v40, %v557_v42 }
  0xdb   :  { %v788_v43 = vmax.f32 %v744_v41, 0.0 }
  0xdd   :  { %v809_v44 = vpack.c.bf16 %v788_v43, %v788_v43 }
  0xde   :  { %v682_v46 = vpop.f32.mrf.mxu2  ;;  %v559_v49 = vpop.f32.mrf.mxu0 }
  0xdf   :  { %v745_v47 = vpop.f32.mrf.mxu3  ;;  %831 = vst.msk [vmem:[%s1686_s3 + $0x18] sm:$0xf] %vm824_vm0, %v809_v44  ;;  %v683_v48 = vadd.f32 %v682_v46, %v620_v45  ;;  %v622_v50 = vpop.f32.mrf.mxu1  ;;  %v560_v51 = vadd.f32 %v1523_v0, %v559_v49 }
  0xe1   :  { %v746_v52 = vadd.f32 %v745_v47, %v683_v48  ;;  %v623_v54 = vadd.f32 %v622_v50, %v560_v51 }
  0xe3   :  { %v789_v53 = vmax.f32 %v746_v52, 0.0 }
  0xe5   :  { %v810_v55 = vpack.c.bf16 %v789_v53, %v789_v53 }
  0xe6   :  { %v685_v56 = vpop.f32.mrf.mxu2  ;;  %v561_v59 = vpop.f32.mrf.mxu0 }
  0xe7   :  { %v748_v57 = vpop.f32.mrf.mxu3  ;;  %832 = vst.msk [vmem:[%s1686_s3 + $0x1c] sm:$0xf] %vm824_vm0, %v810_v55  ;;  %v686_v58 = vadd.f32 %v685_v56, %v623_v54  ;;  %v624_v60 = vpop.f32.mrf.mxu1  ;;  %v562_v62 = vadd.f32 %v1523_v0, %v561_v59 }
  0xe9   :  { %v749_v61 = vadd.f32 %v748_v57, %v686_v58  ;;  %v625_v2 = vadd.f32 %v624_v60, %v562_v62 }
  0xeb   :  { %v790_v63 = vmax.f32 %v749_v61, 0.0 }
  0xed   :  { %v811_v1 = vpack.c.bf16 %v790_v63, %v790_v63 }
  0xee   :  { %v687_v3 = vpop.f32.mrf.mxu2  ;;  %v564_v6 = vpop.f32.mrf.mxu0 }
  0xef   :  { %v750_v4 = vpop.f32.mrf.mxu3  ;;  %833 = vst.msk [vmem:[%s1686_s3 + $0x20] sm:$0xf] %vm824_vm0, %v811_v1  ;;  %v688_v5 = vadd.f32 %v687_v3, %v625_v2  ;;  %v627_v7 = vpop.f32.mrf.mxu1  ;;  %v565_v8 = vadd.f32 %v1523_v0, %v564_v6 }
  0xf1   :  { %v751_v9 = vadd.f32 %v750_v4, %v688_v5  ;;  %v628_v11 = vadd.f32 %v627_v7, %v565_v8 }
  0xf3   :  { %v791_v10 = vmax.f32 %v751_v9, 0.0 }
  0xf5   :  { %v812_v12 = vpack.c.bf16 %v791_v10, %v791_v10 }
  0xf6   :  { %v690_v13 = vpop.f32.mrf.mxu2  ;;  %v566_v16 = vpop.f32.mrf.mxu0 }
  0xf7   :  { %v753_v14 = vpop.f32.mrf.mxu3  ;;  %834 = vst.msk [vmem:[%s1686_s3 + $0x24] sm:$0xf] %vm824_vm0, %v812_v12  ;;  %v691_v15 = vadd.f32 %v690_v13, %v628_v11  ;;  %v629_v17 = vpop.f32.mrf.mxu1  ;;  %v567_v19 = vadd.f32 %v1523_v0, %v566_v16 }
  0xf9   :  { %v754_v18 = vadd.f32 %v753_v14, %v691_v15  ;;  %v630_v22 = vadd.f32 %v629_v17, %v567_v19 }
  0xfb   :  { %v792_v20 = vmax.f32 %v754_v18, 0.0 }
  0xfd   :  { %v813_v21 = vpack.c.bf16 %v792_v20, %v792_v20 }
  0xfe   :  { %v692_v23 = vpop.f32.mrf.mxu2  ;;  %v569_v26 = vpop.f32.mrf.mxu0 }
  0xff   :  { %v755_v24 = vpop.f32.mrf.mxu3  ;;  %835 = vst.msk [vmem:[%s1686_s3 + $0x28] sm:$0xf] %vm824_vm0, %v813_v21  ;;  %v693_v25 = vadd.f32 %v692_v23, %v630_v22  ;;  %v632_v27 = vpop.f32.mrf.mxu1  ;;  %v570_v28 = vadd.f32 %v1523_v0, %v569_v26 }
 0x101   :  { %v756_v29 = vadd.f32 %v755_v24, %v693_v25  ;;  %v633_v31 = vadd.f32 %v632_v27, %v570_v28 }
 0x103   :  { %v793_v30 = vmax.f32 %v756_v29, 0.0 }
 0x105   :  { %v814_v32 = vpack.c.bf16 %v793_v30, %v793_v30 }
 0x106   :  { %v695_v33 = vpop.f32.mrf.mxu2  ;;  %v571_v36 = vpop.f32.mrf.mxu0 }
 0x107   :  { %v758_v34 = vpop.f32.mrf.mxu3  ;;  %836 = vst.msk [vmem:[%s1686_s3 + $0x2c] sm:$0xf] %vm824_vm0, %v814_v32  ;;  %v696_v35 = vadd.f32 %v695_v33, %v633_v31  ;;  %v634_v37 = vpop.f32.mrf.mxu1  ;;  %v572_v39 = vadd.f32 %v1523_v0, %v571_v36 }
 0x109   :  { %v759_v38 = vadd.f32 %v758_v34, %v696_v35  ;;  %v635_v42 = vadd.f32 %v634_v37, %v572_v39 }
 0x10b   :  { %v794_v40 = vmax.f32 %v759_v38, 0.0 }
 0x10d   :  { %v815_v41 = vpack.c.bf16 %v794_v40, %v794_v40 }
 0x10e   :  { %v697_v43 = vpop.f32.mrf.mxu2  ;;  %v574_v46 = vpop.f32.mrf.mxu0 }
 0x10f   :  { %v760_v44 = vpop.f32.mrf.mxu3  ;;  %837 = vst.msk [vmem:[%s1686_s3 + $0x30] sm:$0xf] %vm824_vm0, %v815_v41  ;;  %v698_v45 = vadd.f32 %v697_v43, %v635_v42  ;;  %v637_v47 = vpop.f32.mrf.mxu1  ;;  %v575_v48 = vadd.f32 %v1523_v0, %v574_v46 }
 0x111   :  { %v761_v49 = vadd.f32 %v760_v44, %v698_v45  ;;  %v638_v51 = vadd.f32 %v637_v47, %v575_v48 }
 0x113   :  { %v795_v50 = vmax.f32 %v761_v49, 0.0 }
 0x115   :  { %v816_v52 = vpack.c.bf16 %v795_v50, %v795_v50 }
 0x116   :  { %v700_v53 = vpop.f32.mrf.mxu2  ;;  %v576_v56 = vpop.f32.mrf.mxu0 }
 0x117   :  { %v763_v54 = vpop.f32.mrf.mxu3  ;;  %838 = vst.msk [vmem:[%s1686_s3 + $0x34] sm:$0xf] %vm824_vm0, %v816_v52  ;;  %v701_v55 = vadd.f32 %v700_v53, %v638_v51  ;;  %v639_v57 = vpop.f32.mrf.mxu1  ;;  %v577_v59 = vadd.f32 %v1523_v0, %v576_v56 }
 0x119   :  { %v764_v58 = vadd.f32 %v763_v54, %v701_v55  ;;  %v640_v62 = vadd.f32 %v639_v57, %v577_v59 }
 0x11b   :  { %v796_v60 = vmax.f32 %v764_v58, 0.0 }
 0x11d   :  { %v817_v61 = vpack.c.bf16 %v796_v60, %v796_v60 }
 0x11e   :  { %v702_v63 = vpop.f32.mrf.mxu2  ;;  %v579_v3 = vpop.f32.mrf.mxu0 }
 0x11f   :  { %v765_v1 = vpop.f32.mrf.mxu3  ;;  %839 = vst.msk [vmem:[%s1686_s3 + $0x38] sm:$0xf] %vm824_vm0, %v817_v61  ;;  %v703_v2 = vadd.f32 %v702_v63, %v640_v62  ;;  %v642_v4 = vpop.f32.mrf.mxu1  ;;  %v580_v5 = vadd.f32 %v1523_v0, %v579_v3 }
 0x121   :  { %v766_v6 = vadd.f32 %v765_v1, %v703_v2  ;;  %v643_v8 = vadd.f32 %v642_v4, %v580_v5 }
 0x123   :  { %v797_v7 = vmax.f32 %v766_v6, 0.0 }
 0x125   :  { %v818_v9 = vpack.c.bf16 %v797_v7, %v797_v7 }
 0x126   :  { %v705_v10 = vpop.f32.mrf.mxu2  ;;  %v581_v13 = vpop.f32.mrf.mxu0 }
 0x127   :  { %v768_v11 = vpop.f32.mrf.mxu3  ;;  %840 = vst.msk [vmem:[%s1686_s3 + $0x3c] sm:$0xf] %vm824_vm0, %v818_v9  ;;  %v706_v12 = vadd.f32 %v705_v10, %v643_v8  ;;  %v644_v14 = vpop.f32.mrf.mxu1  ;;  %v582_v16 = vadd.f32 %v1523_v0, %v581_v13 }
 0x129   :  { %v769_v15 = vadd.f32 %v768_v11, %v706_v12  ;;  %v645_v19 = vadd.f32 %v644_v14, %v582_v16 }
 0x12b   :  { %v798_v17 = vmax.f32 %v769_v15, 0.0 }
 0x12d   :  { %v819_v18 = vpack.c.bf16 %v798_v17, %v798_v17 }
 0x12e   :  { %v707_v20 = vpop.f32.mrf.mxu2  ;;  %v584_v23 = vpop.f32.mrf.mxu0 }
 0x12f   :  { %v770_v21 = vpop.f32.mrf.mxu3  ;;  %841 = vst.msk [vmem:[%s1686_s3 + $0x40] sm:$0xf] %vm824_vm0, %v819_v18  ;;  %v708_v22 = vadd.f32 %v707_v20, %v645_v19  ;;  %v647_v24 = vpop.f32.mrf.mxu1  ;;  %v585_v25 = vadd.f32 %v1523_v0, %v584_v23 }
 0x131   :  { %v771_v26 = vadd.f32 %v770_v21, %v708_v22  ;;  %v648_v28 = vadd.f32 %v647_v24, %v585_v25 }
 0x133   :  { %v799_v27 = vmax.f32 %v771_v26, 0.0 }
 0x135   :  { %v820_v29 = vpack.c.bf16 %v799_v27, %v799_v27 }
 0x136   :  { %v710_v30 = vpop.f32.mrf.mxu2  ;;  %v586_v33 = vpop.f32.mrf.mxu0 }
 0x137   :  { %v773_v31 = vpop.f32.mrf.mxu3  ;;  %842 = vst.msk [vmem:[%s1686_s3 + $0x44] sm:$0xf] %vm824_vm0, %v820_v29  ;;  %v711_v32 = vadd.f32 %v710_v30, %v648_v28  ;;  %v649_v34 = vpop.f32.mrf.mxu1  ;;  %v587_v36 = vadd.f32 %v1523_v0, %v586_v33 }
 0x139   :  { %v774_v35 = vadd.f32 %v773_v31, %v711_v32  ;;  %v650_v39 = vadd.f32 %v649_v34, %v587_v36 }
 0x13b   :  { %v800_v37 = vmax.f32 %v774_v35, 0.0 }
 0x13d   :  { %v821_v38 = vpack.c.bf16 %v800_v37, %v800_v37 }
 0x13e   :  { %v712_v40 = vpop.f32.mrf.mxu2  ;;  %v589_v43 = vpop.f32.mrf.mxu0 }
 0x13f   :  { %v775_v41 = vpop.f32.mrf.mxu3  ;;  %843 = vst.msk [vmem:[%s1686_s3 + $0x48] sm:$0xf] %vm824_vm0, %v821_v38  ;;  %v713_v42 = vadd.f32 %v712_v40, %v650_v39  ;;  %v652_v44 = vpop.f32.mrf.mxu1  ;;  %v590_v45 = vadd.f32 %v1523_v0, %v589_v43 }
 0x141   :  { %v776_v46 = vadd.f32 %v775_v41, %v713_v42  ;;  %v653_v48 = vadd.f32 %v652_v44, %v590_v45 }
 0x143   :  { %v801_v47 = vmax.f32 %v776_v46, 0.0 }
 0x145   :  { %v822_v49 = vpack.c.bf16 %v801_v47, %v801_v47 }
 0x146   :  { %v715_v50 = vpop.f32.mrf.mxu2  ;;  %v591_v53 = vpop.f32.mrf.mxu0 }
 0x147   :  { %v778_v51 = vpop.f32.mrf.mxu3  ;;  %844 = vst.msk [vmem:[%s1686_s3 + $0x4c] sm:$0xf] %vm824_vm0, %v822_v49  ;;  %v716_v52 = vadd.f32 %v715_v50, %v653_v48  ;;  %v654_v54 = vpop.f32.mrf.mxu1 }
 0x149   :  { %v779_v55 = vadd.f32 %v778_v51, %v716_v52 }
 0x14b   :  { %v802_v56 = vmax.f32 %v779_v55, 0.0 }
 0x14d   :  { %v823_v57 = vpack.c.bf16 %v802_v56, %v802_v56 }
 0x14e   :  { %v717_v58 = vpop.f32.mrf.mxu2 }
 0x14f   :  { %v780_v0 = vpop.f32.mrf.mxu3  ;;  %846 = vst.msk [vmem:[%s1686_s3 + $0x50] sm:$0x1] %vm845_vm1, %v823_v57 }

// kernel: acgd_forward.6
= control target key start
LH: loop header
LB: loop body
LE: loop exit
PB: predicated region body
PF: predicated region fallthrough
CT: control target
= control target key end

     0   :  { %vm513_vm0 = vcmask 523264   ;;  %vm776_vm1 = vcmask 257024   ;;  %vm789_vm2 = vcmask 253952   ;;  %s1581_s1 = inlined_call_operand.vmem [shape: bf16[576,32], index: 1, kind: input, shape index: {}]   ;;  %s1582_s2 = inlined_call_operand.vmem [shape: f32[1,32], index: 2, kind: input, shape index: {}]   ;;  %s1583_s0 = inlined_call_operand.vmem [shape: bf16[98,576], index: 0, kind: input, shape index: {}]   ;;  %s1584_s3 = inlined_call_operand.vmem [shape: bf16[98,32], index: 3, kind: output, shape index: {}]  }
   0x1   :  { %v1103_v0 = vld [vmem:[%s1581_s1 + $0x38] sm:$0xff]  ;;  %v1102_v1 = vld [vmem:[%s1581_s1 + $0x30] sm:$0xff]  ;;  %v1101_v2 = vld [vmem:[%s1581_s1 + $0x28] sm:$0xff] }
   0x2   :  { %1132 = vmatpush.bf16.msra.mxu1 %v1103_v0  ;;  %1133 = vmatpush.bf16.msra.mxu2 %v1103_v0  ;;  %v1100_v3 = vld [vmem:[%s1581_s1 + $0x20] sm:$0xff]  ;;  %v1099_v4 = vld [vmem:[%s1581_s1 + $0x18] sm:$0xff]  ;;  %v1098_v5 = vld [vmem:[%s1581_s1 + $0x10] sm:$0xff] }
   0x3   :  { %1134 = vmatpush.bf16.msra.mxu3 %v1103_v0  ;;  %535 = vmatpush.bf16.msra.mxu0 %v1103_v0  ;;  %v1097_v6 = vld [vmem:[%s1581_s1 + $0x8] sm:$0xff]  ;;  %v1201_v7 = vld [vmem:[%s1583_s0 + $0xf0] sm:$0x11]  ;;  %v1096_v8 = vld [vmem:[%s1581_s1] sm:$0xff] }
   0x4   :  { %v837_v9 = vld [vmem:[%s1583_s0 + $0x50] sm:$0xf]  ;;  %v1078_v10 = vld [vmem:[%s1583_s0 + $0x60] sm:$0xf0]  ;;  %v877_v11 = vld [vmem:[%s1583_s0 + $0xa0] sm:$0xf]  ;;  %v229_v15 = vunpack.c.l.b16 %v1201_v7 }
   0x5   :  { %v1088_v12 = vld [vmem:[%s1583_s0 + $0xb0] sm:$0xf0]  ;;  %v797_v13 = vld [vmem:[%s1583_s0] sm:$0xf]  ;;  %v1127_v16 = vld [vmem:[%s1581_s1 + $0xf8] sm:$0xff]  ;;  %v838_v18 = vor.u32 %v1078_v10, %v837_v9 }
   0x6   :  { %1135 = vmatpush.bf16.msra.mxu1 %v1102_v1  ;;  %1136 = vmatpush.bf16.msra.mxu2 %v1102_v1  ;;  %v1068_v14 = vld [vmem:[%s1583_s0 + $0x10] sm:$0xf0]  ;;  %v1119_v17 = vld [vmem:[%s1581_s1 + $0xb8] sm:$0xff]  ;;  %v878_v19 = vor.u32 %v1088_v12, %v877_v11  ;;  %v264_v23 = vpack.c.b16 %v229_v15, %v229_v15  ;;  %v1125_v28 = vld [vmem:[%s1581_s1 + $0xe8] sm:$0xff] }
   0x7   :  { %1137 = vmatpush.bf16.msra.mxu3 %v1102_v1  ;;  %536 = vmatpush.bf16.msra.mxu0 %v1102_v1  ;;  %v798_v20 = vor.u32 %v1068_v14, %v797_v13  ;;  %v1111_v21 = vld [vmem:[%s1581_s1 + $0x78] sm:$0xff]  ;;  %v1126_v24 = vld [vmem:[%s1581_s1 + $0xf0] sm:$0xff]  ;;  %v1117_v29 = vld [vmem:[%s1581_s1 + $0xa8] sm:$0xff] }
   0x8   :  { %v1131_v22 = vld [vmem:[%s1581_s1 + $0x118] sm:$0xff]  ;;  %v1118_v25 = vld [vmem:[%s1581_s1 + $0xb0] sm:$0xff]  ;;  %v1109_v30 = vld [vmem:[%s1581_s1 + $0x68] sm:$0xff] }
   0x9   :  { %v1110_v26 = vld [vmem:[%s1581_s1 + $0x70] sm:$0xff]  ;;  %v1129_v31 = vld [vmem:[%s1581_s1 + $0x108] sm:$0xff]  ;;  %v1124_v32 = vld [vmem:[%s1581_s1 + $0xe0] sm:$0xff] }
   0xa   :  { %1138 = vmatpush.bf16.msra.mxu1 %v1101_v2  ;;  %1139 = vmatpush.bf16.msra.mxu2 %v1101_v2  ;;  %v1130_v27 = vld [vmem:[%s1581_s1 + $0x110] sm:$0xff]  ;;  %v1116_v33 = vld [vmem:[%s1581_s1 + $0xa0] sm:$0xff]  ;;  %v857_v35 = vld [vmem:[%s1583_s0 + $0x78] sm:$0xf] }
   0xb   :  { %1140 = vmatpush.bf16.msra.mxu3 %v1101_v2  ;;  %537 = vmatpush.bf16.msra.mxu0 %v1101_v2  ;;  %v1108_v34 = vld [vmem:[%s1581_s1 + $0x60] sm:$0xff]  ;;  %v1083_v36 = vld [vmem:[%s1583_s0 + $0x88] sm:$0xf0]  ;;  %v897_v37 = vld [vmem:[%s1583_s0 + $0xc8] sm:$0xf] }
   0xc   :  { %v1093_v38 = vld [vmem:[%s1583_s0 + $0xd8] sm:$0xf0]  ;;  %v817_v39 = vld [vmem:[%s1583_s0 + $0x28] sm:$0xf]  ;;  %v1128_v41 = vld [vmem:[%s1581_s1 + $0x100] sm:$0xff]  ;;  %v858_v44 = vor.u32 %v1083_v36, %v857_v35 }
   0xd   :  { %v1073_v40 = vld [vmem:[%s1583_s0 + $0x38] sm:$0xf0]  ;;  %v898_v45 = vor.u32 %v1093_v38, %v897_v37  ;;  %v1122_v48 = vld [vmem:[%s1581_s1 + $0xd0] sm:$0xff]  ;;  %v1121_v51 = vld [vmem:[%s1581_s1 + $0xc8] sm:$0xff] }
   0xe   :  { %1141 = vmatpush.bf16.msra.mxu1 %v1100_v3  ;;  %1142 = vmatpush.bf16.msra.mxu2 %v1100_v3  ;;  %v1123_v42 = vld [vmem:[%s1581_s1 + $0xd8] sm:$0xff]  ;;  %v818_v46 = vor.u32 %v1073_v40, %v817_v39  ;;  %v1114_v49 = vld [vmem:[%s1581_s1 + $0x90] sm:$0xff]  ;;  %v1113_v52 = vld [vmem:[%s1581_s1 + $0x88] sm:$0xff] }
   0xf   :  { %1143 = vmatpush.bf16.msra.mxu3 %v1100_v3  ;;  %538 = vmatpush.bf16.msra.mxu0 %v1100_v3  ;;  %v1115_v43 = vld [vmem:[%s1581_s1 + $0x98] sm:$0xff]  ;;  %v1106_v50 = vld [vmem:[%s1581_s1 + $0x50] sm:$0xff]  ;;  %v1105_v53 = vld [vmem:[%s1581_s1 + $0x48] sm:$0xff] }
  0x10   :  { %v1107_v47 = vld [vmem:[%s1581_s1 + $0x58] sm:$0xff]  ;;  %v1120_v54 = vld [vmem:[%s1581_s1 + $0xc0] sm:$0xff]  ;;  %v1067_v56 = vld [vmem:[%s1583_s0 + $0xc] sm:$0xf] }
  0x11   :  { %v1112_v55 = vld [vmem:[%s1581_s1 + $0x80] sm:$0xff]  ;;  %v799_v60 = vld [vmem:[%s1583_s0 + $0x14] sm:$0xf0]  ;;  %v805_v61 = vld [vmem:[%s1583_s0 + $0x8] sm:$0xf] }
  0x12   :  { %1144 = vmatpush.bf16.msra.mxu1 %v1099_v4  ;;  %1145 = vmatpush.bf16.msra.mxu2 %v1099_v4  ;;  %v807_v57 = vld [vmem:[%s1583_s0 + $0x1c] sm:$0xf0]  ;;  %v1066_v59 = vld [vmem:[%s1583_s0 + $0x4] sm:$0xf]  ;;  %v1069_v62 = vld [vmem:[%s1583_s0 + $0x18] sm:$0xf0] }
  0x13   :  { %1146 = vmatpush.bf16.msra.mxu3 %v1099_v4  ;;  %539 = vmatpush.bf16.msra.mxu0 %v1099_v4  ;;  %v1104_v58 = vld [vmem:[%s1581_s1 + $0x40] sm:$0xff]  ;;  %v810_v63 = vor.u32 %v1067_v56, %v807_v57  ;;  %v813_v0 = vld [vmem:[%s1583_s0 + $0x10] sm:$0xf]  ;;  %v802_v2 = vor.u32 %v1066_v59, %v799_v60  ;;  %v806_v3 = vor.u32 %v1069_v62, %v805_v61  ;;  %v833_v13 = vld [vmem:[%s1583_s0 + $0x38] sm:$0xf] }
  0x14   :  { %v1070_v1 = vld [vmem:[%s1583_s0 + $0x20] sm:$0xf0]  ;;  %v819_v9 = vld [vmem:[%s1583_s0 + $0x3c] sm:$0xf0]  ;;  %v825_v10 = vld [vmem:[%s1583_s0 + $0x30] sm:$0xf] }
  0x15   :  { %v814_v4 = vor.u32 %v1070_v1, %v813_v0  ;;  %v1074_v11 = vld [vmem:[%s1583_s0 + $0x40] sm:$0xf0]  ;;  %v1075_v14 = vld [vmem:[%s1583_s0 + $0x48] sm:$0xf0]  ;;  %v1084_v35 = vld [vmem:[%s1583_s0 + $0x90] sm:$0xf0] }
  0x16   :  { %1147 = vmatpush.bf16.msra.mxu1 %v1098_v5  ;;  %1148 = vmatpush.bf16.msra.mxu2 %v1098_v5  ;;  %v873_v37 = vld [vmem:[%s1583_s0 + $0x88] sm:$0xf]  ;;  %v1085_v38 = vld [vmem:[%s1583_s0 + $0x98] sm:$0xf0]  ;;  %v1091_v56 = vld [vmem:[%s1583_s0 + $0xcc] sm:$0xf] }
  0x17   :  { %1149 = vmatpush.bf16.msra.mxu3 %v1098_v5  ;;  %540 = vmatpush.bf16.msra.mxu0 %v1098_v5  ;;  %v1072_v5 = vld [vmem:[%s1583_s0 + $0x34] sm:$0xf]  ;;  %v899_v57 = vld [vmem:[%s1583_s0 + $0xdc] sm:$0xf0]  ;;  %v1094_v59 = vld [vmem:[%s1583_s0 + $0xe0] sm:$0xf0] }
  0x18   :  { %v913_v61 = vld [vmem:[%s1583_s0 + $0xd8] sm:$0xf]  ;;  %v1095_v62 = vld [vmem:[%s1583_s0 + $0xe8] sm:$0xf0] }
  0x19   :  { %v914_v1 = vor.u32 %v1095_v62, %v913_v61 }
  0x1a   :  { %1150 = vmatpush.bf16.msra.mxu1 %v1097_v6  ;;  %1151 = vmatpush.bf16.msra.mxu2 %v1097_v6 }
  0x1b   :  { %1152 = vmatpush.bf16.msra.mxu3 %v1097_v6  ;;  %541 = vmatpush.bf16.msra.mxu0 %v1097_v6  ;;  %v827_v6 = vld [vmem:[%s1583_s0 + $0x44] sm:$0xf0] }
  0x1c   :  { %v830_v12 = vor.u32 %v1072_v5, %v827_v6  ;;  %v230_v5 = vunpack.c.h.b16 %v1201_v7 }
  0x1e   :  { %1153 = vmatpush.bf16.msra.mxu1 %v1096_v8  ;;  %1154 = vmatpush.bf16.msra.mxu2 %v1096_v8 }
  0x1f   :  { %1155 = vmatpush.bf16.msra.mxu3 %v1096_v8  ;;  %542 = vmatpush.bf16.msra.mxu0 %v1096_v8  ;;  %v1071_v8 = vld [vmem:[%s1583_s0 + $0x2c] sm:$0xf] }
  0x20   :  { %v822_v15 = vor.u32 %v1071_v8, %v819_v9 }
  0x21   :  { %553 = vmatmul.bf16.vlgmr.msra.gmra.mxu1 %v838_v18  ;;  %563 = vmatmul.bf16.vlgmr.msra.gmra.mxu2 %v878_v19  ;;  %v1077_v18 = vld [vmem:[%s1583_s0 + $0x5c] sm:$0xf]  ;;  %v847_v19 = vld [vmem:[%s1583_s0 + $0x6c] sm:$0xf0] }
  0x22   :  { %621 = vmatpush.bf16.msrb.mxu2 %v1119_v17  ;;  %543 = vmatmul.bf16.vlgmr.msra.gmra.mxu0 %v798_v20  ;;  %v834_v17 = vor.u32 %v1075_v14, %v833_v13  ;;  %v1076_v20 = vld [vmem:[%s1583_s0 + $0x54] sm:$0xf] }
  0x23   :  { %664 = vmatpush.bf16.msrb.mxu3 %v1127_v16  ;;  %578 = vmatpush.bf16.msrb.mxu1 %v1111_v21  ;;  %v826_v16 = vor.u32 %v1074_v11, %v825_v10  ;;  %v839_v21 = vld [vmem:[%s1583_s0 + $0x64] sm:$0xf0]  ;;  %v265_v10 = vpack.c.b16 %v230_v5, %v230_v5 }
  0x24   :  { %711 = vmatpush.bf16.msrb.mxu0 %v1131_v22  ;;  %573 = vmatmul.bf16.vlgmr.msra.gmra.mxu3 %v264_v23  ;;  %v845_v22 = vld [vmem:[%s1583_s0 + $0x58] sm:$0xf]  ;;  %v1079_v23 = vld [vmem:[%s1583_s0 + $0x68] sm:$0xf0] }
  0x26   :  { %622 = vmatpush.bf16.msrb.mxu2 %v1118_v25  ;;  %v853_v25 = vld [vmem:[%s1583_s0 + $0x60] sm:$0xf] }
  0x27   :  { %665 = vmatpush.bf16.msrb.mxu3 %v1126_v24  ;;  %579 = vmatpush.bf16.msrb.mxu1 %v1110_v26  ;;  %v850_v24 = vor.u32 %v1077_v18, %v847_v19  ;;  %v1080_v26 = vld [vmem:[%s1583_s0 + $0x70] sm:$0xf0] }
  0x28   :  { %712 = vmatpush.bf16.msrb.mxu0 %v1130_v27  ;;  %v842_v27 = vor.u32 %v1076_v20, %v839_v21 }
  0x2a   :  { %623 = vmatpush.bf16.msrb.mxu2 %v1117_v29  ;;  %v854_v29 = vor.u32 %v1080_v26, %v853_v25 }
  0x2b   :  { %666 = vmatpush.bf16.msrb.mxu3 %v1125_v28  ;;  %580 = vmatpush.bf16.msrb.mxu1 %v1109_v30  ;;  %v846_v28 = vor.u32 %v1079_v23, %v845_v22  ;;  %v1082_v30 = vld [vmem:[%s1583_s0 + $0x84] sm:$0xf] }
  0x2c   :  { %713 = vmatpush.bf16.msrb.mxu0 %v1129_v31  ;;  %v867_v31 = vld [vmem:[%s1583_s0 + $0x94] sm:$0xf0] }
  0x2d   :  { %v870_v36 = vor.u32 %v1082_v30, %v867_v31 }
  0x2e   :  { %624 = vmatpush.bf16.msrb.mxu2 %v1116_v33  ;;  %v859_v33 = vld [vmem:[%s1583_s0 + $0x8c] sm:$0xf0] }
  0x2f   :  { %667 = vmatpush.bf16.msrb.mxu3 %v1124_v32  ;;  %581 = vmatpush.bf16.msrb.mxu1 %v1108_v34  ;;  %v1081_v32 = vld [vmem:[%s1583_s0 + $0x7c] sm:$0xf]  ;;  %v865_v34 = vld [vmem:[%s1583_s0 + $0x80] sm:$0xf] }
  0x30   :  { %714 = vmatpush.bf16.msrb.mxu0 %v1128_v41  ;;  %v862_v39 = vor.u32 %v1081_v32, %v859_v33  ;;  %v866_v40 = vor.u32 %v1084_v35, %v865_v34  ;;  %v874_v41 = vor.u32 %v1085_v38, %v873_v37 }
  0x31   :  { %558 = vmatmul.bf16.gmra.mxu1 %v858_v44  ;;  %568 = vmatmul.bf16.gmra.mxu2 %v898_v45  ;;  %v1086_v44 = vld [vmem:[%s1583_s0 + $0xa4] sm:$0xf]  ;;  %v879_v45 = vld [vmem:[%s1583_s0 + $0xb4] sm:$0xf0] }
  0x32   :  { %625 = vmatpush.bf16.msrb.mxu2 %v1115_v43  ;;  %548 = vmatmul.bf16.gmra.mxu0 %v818_v46  ;;  %v887_v43 = vld [vmem:[%s1583_s0 + $0xbc] sm:$0xf0]  ;;  %v885_v46 = vld [vmem:[%s1583_s0 + $0xa8] sm:$0xf] }
  0x33   :  { %668 = vmatpush.bf16.msrb.mxu3 %v1123_v42  ;;  %582 = vmatpush.bf16.msrb.mxu1 %v1107_v47  ;;  %v1087_v42 = vld [vmem:[%s1583_s0 + $0xac] sm:$0xf]  ;;  %v1089_v47 = vld [vmem:[%s1583_s0 + $0xb8] sm:$0xf0] }
  0x36   :  { %626 = vmatpush.bf16.msrb.mxu2 %v1114_v49  ;;  %v893_v49 = vld [vmem:[%s1583_s0 + $0xb0] sm:$0xf] }
  0x37   :  { %669 = vmatpush.bf16.msrb.mxu3 %v1122_v48  ;;  %583 = vmatpush.bf16.msrb.mxu1 %v1106_v50  ;;  %v890_v48 = vor.u32 %v1087_v42, %v887_v43  ;;  %v1090_v50 = vld [vmem:[%s1583_s0 + $0xc0] sm:$0xf0] }
  0x3a   :  { %627 = vmatpush.bf16.msrb.mxu2 %v1113_v52  ;;  %v886_v52 = vor.u32 %v1089_v47, %v885_v46 }
  0x3b   :  { %670 = vmatpush.bf16.msrb.mxu3 %v1121_v51  ;;  %584 = vmatpush.bf16.msrb.mxu1 %v1105_v53  ;;  %v882_v51 = vor.u32 %v1086_v44, %v879_v45  ;;  %v894_v53 = vor.u32 %v1090_v50, %v893_v49 }
  0x3e   :  { %628 = vmatpush.bf16.msrb.mxu2 %v1112_v55  ;;  %v907_v55 = vld [vmem:[%s1583_s0 + $0xe4] sm:$0xf0] }
  0x3f   :  { %671 = vmatpush.bf16.msrb.mxu3 %v1120_v54  ;;  %585 = vmatpush.bf16.msrb.mxu1 %v1104_v58  ;;  %v1092_v54 = vld [vmem:[%s1583_s0 + $0xd4] sm:$0xf]  ;;  %v905_v58 = vld [vmem:[%s1583_s0 + $0xd0] sm:$0xf] }
  0x40   :  { %v910_v60 = vor.u32 %v1092_v54, %v907_v55  ;;  %v906_v0 = vor.u32 %v1094_v59, %v905_v58 }
  0x41   :  { %629 = vmatmul.bf16.vlgmr.msrb.gmra.mxu2 %v806_v3 }
  0x42   :  { %672 = vmatmul.bf16.vlgmr.msrb.gmra.mxu3 %v810_v63  ;;  %586 = vmatmul.bf16.vlgmr.msrb.gmra.mxu1 %v802_v2  ;;  %v902_v63 = vor.u32 %v1091_v56, %v899_v57  ;;  %v52_v2 = vld [vmem:[%s1583_s0 + $0xf8] sm:$0x11] }
  0x43   :  { %1059 = vmatmul.msk.bf16.vlgmr.msrb.gmra.mxu0 %vm513_vm0, %v814_v4  ;;  %v232_v3 = vunpack.c.h.b16 %v52_v2  ;;  %v53_v4 = vld [vmem:[%s1583_s0 + $0x100] sm:$0x1]  ;;  %v231_v6 = vunpack.c.l.b16 %v52_v2 }
  0x44   :  { %v233_v8 = vunpack.c.l.b16 %v53_v4 }
  0x45   :  { %v267_v9 = vpack.c.b16 %v232_v3, %v232_v3  ;;  %v266_v11 = vpack.c.b16 %v231_v6, %v231_v6 }
  0x46   :  { %v268_v13 = vpack.c.b16 %v233_v8, %v233_v8 }
  0x51   :  { %634 = vmatmul.bf16.gmra.mxu2 %v826_v16 }
  0x52   :  { %677 = vmatmul.bf16.gmra.mxu3 %v830_v12  ;;  %591 = vmatmul.bf16.gmra.mxu1 %v822_v15  ;;  %v1490_v15 = vld [vmem:[%s1582_s2] ss:$0 sm:$0xff] }
  0x53   :  { %1060 = vmatmul.msk.bf16.gmra.mxu0 %vm513_vm0, %v834_v17 }
  0x61   :  { %639 = vmatmul.bf16.gmra.mxu2 %v846_v28 }
  0x62   :  { %682 = vmatmul.bf16.gmra.mxu3 %v850_v24  ;;  %596 = vmatmul.bf16.gmra.mxu1 %v842_v27 }
  0x63   :  { %1061 = vmatmul.msk.bf16.gmra.mxu0 %vm513_vm0, %v854_v29 }
  0x71   :  { %644 = vmatmul.bf16.gmra.mxu2 %v866_v40 }
  0x72   :  { %687 = vmatmul.bf16.gmra.mxu3 %v870_v36  ;;  %601 = vmatmul.bf16.gmra.mxu1 %v862_v39 }
  0x73   :  { %1062 = vmatmul.msk.bf16.gmra.mxu0 %vm513_vm0, %v874_v41 }
  0x81   :  { %649 = vmatmul.bf16.gmra.mxu2 %v886_v52 }
  0x82   :  { %692 = vmatmul.bf16.gmra.mxu3 %v890_v48  ;;  %606 = vmatmul.bf16.gmra.mxu1 %v882_v51 }
  0x83   :  { %1063 = vmatmul.msk.bf16.gmra.mxu0 %vm513_vm0, %v894_v53 }
  0x91   :  { %654 = vmatmul.bf16.gmra.mxu2 %v906_v0 }
  0x92   :  { %697 = vmatmul.bf16.gmra.mxu3 %v910_v60  ;;  %611 = vmatmul.bf16.gmra.mxu1 %v902_v63 }
  0x93   :  { %1064 = vmatmul.msk.bf16.gmra.mxu0 %vm513_vm0, %v914_v1 }
  0x9e   :  { %v1484_v12 = vpop.f32.mrf.mxu1 }
  0x9f   :  { %v544_v14 = vpop.f32.mrf.mxu0 }
  0xa0   :  { %v545_v34 = vadd.f32 %v1490_v15, %v544_v14 }
  0xa1   :  { %659 = vmatmul.bf16.gmra.mxu2 %v266_v11 }
  0xa2   :  { %702 = vmatmul.bf16.gmra.mxu3 %v267_v9  ;;  %616 = vmatmul.bf16.gmra.mxu1 %v265_v10 }
  0xa3   :  { %1065 = vmatmul.msk.bf16.gmra.mxu0 %vm513_vm0, %v268_v13  ;;  %v555_v13 = vadd.f32 %v1490_v15, %v1484_v12 }
  0xa4   :  { %v564_v7 = vpop.f32.mrf.mxu2 }
  0xa5   :  { %v1493_v16 = vadd.f32 %v1490_v15, %v564_v7 }
  0xa6   :  { %v1495_v17 = vpop.f32.mrf.mxu1 }
  0xa7   :  { %v574_v18 = vpop.f32.mrf.mxu3  ;;  %v546_v19 = vpop.f32.mrf.mxu0 }
  0xa8   :  { %v1498_v20 = vadd.f32 %v1490_v15, %v574_v18  ;;  %v547_v42 = vadd.f32 %v1490_v15, %v546_v19 }
  0xac   :  { %v566_v21 = vpop.f32.mrf.mxu2 }
  0xad   :  { %v1501_v22 = vadd.f32 %v1490_v15, %v566_v21 }
  0xae   :  { %v1503_v23 = vpop.f32.mrf.mxu1 }
  0xaf   :  { %v576_v24 = vpop.f32.mrf.mxu3  ;;  %v549_v25 = vpop.f32.mrf.mxu0 }
  0xb0   :  { %v550_v53 = vadd.f32 %v1490_v15, %v549_v25 }
  0xb4   :  { %v569_v26 = vpop.f32.mrf.mxu2 }
  0xb5   :  { %v1506_v27 = vadd.f32 %v1490_v15, %v569_v26 }
  0xb6   :  { %v1508_v28 = vpop.f32.mrf.mxu1 }
  0xb7   :  { %v551_v29 = vpop.f32.mrf.mxu0 }
  0xb8   :  { %v552_v0 = vadd.f32 %v1490_v15, %v551_v29 }
  0xbc   :  { %v571_v30 = vpop.f32.mrf.mxu2 }
  0xbd   :  { %v1511_v31 = vadd.f32 %v1490_v15, %v571_v30 }
  0xbf   :  { %v587_v32 = vpop.f32.mrf.mxu1 }
  0xc0   :  { %v716_v33 = vpop.f32.mrf.mxu0  ;;  %v588_v36 = vadd.f32 %v587_v32, %v545_v34  ;;  %v557_v32 = vadd.f32 %v1490_v15, %v1495_v17 }
  0xc4   :  { %v630_v37 = vpop.f32.mrf.mxu2 }
  0xc5   :  { %v673_v35 = vpop.f32.mrf.mxu3  ;;  %v631_v38 = vadd.f32 %v630_v37, %v588_v36 }
  0xc7   :  { %v589_v39 = vpop.f32.mrf.mxu1  ;;  %v674_v40 = vadd.f32 %v673_v35, %v631_v38 }
  0xc8   :  { %v718_v41 = vpop.f32.mrf.mxu0  ;;  %v590_v46 = vadd.f32 %v589_v39, %v547_v42  ;;  %v560_v42 = vadd.f32 %v1490_v15, %v1503_v23 }
  0xc9   :  { %v717_v43 = vadd.f32 %v716_v33, %v674_v40 }
  0xcb   :  { %v750_v45 = vmax.f32 %v717_v43, 0.0 }
  0xcc   :  { %v632_v47 = vpop.f32.mrf.mxu2 }
  0xcd   :  { %v675_v44 = vpop.f32.mrf.mxu3  ;;  %v763_v48 = vpack.c.bf16 %v750_v45, %v750_v45  ;;  %v633_v49 = vadd.f32 %v632_v47, %v590_v46 }
  0xcf   :  { %v592_v50 = vpop.f32.mrf.mxu1  ;;  %777 = vst.msk [vmem:[%s1584_s3] sm:$0xf] %vm776_vm1, %v763_v48  ;;  %v676_v51 = vadd.f32 %v675_v44, %v633_v49 }
  0xd0   :  { %v721_v52 = vpop.f32.mrf.mxu0  ;;  %v593_v57 = vadd.f32 %v592_v50, %v550_v53 }
  0xd1   :  { %v719_v54 = vadd.f32 %v718_v41, %v676_v51 }
  0xd3   :  { %v751_v56 = vmax.f32 %v719_v54, 0.0 }
  0xd4   :  { %v635_v58 = vpop.f32.mrf.mxu2 }
  0xd5   :  { %v678_v55 = vpop.f32.mrf.mxu3  ;;  %v764_v59 = vpack.c.bf16 %v751_v56, %v751_v56  ;;  %v636_v60 = vadd.f32 %v635_v58, %v593_v57 }
  0xd7   :  { %v594_v61 = vpop.f32.mrf.mxu1  ;;  %778 = vst.msk [vmem:[%s1584_s3 + $0x4] sm:$0xf] %vm776_vm1, %v764_v59  ;;  %v679_v62 = vadd.f32 %v678_v55, %v636_v60 }
  0xd8   :  { %v723_v63 = vpop.f32.mrf.mxu0  ;;  %v595_v4 = vadd.f32 %v594_v61, %v552_v0 }
  0xd9   :  { %v722_v1 = vadd.f32 %v721_v52, %v679_v62  ;;  %v562_v52 = vadd.f32 %v1490_v15, %v1508_v28 }
  0xdb   :  { %v752_v3 = vmax.f32 %v722_v1, 0.0 }
  0xdc   :  { %v637_v5 = vpop.f32.mrf.mxu2 }
  0xdd   :  { %v680_v2 = vpop.f32.mrf.mxu3  ;;  %v765_v6 = vpack.c.bf16 %v752_v3, %v752_v3  ;;  %v638_v8 = vadd.f32 %v637_v5, %v595_v4 }
  0xdf   :  { %v597_v9 = vpop.f32.mrf.mxu1  ;;  %779 = vst.msk [vmem:[%s1584_s3 + $0x8] sm:$0xf] %vm776_vm1, %v765_v6  ;;  %v681_v10 = vadd.f32 %v680_v2, %v638_v8 }
  0xe0   :  { %v726_v11 = vpop.f32.mrf.mxu0  ;;  %v598_v19 = vadd.f32 %v597_v9, %v555_v13 }
  0xe1   :  { %v724_v14 = vadd.f32 %v723_v63, %v681_v10 }
  0xe3   :  { %v753_v18 = vmax.f32 %v724_v14, 0.0 }
  0xe4   :  { %v640_v21 = vpop.f32.mrf.mxu2 }
  0xe5   :  { %v683_v7 = vpop.f32.mrf.mxu3  ;;  %v766_v24 = vpack.c.bf16 %v753_v18, %v753_v18  ;;  %v641_v25 = vadd.f32 %v640_v21, %v598_v19 }
  0xe7   :  { %v599_v26 = vpop.f32.mrf.mxu1  ;;  %780 = vst.msk [vmem:[%s1584_s3 + $0xc] sm:$0xf] %vm776_vm1, %v766_v24  ;;  %v684_v29 = vadd.f32 %v683_v7, %v641_v25 }
  0xe8   :  { %v728_v30 = vpop.f32.mrf.mxu0  ;;  %v600_v35 = vadd.f32 %v599_v26, %v557_v32 }
  0xe9   :  { %v727_v33 = vadd.f32 %v726_v11, %v684_v29 }
  0xeb   :  { %v754_v34 = vmax.f32 %v727_v33, 0.0 }
  0xec   :  { %v642_v36 = vpop.f32.mrf.mxu2 }
  0xed   :  { %v685_v12 = vpop.f32.mrf.mxu3  ;;  %v767_v37 = vpack.c.bf16 %v754_v34, %v754_v34  ;;  %v643_v38 = vadd.f32 %v642_v36, %v600_v35 }
  0xef   :  { %v602_v39 = vpop.f32.mrf.mxu1  ;;  %781 = vst.msk [vmem:[%s1584_s3 + $0x10] sm:$0xf] %vm776_vm1, %v767_v37  ;;  %v686_v40 = vadd.f32 %v685_v12, %v643_v38 }
  0xf0   :  { %v731_v41 = vpop.f32.mrf.mxu0  ;;  %v603_v45 = vadd.f32 %v602_v39, %v560_v42 }
  0xf1   :  { %v729_v43 = vadd.f32 %v728_v30, %v686_v40 }
  0xf3   :  { %v755_v44 = vmax.f32 %v729_v43, 0.0 }
  0xf4   :  { %v645_v46 = vpop.f32.mrf.mxu2 }
  0xf5   :  { %v688_v17 = vpop.f32.mrf.mxu3  ;;  %v768_v47 = vpack.c.bf16 %v755_v44, %v755_v44  ;;  %v646_v48 = vadd.f32 %v645_v46, %v603_v45 }
  0xf7   :  { %v604_v49 = vpop.f32.mrf.mxu1  ;;  %782 = vst.msk [vmem:[%s1584_s3 + $0x14] sm:$0xf] %vm776_vm1, %v768_v47  ;;  %v689_v50 = vadd.f32 %v688_v17, %v646_v48 }
  0xf8   :  { %v733_v51 = vpop.f32.mrf.mxu0  ;;  %v605_v55 = vadd.f32 %v604_v49, %v562_v52 }
  0xf9   :  { %v732_v53 = vadd.f32 %v731_v41, %v689_v50 }
  0xfb   :  { %v756_v54 = vmax.f32 %v732_v53, 0.0 }
  0xfc   :  { %v647_v56 = vpop.f32.mrf.mxu2 }
  0xfd   :  { %v690_v23 = vpop.f32.mrf.mxu3  ;;  %v769_v57 = vpack.c.bf16 %v756_v54, %v756_v54  ;;  %v648_v58 = vadd.f32 %v647_v56, %v605_v55 }
  0xff   :  { %v607_v59 = vpop.f32.mrf.mxu1  ;;  %783 = vst.msk [vmem:[%s1584_s3 + $0x18] sm:$0xf] %vm776_vm1, %v769_v57  ;;  %v691_v60 = vadd.f32 %v690_v23, %v648_v58 }
 0x100   :  { %v736_v61 = vpop.f32.mrf.mxu0  ;;  %v608_v15 = vadd.f32 %v607_v59, %v1493_v16 }
 0x101   :  { %v734_v62 = vadd.f32 %v733_v51, %v691_v60 }
 0x103   :  { %v757_v0 = vmax.f32 %v734_v62, 0.0 }
 0x104   :  { %v650_v28 = vpop.f32.mrf.mxu2 }
 0x105   :  { %v693_v63 = vpop.f32.mrf.mxu3  ;;  %v770_v1 = vpack.c.bf16 %v757_v0, %v757_v0  ;;  %v651_v2 = vadd.f32 %v650_v28, %v608_v15 }
 0x107   :  { %v609_v3 = vpop.f32.mrf.mxu1  ;;  %784 = vst.msk [vmem:[%s1584_s3 + $0x1c] sm:$0xf] %vm776_vm1, %v770_v1  ;;  %v694_v4 = vadd.f32 %v693_v63, %v651_v2 }
 0x108   :  { %v738_v5 = vpop.f32.mrf.mxu0  ;;  %v610_v10 = vadd.f32 %v609_v3, %v1501_v22 }
 0x109   :  { %v737_v6 = vadd.f32 %v736_v61, %v694_v4 }
 0x10b   :  { %v758_v9 = vmax.f32 %v737_v6, 0.0 }
 0x10c   :  { %v652_v11 = vpop.f32.mrf.mxu2 }
 0x10d   :  { %v695_v8 = vpop.f32.mrf.mxu3  ;;  %v771_v13 = vpack.c.bf16 %v758_v9, %v758_v9  ;;  %v653_v14 = vadd.f32 %v652_v11, %v610_v10 }
 0x10f   :  { %v612_v16 = vpop.f32.mrf.mxu1  ;;  %785 = vst.msk [vmem:[%s1584_s3 + $0x20] sm:$0xf] %vm776_vm1, %v771_v13  ;;  %v696_v7 = vadd.f32 %v695_v8, %v653_v14 }
 0x110   :  { %v741_v18 = vpop.f32.mrf.mxu0  ;;  %v613_v25 = vadd.f32 %v612_v16, %v1506_v27 }
 0x111   :  { %v739_v19 = vadd.f32 %v738_v5, %v696_v7 }
 0x113   :  { %v759_v24 = vmax.f32 %v739_v19, 0.0 }
 0x114   :  { %v655_v26 = vpop.f32.mrf.mxu2 }
 0x115   :  { %v698_v21 = vpop.f32.mrf.mxu3  ;;  %v772_v29 = vpack.c.bf16 %v759_v24, %v759_v24  ;;  %v656_v30 = vadd.f32 %v655_v26, %v613_v25 }
 0x117   :  { %v614_v22 = vpop.f32.mrf.mxu1  ;;  %786 = vst.msk [vmem:[%s1584_s3 + $0x24] sm:$0xf] %vm776_vm1, %v772_v29  ;;  %v699_v32 = vadd.f32 %v698_v21, %v656_v30 }
 0x118   :  { %v743_v33 = vpop.f32.mrf.mxu0  ;;  %v615_v36 = vadd.f32 %v614_v22, %v1511_v31 }
 0x119   :  { %v742_v12 = vadd.f32 %v741_v18, %v699_v32 }
 0x11b   :  { %v760_v35 = vmax.f32 %v742_v12, 0.0 }
 0x11c   :  { %v657_v37 = vpop.f32.mrf.mxu2 }
 0x11d   :  { %v700_v34 = vpop.f32.mrf.mxu3  ;;  %v773_v38 = vpack.c.bf16 %v760_v35, %v760_v35  ;;  %v658_v39 = vadd.f32 %v657_v37, %v615_v36 }
 0x11f   :  { %v617_v27 = vpop.f32.mrf.mxu1  ;;  %787 = vst.msk [vmem:[%s1584_s3 + $0x28] sm:$0xf] %vm776_vm1, %v773_v38  ;;  %v701_v40 = vadd.f32 %v700_v34, %v658_v39 }
 0x120   :  { %v746_v41 = vpop.f32.mrf.mxu0  ;;  %v618_v44 = vadd.f32 %v617_v27, %v1498_v20 }
 0x121   :  { %v744_v42 = vadd.f32 %v743_v33, %v701_v40 }
 0x123   :  { %v761_v17 = vmax.f32 %v744_v42, 0.0 }
 0x124   :  { %v660_v45 = vpop.f32.mrf.mxu2 }
 0x125   :  { %v703_v43 = vpop.f32.mrf.mxu3  ;;  %v774_v46 = vpack.c.bf16 %v761_v17, %v761_v17  ;;  %v661_v47 = vadd.f32 %v660_v45, %v618_v44 }
 0x127   :  { %v619_v31 = vpop.f32.mrf.mxu1  ;;  %788 = vst.msk [vmem:[%s1584_s3 + $0x2c] sm:$0xf] %vm776_vm1, %v774_v46  ;;  %v704_v48 = vadd.f32 %v703_v43, %v661_v47 }
 0x128   :  { %v748_v49 = vpop.f32.mrf.mxu0 }
 0x129   :  { %v747_v50 = vadd.f32 %v746_v41, %v704_v48 }
 0x12b   :  { %v762_v52 = vmax.f32 %v747_v50, 0.0 }
 0x12c   :  { %v662_v53 = vpop.f32.mrf.mxu2 }
 0x12d   :  { %v705_v51 = vpop.f32.mrf.mxu3  ;;  %v775_v23 = vpack.c.bf16 %v762_v52, %v762_v52 }
 0x12f   :  { %790 = vst.msk [vmem:[%s1584_s3 + $0x30] sm:$0x1] %vm789_vm2, %v775_v23 }

// kernel: acgd_forward.7
= control target key start
LH: loop header
LB: loop body
LE: loop exit
PB: predicated region body
PF: predicated region fallthrough
CT: control target
= control target key end

     0   :  { %s8648_s0 = inlined_call_operand.vmem [shape: bf16[2,1568], index: 0, kind: input, shape index: {}]   ;;  %s8649_s1 = inlined_call_operand.vmem [shape: bf16[2,8], index: 1, kind: input, shape index: {}]   ;;  %s8650_s2 = inlined_call_operand.vmem [shape: bf16[1568,512], index: 2, kind: input, shape index: {}]   ;;  %s8651_s3 = inlined_call_operand.vmem [shape: f32[1,512], index: 3, kind: input, shape index: {}]   ;;  %s8652_s4 = inlined_call_operand.vmem [shape: bf16[8,64], index: 4, kind: input, shape index: {}]   ;;  %s8653_s5 = inlined_call_operand.vmem [shape: f32[1,64], index: 5, kind: input, shape index: {}]   ;;  %s8654_s6 = inlined_call_operand.vmem [shape: bf16[64,64], index: 6, kind: input, shape index: {}]   ;;  %s8655_s7 = inlined_call_operand.vmem [shape: f32[1,64], index: 7, kind: input, shape index: {}]   ;;  %s8656_s8 = inlined_call_operand.vmem [shape: bf16[512,128], index: 8, kind: input, shape index: {}]   ;;  %s8657_s9 = inlined_call_operand.vmem [shape: bf16[64,128], index: 9, kind: input, shape index: {}]   ;;  %s8658_s10 = inlined_call_operand.vmem [shape: f32[1,128], index: 10, kind: input, shape index: {}]   ;;  %s8659_s11 = inlined_call_operand.vmem [shape: bf16[128,4], index: 11, kind: input, shape index: {}]   ;;  %s8660_s12 = inlined_call_operand.vmem [shape: f32[1,4], index: 12, kind: input, shape index: {}]   ;;  %s8661_s13 = inlined_call_operand.hbm [shape: f32[2,4], index: 13, kind: output, shape index: {}]  }
   0x1   :  { %v3786_v0 = vld [vmem:[%s8650_s2 + $0xe0] sm:$0xf]  ;;  %v5469_v1 = vld [vmem:[%s8650_s2 + $0xec] sm:$0xf0] }
   0x2   :  { %v3914_v2 = vld [vmem:[%s8650_s2 + $0x1e0] sm:$0xf]  ;;  %v3787_v3 = vor.u32 %v5469_v1, %v3786_v0  ;;  %v5501_v4 = vld [vmem:[%s8650_s2 + $0x1ec] sm:$0xf0] }
   0x3   :  { %v4042_v5 = vld [vmem:[%s8650_s2 + $0x2e0] sm:$0xf]  ;;  %v5533_v6 = vld [vmem:[%s8650_s2 + $0x2ec] sm:$0xf0]  ;;  %v3915_v7 = vor.u32 %v5501_v4, %v3914_v2 }
   0x4   :  { %v4043_v8 = vor.u32 %v5533_v6, %v4042_v5  ;;  %v4170_v9 = vld [vmem:[%s8650_s2 + $0x3e0] sm:$0xf]  ;;  %v5565_v10 = vld [vmem:[%s8650_s2 + $0x3ec] sm:$0xf0]  ;;  %2442 = vmatpush.bf16.msra.mxu0 %v3787_v3 }
   0x5   :  { %v3770_v11 = vld [vmem:[%s8650_s2 + $0xc0] sm:$0xf]  ;;  %v4171_v12 = vor.u32 %v5565_v10, %v4170_v9  ;;  %v5465_v13 = vld [vmem:[%s8650_s2 + $0xcc] sm:$0xf0]  ;;  %2455 = vmatpush.bf16.msra.mxu1 %v3915_v7 }
   0x6   :  { %v3898_v14 = vld [vmem:[%s8650_s2 + $0x1c0] sm:$0xf]  ;;  %v5497_v15 = vld [vmem:[%s8650_s2 + $0x1cc] sm:$0xf0]  ;;  %2468 = vmatpush.bf16.msra.mxu2 %v4043_v8  ;;  %v3771_v16 = vor.u32 %v5465_v13, %v3770_v11 }
   0x7   :  { %v3899_v17 = vor.u32 %v5497_v15, %v3898_v14  ;;  %v4026_v18 = vld [vmem:[%s8650_s2 + $0x2c0] sm:$0xf]  ;;  %v5529_v19 = vld [vmem:[%s8650_s2 + $0x2cc] sm:$0xf0]  ;;  %2481 = vmatpush.bf16.msra.mxu3 %v4171_v12 }
   0x8   :  { %v4154_v20 = vld [vmem:[%s8650_s2 + $0x3c0] sm:$0xf]  ;;  %v4027_v21 = vor.u32 %v5529_v19, %v4026_v18  ;;  %v5561_v22 = vld [vmem:[%s8650_s2 + $0x3cc] sm:$0xf0]  ;;  %2443 = vmatpush.bf16.msra.mxu0 %v3771_v16 }
   0x9   :  { %v3754_v23 = vld [vmem:[%s8650_s2 + $0xa0] sm:$0xf]  ;;  %v5461_v24 = vld [vmem:[%s8650_s2 + $0xac] sm:$0xf0]  ;;  %v4155_v25 = vor.u32 %v5561_v22, %v4154_v20  ;;  %2456 = vmatpush.bf16.msra.mxu1 %v3899_v17 }
   0xa   :  { %v3882_v26 = vld [vmem:[%s8650_s2 + $0x1a0] sm:$0xf]  ;;  %v5493_v27 = vld [vmem:[%s8650_s2 + $0x1ac] sm:$0xf0]  ;;  %v3755_v29 = vor.u32 %v5461_v24, %v3754_v23  ;;  %2469 = vmatpush.bf16.msra.mxu2 %v4027_v21 }
   0xb   :  { %v4010_v28 = vld [vmem:[%s8650_s2 + $0x2a0] sm:$0xf]  ;;  %v5525_v30 = vld [vmem:[%s8650_s2 + $0x2ac] sm:$0xf0]  ;;  %v3883_v33 = vor.u32 %v5493_v27, %v3882_v26  ;;  %2482 = vmatpush.bf16.msra.mxu3 %v4155_v25 }
   0xc   :  { %v4138_v31 = vld [vmem:[%s8650_s2 + $0x3a0] sm:$0xf]  ;;  %v5557_v32 = vld [vmem:[%s8650_s2 + $0x3ac] sm:$0xf0]  ;;  %v4011_v34 = vor.u32 %v5525_v30, %v4010_v28  ;;  %2444 = vmatpush.bf16.msra.mxu0 %v3755_v29 }
   0xd   :  { %v3738_v35 = vld [vmem:[%s8650_s2 + $0x80] sm:$0xf]  ;;  %v5457_v36 = vld [vmem:[%s8650_s2 + $0x8c] sm:$0xf0]  ;;  %v4139_v38 = vor.u32 %v5557_v32, %v4138_v31  ;;  %2457 = vmatpush.bf16.msra.mxu1 %v3883_v33 }
   0xe   :  { %v3866_v37 = vld [vmem:[%s8650_s2 + $0x180] sm:$0xf]  ;;  %v5489_v39 = vld [vmem:[%s8650_s2 + $0x18c] sm:$0xf0]  ;;  %v3739_v44 = vor.u32 %v5457_v36, %v3738_v35  ;;  %2470 = vmatpush.bf16.msra.mxu2 %v4011_v34 }
   0xf   :  { %v3994_v40 = vld [vmem:[%s8650_s2 + $0x280] sm:$0xf]  ;;  %v5521_v41 = vld [vmem:[%s8650_s2 + $0x28c] sm:$0xf0]  ;;  %v3867_v45 = vor.u32 %v5489_v39, %v3866_v37  ;;  %2483 = vmatpush.bf16.msra.mxu3 %v4139_v38 }
  0x10   :  { %v4122_v42 = vld [vmem:[%s8650_s2 + $0x380] sm:$0xf]  ;;  %v5553_v43 = vld [vmem:[%s8650_s2 + $0x38c] sm:$0xf0]  ;;  %v3995_v46 = vor.u32 %v5521_v41, %v3994_v40  ;;  %2445 = vmatpush.bf16.msra.mxu0 %v3739_v44 }
  0x11   :  { %v3722_v47 = vld [vmem:[%s8650_s2 + $0x60] sm:$0xf]  ;;  %v5453_v48 = vld [vmem:[%s8650_s2 + $0x6c] sm:$0xf0]  ;;  %v4123_v50 = vor.u32 %v5553_v43, %v4122_v42  ;;  %2458 = vmatpush.bf16.msra.mxu1 %v3867_v45 }
  0x12   :  { %v3850_v49 = vld [vmem:[%s8650_s2 + $0x160] sm:$0xf]  ;;  %v5485_v51 = vld [vmem:[%s8650_s2 + $0x16c] sm:$0xf0]  ;;  %v3723_v56 = vor.u32 %v5453_v48, %v3722_v47  ;;  %2471 = vmatpush.bf16.msra.mxu2 %v3995_v46 }
  0x13   :  { %v3978_v52 = vld [vmem:[%s8650_s2 + $0x260] sm:$0xf]  ;;  %v5517_v53 = vld [vmem:[%s8650_s2 + $0x26c] sm:$0xf0]  ;;  %v3851_v57 = vor.u32 %v5485_v51, %v3850_v49  ;;  %2484 = vmatpush.bf16.msra.mxu3 %v4123_v50 }
  0x14   :  { %v4106_v54 = vld [vmem:[%s8650_s2 + $0x360] sm:$0xf]  ;;  %v5549_v55 = vld [vmem:[%s8650_s2 + $0x36c] sm:$0xf0]  ;;  %v3979_v58 = vor.u32 %v5517_v53, %v3978_v52  ;;  %2446 = vmatpush.bf16.msra.mxu0 %v3723_v56 }
  0x15   :  { %v3706_v59 = vld [vmem:[%s8650_s2 + $0x40] sm:$0xf]  ;;  %v5449_v60 = vld [vmem:[%s8650_s2 + $0x4c] sm:$0xf0]  ;;  %v4107_v62 = vor.u32 %v5549_v55, %v4106_v54  ;;  %2459 = vmatpush.bf16.msra.mxu1 %v3851_v57 }
  0x16   :  { %v3834_v61 = vld [vmem:[%s8650_s2 + $0x140] sm:$0xf]  ;;  %v5481_v63 = vld [vmem:[%s8650_s2 + $0x14c] sm:$0xf0]  ;;  %v3707_v4 = vor.u32 %v5449_v60, %v3706_v59  ;;  %2472 = vmatpush.bf16.msra.mxu2 %v3979_v58 }
  0x17   :  { %v3962_v0 = vld [vmem:[%s8650_s2 + $0x240] sm:$0xf]  ;;  %v5513_v1 = vld [vmem:[%s8650_s2 + $0x24c] sm:$0xf0]  ;;  %v3835_v5 = vor.u32 %v5481_v63, %v3834_v61  ;;  %2485 = vmatpush.bf16.msra.mxu3 %v4107_v62 }
  0x18   :  { %v4090_v2 = vld [vmem:[%s8650_s2 + $0x340] sm:$0xf]  ;;  %v5545_v3 = vld [vmem:[%s8650_s2 + $0x34c] sm:$0xf0]  ;;  %v3963_v6 = vor.u32 %v5513_v1, %v3962_v0  ;;  %2447 = vmatpush.bf16.msra.mxu0 %v3707_v4 }
  0x19   :  { %v3690_v7 = vld [vmem:[%s8650_s2 + $0x20] sm:$0xf]  ;;  %v5445_v8 = vld [vmem:[%s8650_s2 + $0x2c] sm:$0xf0]  ;;  %v4091_v10 = vor.u32 %v5545_v3, %v4090_v2  ;;  %2460 = vmatpush.bf16.msra.mxu1 %v3835_v5 }
  0x1a   :  { %v3818_v9 = vld [vmem:[%s8650_s2 + $0x120] sm:$0xf]  ;;  %v5477_v11 = vld [vmem:[%s8650_s2 + $0x12c] sm:$0xf0]  ;;  %v3691_v16 = vor.u32 %v5445_v8, %v3690_v7  ;;  %2473 = vmatpush.bf16.msra.mxu2 %v3963_v6 }
  0x1b   :  { %v3946_v12 = vld [vmem:[%s8650_s2 + $0x220] sm:$0xf]  ;;  %v5509_v13 = vld [vmem:[%s8650_s2 + $0x22c] sm:$0xf0]  ;;  %v3819_v19 = vor.u32 %v5477_v11, %v3818_v9  ;;  %2486 = vmatpush.bf16.msra.mxu3 %v4091_v10 }
  0x1c   :  { %v4074_v14 = vld [vmem:[%s8650_s2 + $0x320] sm:$0xf]  ;;  %v5541_v15 = vld [vmem:[%s8650_s2 + $0x32c] sm:$0xf0]  ;;  %v3947_v20 = vor.u32 %v5509_v13, %v3946_v12  ;;  %2448 = vmatpush.bf16.msra.mxu0 %v3691_v16 }
  0x1d   :  { %v3674_v17 = vld [vmem:[%s8650_s2] sm:$0xf]  ;;  %v5441_v18 = vld [vmem:[%s8650_s2 + $0xc] sm:$0xf0]  ;;  %v4075_v24 = vor.u32 %v5541_v15, %v4074_v14  ;;  %2461 = vmatpush.bf16.msra.mxu1 %v3819_v19 }
  0x1e   :  { %v3802_v21 = vld [vmem:[%s8650_s2 + $0x100] sm:$0xf]  ;;  %v5473_v22 = vld [vmem:[%s8650_s2 + $0x10c] sm:$0xf0]  ;;  %v3675_v31 = vor.u32 %v5441_v18, %v3674_v17  ;;  %2474 = vmatpush.bf16.msra.mxu2 %v3947_v20 }
  0x1f   :  { %v3930_v23 = vld [vmem:[%s8650_s2 + $0x200] sm:$0xf]  ;;  %v5505_v25 = vld [vmem:[%s8650_s2 + $0x20c] sm:$0xf0]  ;;  %v3803_v35 = vor.u32 %v5473_v22, %v3802_v21  ;;  %2487 = vmatpush.bf16.msra.mxu3 %v4075_v24 }
  0x20   :  { %v4058_v26 = vld [vmem:[%s8650_s2 + $0x300] sm:$0xf]  ;;  %v5537_v27 = vld [vmem:[%s8650_s2 + $0x30c] sm:$0xf0]  ;;  %v3931_v36 = vor.u32 %v5505_v25, %v3930_v23  ;;  %2449 = vmatpush.bf16.msra.mxu0 %v3675_v31 }
  0x21   :  { %v4298_v28 = vld [vmem:[%s8650_s2 + $0x4e0] sm:$0xf]  ;;  %v5597_v29 = vld [vmem:[%s8650_s2 + $0x4ec] sm:$0xf0]  ;;  %v4059_v39 = vor.u32 %v5537_v27, %v4058_v26  ;;  %2462 = vmatpush.bf16.msra.mxu1 %v3803_v35 }
  0x22   :  { %v4426_v30 = vld [vmem:[%s8650_s2 + $0x5e0] sm:$0xf]  ;;  %v5629_v32 = vld [vmem:[%s8650_s2 + $0x5ec] sm:$0xf0]  ;;  %v4299_v40 = vor.u32 %v5597_v29, %v4298_v28  ;;  %2475 = vmatpush.bf16.msra.mxu2 %v3931_v36 }
  0x23   :  { %v4554_v33 = vld [vmem:[%s8650_s2 + $0x6e0] sm:$0xf]  ;;  %v5661_v34 = vld [vmem:[%s8650_s2 + $0x6ec] sm:$0xf0]  ;;  %v4427_v41 = vor.u32 %v5629_v32, %v4426_v30  ;;  %2488 = vmatpush.bf16.msra.mxu3 %v4059_v39 }
  0x24   :  { %v4682_v37 = vld [vmem:[%s8650_s2 + $0x7e0] sm:$0xf]  ;;  %v5693_v38 = vld [vmem:[%s8650_s2 + $0x7ec] sm:$0xf0]  ;;  %v4555_v42 = vor.u32 %v5661_v34, %v4554_v33  ;;  %2494 = vmatpush.bf16.msrb.mxu0 %v4299_v40 }
  0x25   :  { %v4282_v43 = vld [vmem:[%s8650_s2 + $0x4c0] sm:$0xf]  ;;  %v5593_v44 = vld [vmem:[%s8650_s2 + $0x4cc] sm:$0xf0]  ;;  %v4683_v46 = vor.u32 %v5693_v38, %v4682_v37  ;;  %2507 = vmatpush.bf16.msrb.mxu1 %v4427_v41 }
  0x26   :  { %v4410_v45 = vld [vmem:[%s8650_s2 + $0x5c0] sm:$0xf]  ;;  %v5625_v47 = vld [vmem:[%s8650_s2 + $0x5cc] sm:$0xf0]  ;;  %v4283_v52 = vor.u32 %v5593_v44, %v4282_v43  ;;  %2520 = vmatpush.bf16.msrb.mxu2 %v4555_v42 }
  0x27   :  { %v4538_v48 = vld [vmem:[%s8650_s2 + $0x6c0] sm:$0xf]  ;;  %v5657_v49 = vld [vmem:[%s8650_s2 + $0x6cc] sm:$0xf0]  ;;  %v4411_v55 = vor.u32 %v5625_v47, %v4410_v45  ;;  %2533 = vmatpush.bf16.msrb.mxu3 %v4683_v46 }
  0x28   :  { %v4666_v50 = vld [vmem:[%s8650_s2 + $0x7c0] sm:$0xf]  ;;  %v5689_v51 = vld [vmem:[%s8650_s2 + $0x7cc] sm:$0xf0]  ;;  %v4539_v56 = vor.u32 %v5657_v49, %v4538_v48  ;;  %2495 = vmatpush.bf16.msrb.mxu0 %v4283_v52 }
  0x29   :  { %v4266_v53 = vld [vmem:[%s8650_s2 + $0x4a0] sm:$0xf]  ;;  %v5589_v54 = vld [vmem:[%s8650_s2 + $0x4ac] sm:$0xf0]  ;;  %v4667_v60 = vor.u32 %v5689_v51, %v4666_v50  ;;  %2508 = vmatpush.bf16.msrb.mxu1 %v4411_v55 }
  0x2a   :  { %v4394_v57 = vld [vmem:[%s8650_s2 + $0x5a0] sm:$0xf]  ;;  %v5621_v58 = vld [vmem:[%s8650_s2 + $0x5ac] sm:$0xf0]  ;;  %v4267_v1 = vor.u32 %v5589_v54, %v4266_v53  ;;  %2521 = vmatpush.bf16.msrb.mxu2 %v4539_v56 }
  0x2b   :  { %v46_v59 = vld [vmem:[%s8648_s0] sm:$0xff]  ;;  %v5653_v62 = vld [vmem:[%s8650_s2 + $0x6ac] sm:$0xf0]  ;;  %v4395_v2 = vor.u32 %v5621_v58, %v4394_v57  ;;  %2534 = vmatpush.bf16.msrb.mxu3 %v4667_v60 }
  0x2c   :  { %v4522_v61 = vld [vmem:[%s8650_s2 + $0x6a0] sm:$0xf]  ;;  %451 = vst [vmem:[#allocation1] ss:$9 sm:$0xff] %v46_v59  ;;  %v5685_v0 = vld [vmem:[%s8650_s2 + $0x7ac] sm:$0xf0]  ;;  %2496 = vmatpush.bf16.msrb.mxu0 %v4267_v1 }
  0x2d   :  { %v4650_v63 = vld [vmem:[%s8650_s2 + $0x7a0] sm:$0xf]  ;;  %v4523_v3 = vor.u32 %v5653_v62, %v4522_v61  ;;  %v5585_v5 = vld [vmem:[%s8650_s2 + $0x48c] sm:$0xf0]  ;;  %2509 = vmatpush.bf16.msrb.mxu1 %v4395_v2  ;;  %v47_v61 = vld [vmem:[%s8648_s0 + $0x8] sm:$0x1f] }
  0x2e   :  { %v4250_v4 = vld [vmem:[%s8650_s2 + $0x480] sm:$0xf]  ;;  %v4651_v7 = vor.u32 %v5685_v0, %v4650_v63  ;;  %v5617_v8 = vld [vmem:[%s8650_s2 + $0x58c] sm:$0xf0] }
  0x2f   :  { %v4378_v6 = vld [vmem:[%s8650_s2 + $0x580] sm:$0xf]  ;;  %v5649_v10 = vld [vmem:[%s8650_s2 + $0x68c] sm:$0xf0]  ;;  %v4251_v14 = vor.u32 %v5585_v5, %v4250_v4  ;;  %2522 = vmatpush.bf16.msrb.mxu2 %v4523_v3 }
  0x30   :  { %v4506_v9 = vld [vmem:[%s8650_s2 + $0x680] sm:$0xf]  ;;  %v5681_v12 = vld [vmem:[%s8650_s2 + $0x78c] sm:$0xf0]  ;;  %v4379_v18 = vor.u32 %v5617_v8, %v4378_v6  ;;  %2535 = vmatpush.bf16.msrb.mxu3 %v4651_v7 }
  0x31   :  { %v4634_v11 = vld [vmem:[%s8650_s2 + $0x780] sm:$0xf]  ;;  %v5581_v15 = vld [vmem:[%s8650_s2 + $0x46c] sm:$0xf0]  ;;  %v4507_v19 = vor.u32 %v5649_v10, %v4506_v9  ;;  %2497 = vmatpush.bf16.msrb.mxu0 %v4251_v14 }
  0x32   :  { %v4234_v13 = vld [vmem:[%s8650_s2 + $0x460] sm:$0xf]  ;;  %v5613_v17 = vld [vmem:[%s8650_s2 + $0x56c] sm:$0xf0]  ;;  %v4635_v23 = vor.u32 %v5681_v12, %v4634_v11  ;;  %2510 = vmatpush.bf16.msrb.mxu1 %v4379_v18 }
  0x33   :  { %v4362_v16 = vld [vmem:[%s8650_s2 + $0x560] sm:$0xf]  ;;  %v6296_v20 = vld [vmem:[#allocation1 + $0x12] sm:$0xff]  ;;  %v6309_v26 = vld [vmem:[#allocation1 + $0x9] sm:$0xff]  ;;  %v4235_v29 = vor.u32 %v5581_v15, %v4234_v13  ;;  %2523 = vmatpush.bf16.msrb.mxu2 %v4507_v19 }
  0x34   :  { %v6298_v21 = vld [vmem:[#allocation1] sm:$0xff]  ;;  %v5645_v25 = vld [vmem:[%s8650_s2 + $0x66c] sm:$0xf0]  ;;  %2476 = vmatmul.bf16.vlgmr.msra.gmra.mxu2 %v6296_v20  ;;  %2463 = vmatmul.bf16.vlgmr.msra.gmra.mxu1 %v6309_v26  ;;  %v4363_v30 = vor.u32 %v5613_v17, %v4362_v16  ;;  %v6386_v60 = vld [vmem:[#allocation1 + $0x36] sm:$0xff] }
  0x35   :  { %v6300_v22 = vld [vmem:[#allocation1 + $0x1b] sm:$0xff]  ;;  %v5677_v28 = vld [vmem:[%s8650_s2 + $0x76c] sm:$0xf0]  ;;  %2450 = vmatmul.bf16.vlgmr.msra.gmra.mxu0 %v6298_v21  ;;  %2536 = vmatpush.bf16.msrb.mxu3 %v4635_v23  ;;  %v6391_v0 = vld [vmem:[#allocation1 + $0x24] sm:$0xff] }
  0x36   :  { %v4490_v24 = vld [vmem:[%s8650_s2 + $0x660] sm:$0xf]  ;;  %2489 = vmatmul.bf16.vlgmr.msra.gmra.mxu3 %v6300_v22  ;;  %v5577_v33 = vld [vmem:[%s8650_s2 + $0x44c] sm:$0xf0]  ;;  %2498 = vmatpush.bf16.msrb.mxu0 %v4235_v29 }
  0x37   :  { %v4618_v27 = vld [vmem:[%s8650_s2 + $0x760] sm:$0xf]  ;;  %v4491_v31 = vor.u32 %v5645_v25, %v4490_v24  ;;  %v5609_v36 = vld [vmem:[%s8650_s2 + $0x54c] sm:$0xf0]  ;;  %2511 = vmatpush.bf16.msrb.mxu1 %v4363_v30 }
  0x38   :  { %v4218_v32 = vld [vmem:[%s8650_s2 + $0x440] sm:$0xf]  ;;  %v4619_v35 = vor.u32 %v5677_v28, %v4618_v27  ;;  %v5641_v38 = vld [vmem:[%s8650_s2 + $0x64c] sm:$0xf0] }
  0x39   :  { %v4346_v34 = vld [vmem:[%s8650_s2 + $0x540] sm:$0xf]  ;;  %v5673_v40 = vld [vmem:[%s8650_s2 + $0x74c] sm:$0xf0]  ;;  %v4219_v41 = vor.u32 %v5577_v33, %v4218_v32  ;;  %2524 = vmatpush.bf16.msrb.mxu2 %v4491_v31 }
  0x3a   :  { %v4474_v37 = vld [vmem:[%s8650_s2 + $0x640] sm:$0xf]  ;;  %v4347_v43 = vor.u32 %v5609_v36, %v4346_v34  ;;  %v5573_v45 = vld [vmem:[%s8650_s2 + $0x42c] sm:$0xf0]  ;;  %2537 = vmatpush.bf16.msrb.mxu3 %v4619_v35 }
  0x3b   :  { %v4602_v39 = vld [vmem:[%s8650_s2 + $0x740] sm:$0xf]  ;;  %v4475_v44 = vor.u32 %v5641_v38, %v4474_v37  ;;  %v5605_v47 = vld [vmem:[%s8650_s2 + $0x52c] sm:$0xf0]  ;;  %2499 = vmatpush.bf16.msrb.mxu0 %v4219_v41 }
  0x3c   :  { %v4202_v42 = vld [vmem:[%s8650_s2 + $0x420] sm:$0xf]  ;;  %v4603_v48 = vor.u32 %v5673_v40, %v4602_v39  ;;  %v5637_v50 = vld [vmem:[%s8650_s2 + $0x62c] sm:$0xf0]  ;;  %2512 = vmatpush.bf16.msrb.mxu1 %v4347_v43 }
  0x3d   :  { %v4330_v46 = vld [vmem:[%s8650_s2 + $0x520] sm:$0xf]  ;;  %v5669_v52 = vld [vmem:[%s8650_s2 + $0x72c] sm:$0xf0]  ;;  %v4203_v55 = vor.u32 %v5573_v45, %v4202_v42  ;;  %2525 = vmatpush.bf16.msrb.mxu2 %v4475_v44 }
  0x3e   :  { %v4458_v49 = vld [vmem:[%s8650_s2 + $0x620] sm:$0xf]  ;;  %v5569_v54 = vld [vmem:[%s8650_s2 + $0x40c] sm:$0xf0]  ;;  %v4331_v62 = vor.u32 %v5605_v47, %v4330_v46  ;;  %2538 = vmatpush.bf16.msrb.mxu3 %v4603_v48 }
  0x3f   :  { %v4586_v51 = vld [vmem:[%s8650_s2 + $0x720] sm:$0xf]  ;;  %v5601_v57 = vld [vmem:[%s8650_s2 + $0x50c] sm:$0xf0]  ;;  %v4459_v63 = vor.u32 %v5637_v50, %v4458_v49  ;;  %2500 = vmatpush.bf16.msrb.mxu0 %v4203_v55 }
  0x40   :  { %v4186_v53 = vld [vmem:[%s8650_s2 + $0x400] sm:$0xf]  ;;  %v5633_v59 = vld [vmem:[%s8650_s2 + $0x60c] sm:$0xf0]  ;;  %v4587_v3 = vor.u32 %v5669_v52, %v4586_v51  ;;  %2513 = vmatpush.bf16.msrb.mxu1 %v4331_v62 }
  0x41   :  { %v4314_v56 = vld [vmem:[%s8650_s2 + $0x500] sm:$0xf]  ;;  %v6395_v2 = vld [vmem:[#allocation1 + $0x2d] sm:$0xff]  ;;  %v4187_v9 = vor.u32 %v5569_v54, %v4186_v53  ;;  %2526 = vmatpush.bf16.msrb.mxu2 %v4459_v63 }
  0x42   :  { %v4442_v58 = vld [vmem:[%s8650_s2 + $0x600] sm:$0xf]  ;;  %v5665_v5 = vld [vmem:[%s8650_s2 + $0x70c] sm:$0xf0]  ;;  %v4315_v13 = vor.u32 %v5601_v57, %v4314_v56  ;;  %2539 = vmatpush.bf16.msrb.mxu3 %v4587_v3 }
  0x43   :  { %v6393_v1 = vld [vmem:[#allocation1 + $0x3f] sm:$0xff]  ;;  %v5725_v7 = vld [vmem:[%s8650_s2 + $0x8ec] sm:$0xf0]  ;;  %v4443_v14 = vor.u32 %v5633_v59, %v4442_v58  ;;  %2501 = vmatpush.bf16.msrb.mxu0 %v4187_v9 }
  0x44   :  { %v4570_v4 = vld [vmem:[%s8650_s2 + $0x700] sm:$0xf]  ;;  %461 = vst [vmem:[#allocation1] ss:$9 sm:$0xff] %v47_v61  ;;  %v5757_v10 = vld [vmem:[%s8650_s2 + $0x9ec] sm:$0xf0]  ;;  %2514 = vmatpush.bf16.msrb.mxu1 %v4315_v13 }
  0x45   :  { %v4810_v6 = vld [vmem:[%s8650_s2 + $0x8e0] sm:$0xf]  ;;  %v5789_v12 = vld [vmem:[%s8650_s2 + $0xaec] sm:$0xf0]  ;;  %v4571_v17 = vor.u32 %v5665_v5, %v4570_v4  ;;  %2527 = vmatpush.bf16.msrb.mxu2 %v4443_v14 }
  0x46   :  { %v4938_v8 = vld [vmem:[%s8650_s2 + $0x9e0] sm:$0xf]  ;;  %v5821_v16 = vld [vmem:[%s8650_s2 + $0xbec] sm:$0xf0]  ;;  %v4811_v18 = vor.u32 %v5725_v7, %v4810_v6  ;;  %2502 = vmatmul.bf16.vlgmr.msrb.gmra.mxu0 %v6391_v0 }
  0x47   :  { %v5066_v11 = vld [vmem:[%s8650_s2 + $0xae0] sm:$0xf]  ;;  %v4939_v19 = vor.u32 %v5757_v10, %v4938_v8  ;;  %v5721_v25 = vld [vmem:[%s8650_s2 + $0x8cc] sm:$0xf0]  ;;  %2540 = vmatpush.bf16.msrb.mxu3 %v4571_v17  ;;  %2515 = vmatmul.bf16.vlgmr.msrb.gmra.mxu1 %v6395_v2 }
  0x48   :  { %v5194_v15 = vld [vmem:[%s8650_s2 + $0xbe0] sm:$0xf]  ;;  %v5067_v23 = vor.u32 %v5789_v12, %v5066_v11  ;;  %v5753_v29 = vld [vmem:[%s8650_s2 + $0x9cc] sm:$0xf0]  ;;  %2546 = vmatpush.bf16.msra.mxu0 %v4811_v18  ;;  %2528 = vmatmul.bf16.vlgmr.msrb.gmra.mxu2 %v6386_v60 }
  0x49   :  { %v4794_v24 = vld [vmem:[%s8650_s2 + $0x8c0] sm:$0xf]  ;;  %v5195_v28 = vor.u32 %v5821_v16, %v5194_v15  ;;  %v5785_v31 = vld [vmem:[%s8650_s2 + $0xacc] sm:$0xf0]  ;;  %2559 = vmatpush.bf16.msra.mxu1 %v4939_v19 }
  0x4a   :  { %v4922_v27 = vld [vmem:[%s8650_s2 + $0x9c0] sm:$0xf]  ;;  %v5817_v33 = vld [vmem:[%s8650_s2 + $0xbcc] sm:$0xf0]  ;;  %v4795_v34 = vor.u32 %v5721_v25, %v4794_v24  ;;  %2572 = vmatpush.bf16.msra.mxu2 %v5067_v23  ;;  %2541 = vmatmul.bf16.vlgmr.msrb.gmra.mxu3 %v6393_v1 }
  0x4b   :  { %v5050_v30 = vld [vmem:[%s8650_s2 + $0xac0] sm:$0xf]  ;;  %v4923_v35 = vor.u32 %v5753_v29, %v4922_v27  ;;  %v5717_v38 = vld [vmem:[%s8650_s2 + $0x8ac] sm:$0xf0]  ;;  %2585 = vmatpush.bf16.msra.mxu3 %v5195_v28 }
  0x4c   :  { %v5178_v32 = vld [vmem:[%s8650_s2 + $0xbc0] sm:$0xf]  ;;  %v5051_v36 = vor.u32 %v5785_v31, %v5050_v30  ;;  %v5749_v41 = vld [vmem:[%s8650_s2 + $0x9ac] sm:$0xf0]  ;;  %2547 = vmatpush.bf16.msra.mxu0 %v4795_v34 }
  0x4d   :  { %v4778_v37 = vld [vmem:[%s8650_s2 + $0x8a0] sm:$0xf]  ;;  %v5179_v40 = vor.u32 %v5817_v33, %v5178_v32  ;;  %v5781_v43 = vld [vmem:[%s8650_s2 + $0xaac] sm:$0xf0]  ;;  %2560 = vmatpush.bf16.msra.mxu1 %v4923_v35 }
  0x4e   :  { %v4906_v39 = vld [vmem:[%s8650_s2 + $0x9a0] sm:$0xf]  ;;  %v5813_v45 = vld [vmem:[%s8650_s2 + $0xbac] sm:$0xf0]  ;;  %v4779_v46 = vor.u32 %v5717_v38, %v4778_v37  ;;  %2573 = vmatpush.bf16.msra.mxu2 %v5051_v36 }
  0x4f   :  { %v5034_v42 = vld [vmem:[%s8650_s2 + $0xaa0] sm:$0xf]  ;;  %v4907_v47 = vor.u32 %v5749_v41, %v4906_v39  ;;  %v5713_v50 = vld [vmem:[%s8650_s2 + $0x88c] sm:$0xf0]  ;;  %2586 = vmatpush.bf16.msra.mxu3 %v5179_v40 }
  0x50   :  { %v5162_v44 = vld [vmem:[%s8650_s2 + $0xba0] sm:$0xf]  ;;  %v5035_v48 = vor.u32 %v5781_v43, %v5034_v42  ;;  %v5745_v53 = vld [vmem:[%s8650_s2 + $0x98c] sm:$0xf0]  ;;  %2548 = vmatpush.bf16.msra.mxu0 %v4779_v46 }
  0x51   :  { %v4762_v49 = vld [vmem:[%s8650_s2 + $0x880] sm:$0xf]  ;;  %v5163_v52 = vor.u32 %v5813_v45, %v5162_v44  ;;  %v5777_v55 = vld [vmem:[%s8650_s2 + $0xa8c] sm:$0xf0]  ;;  %2561 = vmatpush.bf16.msra.mxu1 %v4907_v47 }
  0x52   :  { %v4890_v51 = vld [vmem:[%s8650_s2 + $0x980] sm:$0xf]  ;;  %v5809_v57 = vld [vmem:[%s8650_s2 + $0xb8c] sm:$0xf0]  ;;  %v4763_v58 = vor.u32 %v5713_v50, %v4762_v49  ;;  %2574 = vmatpush.bf16.msra.mxu2 %v5035_v48 }
  0x53   :  { %v5018_v54 = vld [vmem:[%s8650_s2 + $0xa80] sm:$0xf]  ;;  %v4891_v59 = vor.u32 %v5745_v53, %v4890_v51  ;;  %v5709_v63 = vld [vmem:[%s8650_s2 + $0x86c] sm:$0xf0]  ;;  %2587 = vmatpush.bf16.msra.mxu3 %v5163_v52  ;;  %v5467_v52 = vld [vmem:[%s8650_s2 + $0xe4] sm:$0xf] }
  0x54   :  { %v5146_v56 = vld [vmem:[%s8650_s2 + $0xb80] sm:$0xf]  ;;  %v5019_v61 = vor.u32 %v5777_v55, %v5018_v54  ;;  %v5741_v5 = vld [vmem:[%s8650_s2 + $0x96c] sm:$0xf0]  ;;  %2549 = vmatpush.bf16.msra.mxu0 %v4763_v58  ;;  %v3788_v54 = vld [vmem:[%s8650_s2 + $0xf0] sm:$0xf0] }
  0x55   :  { %v4746_v62 = vld [vmem:[%s8650_s2 + $0x860] sm:$0xf]  ;;  %v5147_v4 = vor.u32 %v5809_v57, %v5146_v56  ;;  %v5773_v7 = vld [vmem:[%s8650_s2 + $0xa6c] sm:$0xf0]  ;;  %2562 = vmatpush.bf16.msra.mxu1 %v4891_v59  ;;  %v5499_v55 = vld [vmem:[%s8650_s2 + $0x1e4] sm:$0xf] }
  0x56   :  { %v4874_v3 = vld [vmem:[%s8650_s2 + $0x960] sm:$0xf]  ;;  %v5805_v9 = vld [vmem:[%s8650_s2 + $0xb6c] sm:$0xf0]  ;;  %v4747_v10 = vor.u32 %v5709_v63, %v4746_v62  ;;  %2575 = vmatpush.bf16.msra.mxu2 %v5019_v61  ;;  %v3916_v56 = vld [vmem:[%s8650_s2 + $0x1f0] sm:$0xf0] }
  0x57   :  { %v5002_v6 = vld [vmem:[%s8650_s2 + $0xa60] sm:$0xf]  ;;  %v4875_v11 = vor.u32 %v5741_v5, %v4874_v3  ;;  %v5705_v14 = vld [vmem:[%s8650_s2 + $0x84c] sm:$0xf0]  ;;  %2588 = vmatpush.bf16.msra.mxu3 %v5147_v4  ;;  %v5531_v59 = vld [vmem:[%s8650_s2 + $0x2e4] sm:$0xf]  ;;  %v3791_v4 = vor.u32 %v5467_v52, %v3788_v54  ;;  %v3919_v5 = vor.u32 %v5499_v55, %v3916_v56 }
  0x58   :  { %v5130_v8 = vld [vmem:[%s8650_s2 + $0xb60] sm:$0xf]  ;;  %v5003_v12 = vor.u32 %v5773_v7, %v5002_v6  ;;  %v5737_v17 = vld [vmem:[%s8650_s2 + $0x94c] sm:$0xf0]  ;;  %2550 = vmatpush.bf16.msra.mxu0 %v4747_v10  ;;  %v4044_v61 = vld [vmem:[%s8650_s2 + $0x2f0] sm:$0xf0] }
  0x59   :  { %v4730_v13 = vld [vmem:[%s8650_s2 + $0x840] sm:$0xf]  ;;  %v5131_v16 = vor.u32 %v5805_v9, %v5130_v8  ;;  %v5769_v19 = vld [vmem:[%s8650_s2 + $0xa4c] sm:$0xf0]  ;;  %2563 = vmatpush.bf16.msra.mxu1 %v4875_v11  ;;  %v5463_v8 = vld [vmem:[%s8650_s2 + $0xc4] sm:$0xf]  ;;  %v4047_v10 = vor.u32 %v5531_v59, %v4044_v61 }
  0x5a   :  { %v4858_v15 = vld [vmem:[%s8650_s2 + $0x940] sm:$0xf]  ;;  %v5801_v24 = vld [vmem:[%s8650_s2 + $0xb4c] sm:$0xf0]  ;;  %v4731_v25 = vor.u32 %v5705_v14, %v4730_v13  ;;  %2576 = vmatpush.bf16.msra.mxu2 %v5003_v12  ;;  %v3772_v9 = vld [vmem:[%s8650_s2 + $0xd0] sm:$0xf0] }
  0x5b   :  { %v4986_v18 = vld [vmem:[%s8650_s2 + $0xa40] sm:$0xf]  ;;  %v4859_v27 = vor.u32 %v5737_v17, %v4858_v15  ;;  %v5701_v30 = vld [vmem:[%s8650_s2 + $0x82c] sm:$0xf0]  ;;  %2589 = vmatpush.bf16.msra.mxu3 %v5131_v16  ;;  %v5495_v11 = vld [vmem:[%s8650_s2 + $0x1c4] sm:$0xf] }
  0x5c   :  { %v5114_v23 = vld [vmem:[%s8650_s2 + $0xb40] sm:$0xf]  ;;  %v4987_v28 = vor.u32 %v5769_v19, %v4986_v18  ;;  %v5733_v33 = vld [vmem:[%s8650_s2 + $0x92c] sm:$0xf0]  ;;  %2551 = vmatpush.bf16.msra.mxu0 %v4731_v25  ;;  %v3900_v12 = vld [vmem:[%s8650_s2 + $0x1d0] sm:$0xf0] }
  0x5d   :  { %v4714_v29 = vld [vmem:[%s8650_s2 + $0x820] sm:$0xf]  ;;  %v5115_v32 = vor.u32 %v5801_v24, %v5114_v23  ;;  %v5765_v35 = vld [vmem:[%s8650_s2 + $0xa2c] sm:$0xf0]  ;;  %2564 = vmatpush.bf16.msra.mxu1 %v4859_v27  ;;  %v5527_v13 = vld [vmem:[%s8650_s2 + $0x2c4] sm:$0xf]  ;;  %v3775_v24 = vor.u32 %v5463_v8, %v3772_v9  ;;  %v3903_v25 = vor.u32 %v5495_v11, %v3900_v12 }
  0x5e   :  { %v4842_v31 = vld [vmem:[%s8650_s2 + $0x920] sm:$0xf]  ;;  %v5797_v37 = vld [vmem:[%s8650_s2 + $0xb2c] sm:$0xf0]  ;;  %v4715_v38 = vor.u32 %v5701_v30, %v4714_v29  ;;  %2577 = vmatpush.bf16.msra.mxu2 %v4987_v28  ;;  %v4028_v14 = vld [vmem:[%s8650_s2 + $0x2d0] sm:$0xf0] }
  0x5f   :  { %v4970_v34 = vld [vmem:[%s8650_s2 + $0xa20] sm:$0xf]  ;;  %v5697_v40 = vld [vmem:[%s8650_s2 + $0x80c] sm:$0xf0]  ;;  %v4843_v41 = vor.u32 %v5733_v33, %v4842_v31  ;;  %2590 = vmatpush.bf16.msra.mxu3 %v5115_v32  ;;  %v5563_v15 = vld [vmem:[%s8650_s2 + $0x3e4] sm:$0xf]  ;;  %v4031_v29 = vor.u32 %v5527_v13, %v4028_v14 }
  0x60   :  { %v5098_v36 = vld [vmem:[%s8650_s2 + $0xb20] sm:$0xf]  ;;  %v4971_v42 = vor.u32 %v5765_v35, %v4970_v34  ;;  %v5729_v44 = vld [vmem:[%s8650_s2 + $0x90c] sm:$0xf0]  ;;  %2552 = vmatpush.bf16.msra.mxu0 %v4715_v38  ;;  %v4172_v16 = vld [vmem:[%s8650_s2 + $0x3f0] sm:$0xf0] }
  0x61   :  { %v4698_v39 = vld [vmem:[%s8650_s2 + $0x800] sm:$0xf]  ;;  %v5099_v46 = vor.u32 %v5797_v37, %v5098_v36  ;;  %v5761_v47 = vld [vmem:[%s8650_s2 + $0xa0c] sm:$0xf0]  ;;  %2565 = vmatpush.bf16.msra.mxu1 %v4843_v41  ;;  %v5459_v27 = vld [vmem:[%s8650_s2 + $0xa4] sm:$0xf]  ;;  %v4175_v30 = vor.u32 %v5563_v15, %v4172_v16 }
  0x62   :  { %v4826_v43 = vld [vmem:[%s8650_s2 + $0x900] sm:$0xf]  ;;  %v5793_v49 = vld [vmem:[%s8650_s2 + $0xb0c] sm:$0xf0]  ;;  %v4699_v53 = vor.u32 %v5697_v40, %v4698_v39  ;;  %2578 = vmatpush.bf16.msra.mxu2 %v4971_v42  ;;  %v3756_v28 = vld [vmem:[%s8650_s2 + $0xb0] sm:$0xf0] }
  0x63   :  { %v4954_v45 = vld [vmem:[%s8650_s2 + $0xa00] sm:$0xf]  ;;  %v5829_v51 = vld [vmem:[%s8650_s2 + $0xc2c] sm:$0xf0]  ;;  %v4827_v57 = vor.u32 %v5729_v44, %v4826_v43  ;;  %2591 = vmatpush.bf16.msra.mxu3 %v5099_v46  ;;  %v5491_v31 = vld [vmem:[%s8650_s2 + $0x1a4] sm:$0xf]  ;;  %v3759_v39 = vor.u32 %v5459_v27, %v3756_v28 }
  0x64   :  { %v5082_v48 = vld [vmem:[%s8650_s2 + $0xb00] sm:$0xf]  ;;  %v4955_v58 = vor.u32 %v5761_v47, %v4954_v45  ;;  %v5825_v7 = vld [vmem:[%s8650_s2 + $0xc0c] sm:$0xf0]  ;;  %2553 = vmatpush.bf16.msra.mxu0 %v4699_v53  ;;  %v3884_v32 = vld [vmem:[%s8650_s2 + $0x1b0] sm:$0xf0] }
  0x65   :  { %v5226_v50 = vld [vmem:[%s8650_s2 + $0xc20] sm:$0xf]  ;;  %v5083_v62 = vor.u32 %v5793_v49, %v5082_v48  ;;  %2566 = vmatpush.bf16.msra.mxu1 %v4827_v57  ;;  %v6655_v17 = vld [vmem:[#allocation1 + $0x12] sm:$0xff]  ;;  %v6657_v18 = vld [vmem:[#allocation1 + $0x9] sm:$0xff]  ;;  %v3887_v40 = vor.u32 %v5491_v31, %v3884_v32 }
  0x66   :  { %v5227_v63 = vor.u32 %v5829_v51, %v5226_v50  ;;  %v5210_v3 = vld [vmem:[%s8650_s2 + $0xc00] sm:$0xf]  ;;  %2579 = vmatpush.bf16.msra.mxu2 %v4955_v58  ;;  %v5523_v33 = vld [vmem:[%s8650_s2 + $0x2a4] sm:$0xf]  ;;  %v4012_v34 = vld [vmem:[%s8650_s2 + $0x2b0] sm:$0xf0] }
  0x67   :  { %v6626_v6 = vld [vmem:[#allocation1] sm:$0xff]  ;;  %2592 = vmatpush.bf16.msra.mxu3 %v5083_v62  ;;  %v5211_v19 = vor.u32 %v5825_v7, %v5210_v3  ;;  %v4156_v36 = vld [vmem:[%s8650_s2 + $0x3d0] sm:$0xf0]  ;;  %v4015_v44 = vor.u32 %v5523_v33, %v4012_v34 }
  0x68   :  { %2604 = vmatpush.bf16.msrb.mxu0 %v5227_v63  ;;  %v6659_v23 = vld [vmem:[#allocation1 + $0x1b] sm:$0xff]  ;;  %2567 = vmatmul.bf16.vlgmr.msra.gmra.mxu1 %v6657_v18  ;;  %v5559_v35 = vld [vmem:[%s8650_s2 + $0x3c4] sm:$0xf]  ;;  %v3740_v38 = vld [vmem:[%s8650_s2 + $0x90] sm:$0xf0] }
  0x69   :  { %2611 = vmatpush.bf16.msrb.mxu1 %v3791_v4  ;;  %2554 = vmatmul.bf16.vlgmr.msra.gmra.mxu0 %v6626_v6  ;;  %v5455_v37 = vld [vmem:[%s8650_s2 + $0x84] sm:$0xf]  ;;  %v3868_v42 = vld [vmem:[%s8650_s2 + $0x190] sm:$0xf0]  ;;  %v4159_v45 = vor.u32 %v5559_v35, %v4156_v36 }
  0x6a   :  { %2624 = vmatpush.bf16.msrb.mxu2 %v3919_v5  ;;  %2593 = vmatmul.bf16.vlgmr.msra.gmra.mxu3 %v6659_v23  ;;  %v5487_v41 = vld [vmem:[%s8650_s2 + $0x184] sm:$0xf]  ;;  %v3996_v46 = vld [vmem:[%s8650_s2 + $0x290] sm:$0xf0] }
  0x6b   :  { %2637 = vmatpush.bf16.msrb.mxu3 %v4047_v10  ;;  %2580 = vmatmul.bf16.vlgmr.msra.gmra.mxu2 %v6655_v17  ;;  %v5519_v43 = vld [vmem:[%s8650_s2 + $0x284] sm:$0xf]  ;;  %v4140_v48 = vld [vmem:[%s8650_s2 + $0x3b0] sm:$0xf0] }
  0x6c   :  { %2605 = vmatpush.bf16.msrb.mxu0 %v5211_v19  ;;  %v5555_v47 = vld [vmem:[%s8650_s2 + $0x3a4] sm:$0xf] }
  0x6d   :  { %2612 = vmatpush.bf16.msrb.mxu1 %v3775_v24 }
  0x6e   :  { %2625 = vmatpush.bf16.msrb.mxu2 %v3903_v25 }
  0x6f   :  { %2638 = vmatpush.bf16.msrb.mxu3 %v4031_v29 }
  0x70   :  { %2650 = vmatpush.bf16.msra.mxu0 %v4175_v30 }
  0x71   :  { %18 = vsyncpa [#allocation3], 0  ;;  %2613 = vmatpush.bf16.msrb.mxu1 %v3759_v39  ;;  %v3743_v49 = vor.u32 %v5455_v37, %v3740_v38  ;;  %v3871_v50 = vor.u32 %v5487_v41, %v3868_v42  ;;  %v5451_v51 = vld [vmem:[%s8650_s2 + $0x64] sm:$0xf]  ;;  %v3724_v52 = vld [vmem:[%s8650_s2 + $0x70] sm:$0xf0]  ;;  %v3999_v53 = vor.u32 %v5519_v43, %v3996_v46  ;;  %v4143_v54 = vor.u32 %v5555_v47, %v4140_v48 }
  0x72   :  { %2626 = vmatpush.bf16.msrb.mxu2 %v3887_v40  ;;  %v5483_v55 = vld [vmem:[%s8650_s2 + $0x164] sm:$0xf]  ;;  %v3852_v56 = vld [vmem:[%s8650_s2 + $0x170] sm:$0xf0]  ;;  %v3727_v62 = vor.u32 %v5451_v51, %v3724_v52  ;;  %vm2439_vm0 = vcmask 261120   ;;  %vm3132_vm1 = vcmask 1043456  }
  0x73   :  { %2639 = vmatpush.bf16.msrb.mxu3 %v4015_v44  ;;  %v5515_v57 = vld [vmem:[%s8650_s2 + $0x264] sm:$0xf]  ;;  %v3980_v58 = vld [vmem:[%s8650_s2 + $0x270] sm:$0xf0]  ;;  %v3855_v63 = vor.u32 %v5483_v55, %v3852_v56  ;;  %vm3128_vm2 = vcmask 64512   ;;  %vm3187_vm3 = vcmask 523264  }
  0x74   :  { %2651 = vmatpush.bf16.msra.mxu0 %v4159_v45  ;;  %v5551_v59 = vld [vmem:[%s8650_s2 + $0x384] sm:$0xf]  ;;  %v4124_v61 = vld [vmem:[%s8650_s2 + $0x390] sm:$0xf0]  ;;  %v3983_v5 = vor.u32 %v5515_v57, %v3980_v58  ;;  %s5922_s18 = smov [#allocation2]   ;;  %s3663_s22 = sshll.u32 %s8661_s13, 4  ;;  %s3664_s22 = int_to_ptr.hbm [resolvable:$true] %s3663_s22 }
  0x75   :  { %2614 = vmatpush.bf16.msrb.mxu1 %v3743_v49  ;;  %v5447_v3 = vld [vmem:[%s8650_s2 + $0x44] sm:$0xf]  ;;  %v3708_v4 = vld [vmem:[%s8650_s2 + $0x50] sm:$0xf0]  ;;  %v4127_v7 = vor.u32 %v5551_v59, %v4124_v61  ;;  %s3661_s19 = sshll.u32 %s5922_s18, 4  ;;  %vm3654_vm4 = vcmask 25600   ;;  %s3662_s19 = int_to_ptr.vmem [resolvable:$true] %s3661_s19 }
  0x76   :  { %2627 = vmatpush.bf16.msrb.mxu2 %v3871_v50  ;;  %v5479_v8 = vld [vmem:[%s8650_s2 + $0x144] sm:$0xf]  ;;  %v3836_v9 = vld [vmem:[%s8650_s2 + $0x150] sm:$0xf0]  ;;  %v3711_v15 = vor.u32 %v5447_v3, %v3708_v4 }
  0x77   :  { %2640 = vmatpush.bf16.msrb.mxu3 %v3999_v53  ;;  %v5511_v10 = vld [vmem:[%s8650_s2 + $0x244] sm:$0xf]  ;;  %v3964_v11 = vld [vmem:[%s8650_s2 + $0x250] sm:$0xf0]  ;;  %v3839_v16 = vor.u32 %v5479_v8, %v3836_v9 }
  0x78   :  { %2652 = vmatpush.bf16.msra.mxu0 %v4143_v54  ;;  %v5547_v12 = vld [vmem:[%s8650_s2 + $0x364] sm:$0xf]  ;;  %v4108_v13 = vld [vmem:[%s8650_s2 + $0x370] sm:$0xf0]  ;;  %v3967_v25 = vor.u32 %v5511_v10, %v3964_v11 }
  0x79   :  { %v6761_v14 = vld [vmem:[#allocation1 + $0x24] sm:$0xff]  ;;  %2615 = vmatpush.bf16.msrb.mxu1 %v3727_v62  ;;  %v3692_v24 = vld [vmem:[%s8650_s2 + $0x30] sm:$0xf0]  ;;  %v4111_v27 = vor.u32 %v5547_v12, %v4108_v13 }
  0x7a   :  { %2628 = vmatpush.bf16.msrb.mxu2 %v3855_v63  ;;  %v5443_v19 = vld [vmem:[%s8650_s2 + $0x24] sm:$0xf]  ;;  %v3820_v29 = vld [vmem:[%s8650_s2 + $0x130] sm:$0xf0]  ;;  %5240 = vmatmul.msk.bf16.vlgmr.msrb.gmra.mxu0 %vm2439_vm0, %v6761_v14 }
  0x7b   :  { %2641 = vmatpush.bf16.msrb.mxu3 %v3983_v5  ;;  %v5475_v28 = vld [vmem:[%s8650_s2 + $0x124] sm:$0xf]  ;;  %v3948_v31 = vld [vmem:[%s8650_s2 + $0x230] sm:$0xf0]  ;;  %v3695_v34 = vor.u32 %v5443_v19, %v3692_v24 }
  0x7c   :  { %2653 = vmatpush.bf16.msra.mxu0 %v4127_v7  ;;  %v5507_v30 = vld [vmem:[%s8650_s2 + $0x224] sm:$0xf]  ;;  %v4092_v33 = vld [vmem:[%s8650_s2 + $0x350] sm:$0xf0]  ;;  %v3823_v35 = vor.u32 %v5475_v28, %v3820_v29 }
  0x7d   :  { %v5543_v32 = vld [vmem:[%s8650_s2 + $0x344] sm:$0xf]  ;;  %2616 = vmatpush.bf16.msrb.mxu1 %v3711_v15  ;;  %v3676_v37 = vld [vmem:[%s8650_s2 + $0x10] sm:$0xf0]  ;;  %v3951_v39 = vor.u32 %v5507_v30, %v3948_v31 }
  0x7e   :  { %2629 = vmatpush.bf16.msrb.mxu2 %v3839_v16  ;;  %v5439_v36 = vld [vmem:[%s8650_s2 + $0x4] sm:$0xf]  ;;  %v4095_v40 = vor.u32 %v5543_v32, %v4092_v33  ;;  %v3804_v41 = vld [vmem:[%s8650_s2 + $0x110] sm:$0xf0] }
  0x7f   :  { %v5471_v38 = vld [vmem:[%s8650_s2 + $0x104] sm:$0xf]  ;;  %2642 = vmatpush.bf16.msrb.mxu3 %v3967_v25  ;;  %v3932_v43 = vld [vmem:[%s8650_s2 + $0x210] sm:$0xf0]  ;;  %v3679_v50 = vor.u32 %v5439_v36, %v3676_v37 }
  0x80   :  { %2654 = vmatpush.bf16.msra.mxu0 %v4111_v27  ;;  %v5503_v42 = vld [vmem:[%s8650_s2 + $0x204] sm:$0xf]  ;;  %v4076_v45 = vld [vmem:[%s8650_s2 + $0x330] sm:$0xf0]  ;;  %v3807_v51 = vor.u32 %v5471_v38, %v3804_v41 }
  0x81   :  { %v5539_v44 = vld [vmem:[%s8650_s2 + $0x324] sm:$0xf]  ;;  %v4300_v47 = vld [vmem:[%s8650_s2 + $0x4f0] sm:$0xf0]  ;;  %2617 = vmatpush.bf16.msrb.mxu1 %v3695_v34  ;;  %v3935_v54 = vor.u32 %v5503_v42, %v3932_v43 }
  0x82   :  { %v5595_v46 = vld [vmem:[%s8650_s2 + $0x4e4] sm:$0xf]  ;;  %v4428_v49 = vld [vmem:[%s8650_s2 + $0x5f0] sm:$0xf0]  ;;  %2630 = vmatpush.bf16.msrb.mxu2 %v3823_v35  ;;  %v4079_v55 = vor.u32 %v5539_v44, %v4076_v45 }
  0x83   :  { %v5627_v48 = vld [vmem:[%s8650_s2 + $0x5e4] sm:$0xf]  ;;  %v4556_v53 = vld [vmem:[%s8650_s2 + $0x6f0] sm:$0xf0]  ;;  %2643 = vmatpush.bf16.msrb.mxu3 %v3951_v39  ;;  %v4303_v57 = vor.u32 %v5595_v46, %v4300_v47 }
  0x84   :  { %v5659_v52 = vld [vmem:[%s8650_s2 + $0x6e4] sm:$0xf]  ;;  %2655 = vmatpush.bf16.msra.mxu0 %v4095_v40  ;;  %v4431_v58 = vor.u32 %v5627_v48, %v4428_v49  ;;  %v4060_v59 = vld [vmem:[%s8650_s2 + $0x310] sm:$0xf0] }
  0x85   :  { %v5535_v56 = vld [vmem:[%s8650_s2 + $0x304] sm:$0xf]  ;;  %v4284_v62 = vld [vmem:[%s8650_s2 + $0x4d0] sm:$0xf0]  ;;  %v4559_v63 = vor.u32 %v5659_v52, %v4556_v53  ;;  %2618 = vmatpush.bf16.msrb.mxu1 %v3679_v50 }
  0x86   :  { %v5591_v61 = vld [vmem:[%s8650_s2 + $0x4c4] sm:$0xf]  ;;  %v4412_v4 = vld [vmem:[%s8650_s2 + $0x5d0] sm:$0xf0]  ;;  %2631 = vmatpush.bf16.msrb.mxu2 %v3807_v51  ;;  %v4063_v10 = vor.u32 %v5535_v56, %v4060_v59 }
  0x87   :  { %v5623_v3 = vld [vmem:[%s8650_s2 + $0x5c4] sm:$0xf]  ;;  %v4540_v7 = vld [vmem:[%s8650_s2 + $0x6d0] sm:$0xf0]  ;;  %2644 = vmatpush.bf16.msrb.mxu3 %v3935_v54  ;;  %v4287_v11 = vor.u32 %v5591_v61, %v4284_v62 }
  0x88   :  { %v5655_v5 = vld [vmem:[%s8650_s2 + $0x6c4] sm:$0xf]  ;;  %v4684_v9 = vld [vmem:[%s8650_s2 + $0x7f0] sm:$0xf0]  ;;  %2656 = vmatpush.bf16.msra.mxu0 %v4079_v55  ;;  %v4415_v12 = vor.u32 %v5623_v3, %v4412_v4  ;;  %2619 = vmatmul.bf16.vlgmr.msrb.gmra.mxu1 %v6298_v21 }
  0x89   :  { %v5691_v8 = vld [vmem:[%s8650_s2 + $0x7e4] sm:$0xf]  ;;  %2663 = vmatpush.bf16.msra.mxu1 %v4303_v57  ;;  %v4268_v15 = vld [vmem:[%s8650_s2 + $0x4b0] sm:$0xf0]  ;;  %v4543_v16 = vor.u32 %v5655_v5, %v4540_v7  ;;  %2632 = vmatmul.bf16.vlgmr.msrb.gmra.mxu2 %v6309_v26 }
  0x8a   :  { %2676 = vmatpush.bf16.msra.mxu2 %v4431_v58  ;;  %v5587_v13 = vld [vmem:[%s8650_s2 + $0x4a4] sm:$0xf]  ;;  %v4687_v19 = vor.u32 %v5691_v8, %v4684_v9  ;;  %v4396_v25 = vld [vmem:[%s8650_s2 + $0x5b0] sm:$0xf0]  ;;  %2645 = vmatmul.bf16.vlgmr.msrb.gmra.mxu3 %v6296_v20 }
  0x8b   :  { %2689 = vmatpush.bf16.msra.mxu3 %v4559_v63  ;;  %v5619_v24 = vld [vmem:[%s8650_s2 + $0x5a4] sm:$0xf]  ;;  %v4524_v28 = vld [vmem:[%s8650_s2 + $0x6b0] sm:$0xf0]  ;;  %v4271_v31 = vor.u32 %v5587_v13, %v4268_v15 }
  0x8c   :  { %v5651_v27 = vld [vmem:[%s8650_s2 + $0x6a4] sm:$0xf]  ;;  %v4668_v30 = vld [vmem:[%s8650_s2 + $0x7d0] sm:$0xf0]  ;;  %2657 = vmatpush.bf16.msra.mxu0 %v4063_v10  ;;  %v4399_v32 = vor.u32 %v5619_v24, %v4396_v25 }
  0x8d   :  { %v5687_v29 = vld [vmem:[%s8650_s2 + $0x7c4] sm:$0xf]  ;;  %2664 = vmatpush.bf16.msra.mxu1 %v4287_v11  ;;  %v4252_v34 = vld [vmem:[%s8650_s2 + $0x490] sm:$0xf0]  ;;  %v4527_v35 = vor.u32 %v5651_v27, %v4524_v28 }
  0x8e   :  { %2677 = vmatpush.bf16.msra.mxu2 %v4415_v12  ;;  %v5583_v33 = vld [vmem:[%s8650_s2 + $0x484] sm:$0xf]  ;;  %v4671_v36 = vor.u32 %v5687_v29, %v4668_v30  ;;  %v4380_v38 = vld [vmem:[%s8650_s2 + $0x590] sm:$0xf0] }
  0x8f   :  { %2690 = vmatpush.bf16.msra.mxu3 %v4543_v16  ;;  %v5615_v37 = vld [vmem:[%s8650_s2 + $0x584] sm:$0xf]  ;;  %v4508_v40 = vld [vmem:[%s8650_s2 + $0x690] sm:$0xf0]  ;;  %2658 = vmatmul.bf16.vlgmr.msra.gmra.mxu0 %v6300_v22  ;;  %v4255_v43 = vor.u32 %v5583_v33, %v4252_v34 }
  0x90   :  { %2702 = vmatpush.bf16.msrb.mxu0 %v4687_v19  ;;  %v5647_v39 = vld [vmem:[%s8650_s2 + $0x684] sm:$0xf]  ;;  %v4652_v42 = vld [vmem:[%s8650_s2 + $0x7b0] sm:$0xf0]  ;;  %v4383_v44 = vor.u32 %v5615_v37, %v4380_v38 }
  0x91   :  { %v5683_v41 = vld [vmem:[%s8650_s2 + $0x7a4] sm:$0xf]  ;;  %2665 = vmatpush.bf16.msra.mxu1 %v4271_v31  ;;  %v4236_v46 = vld [vmem:[%s8650_s2 + $0x470] sm:$0xf0]  ;;  %v4511_v47 = vor.u32 %v5647_v39, %v4508_v40 }
  0x92   :  { %2678 = vmatpush.bf16.msra.mxu2 %v4399_v32  ;;  %v5579_v45 = vld [vmem:[%s8650_s2 + $0x464] sm:$0xf]  ;;  %v4655_v48 = vor.u32 %v5683_v41, %v4652_v42  ;;  %v4364_v50 = vld [vmem:[%s8650_s2 + $0x570] sm:$0xf0] }
  0x93   :  { %2691 = vmatpush.bf16.msra.mxu3 %v4527_v35  ;;  %v5611_v49 = vld [vmem:[%s8650_s2 + $0x564] sm:$0xf]  ;;  %v4492_v52 = vld [vmem:[%s8650_s2 + $0x670] sm:$0xf0]  ;;  %v4239_v55 = vor.u32 %v5579_v45, %v4236_v46 }
  0x94   :  { %2703 = vmatpush.bf16.msrb.mxu0 %v4671_v36  ;;  %v5643_v51 = vld [vmem:[%s8650_s2 + $0x664] sm:$0xf]  ;;  %v4636_v54 = vld [vmem:[%s8650_s2 + $0x790] sm:$0xf0]  ;;  %v4367_v56 = vor.u32 %v5611_v49, %v4364_v50 }
  0x95   :  { %v5679_v53 = vld [vmem:[%s8650_s2 + $0x784] sm:$0xf]  ;;  %2666 = vmatpush.bf16.msra.mxu1 %v4255_v43  ;;  %v4220_v58 = vld [vmem:[%s8650_s2 + $0x450] sm:$0xf0]  ;;  %v4495_v59 = vor.u32 %v5643_v51, %v4492_v52 }
  0x96   :  { %2679 = vmatpush.bf16.msra.mxu2 %v4383_v44  ;;  %v5575_v57 = vld [vmem:[%s8650_s2 + $0x444] sm:$0xf]  ;;  %v4639_v61 = vor.u32 %v5679_v53, %v4636_v54  ;;  %v4348_v63 = vld [vmem:[%s8650_s2 + $0x550] sm:$0xf0] }
  0x97   :  { %2692 = vmatpush.bf16.msra.mxu3 %v4511_v47  ;;  %v5607_v62 = vld [vmem:[%s8650_s2 + $0x544] sm:$0xf]  ;;  %v4476_v4 = vld [vmem:[%s8650_s2 + $0x650] sm:$0xf0]  ;;  %v4223_v8 = vor.u32 %v5575_v57, %v4220_v58 }
  0x98   :  { %2704 = vmatpush.bf16.msrb.mxu0 %v4655_v48  ;;  %v5639_v3 = vld [vmem:[%s8650_s2 + $0x644] sm:$0xf]  ;;  %v4620_v7 = vld [vmem:[%s8650_s2 + $0x770] sm:$0xf0]  ;;  %v4351_v9 = vor.u32 %v5607_v62, %v4348_v63 }
  0x99   :  { %v5675_v5 = vld [vmem:[%s8650_s2 + $0x764] sm:$0xf]  ;;  %2667 = vmatpush.bf16.msra.mxu1 %v4239_v55  ;;  %v4204_v11 = vld [vmem:[%s8650_s2 + $0x430] sm:$0xf0]  ;;  %v4479_v12 = vor.u32 %v5639_v3, %v4476_v4 }
  0x9a   :  { %2680 = vmatpush.bf16.msra.mxu2 %v4367_v56  ;;  %v5571_v10 = vld [vmem:[%s8650_s2 + $0x424] sm:$0xf]  ;;  %v4623_v13 = vor.u32 %v5675_v5, %v4620_v7  ;;  %v4332_v16 = vld [vmem:[%s8650_s2 + $0x530] sm:$0xf0] }
  0x9b   :  { %2693 = vmatpush.bf16.msra.mxu3 %v4495_v59  ;;  %v5603_v15 = vld [vmem:[%s8650_s2 + $0x524] sm:$0xf]  ;;  %v4460_v24 = vld [vmem:[%s8650_s2 + $0x630] sm:$0xf0]  ;;  %v4207_v28 = vor.u32 %v5571_v10, %v4204_v11 }
  0x9c   :  { %2705 = vmatpush.bf16.msrb.mxu0 %v4639_v61  ;;  %v5635_v19 = vld [vmem:[%s8650_s2 + $0x624] sm:$0xf]  ;;  %v4604_v27 = vld [vmem:[%s8650_s2 + $0x750] sm:$0xf0]  ;;  %v4335_v29 = vor.u32 %v5603_v15, %v4332_v16 }
  0x9d   :  { %v5671_v25 = vld [vmem:[%s8650_s2 + $0x744] sm:$0xf]  ;;  %2668 = vmatpush.bf16.msra.mxu1 %v4223_v8  ;;  %v4188_v31 = vld [vmem:[%s8650_s2 + $0x410] sm:$0xf0]  ;;  %v4463_v33 = vor.u32 %v5635_v19, %v4460_v24 }
  0x9e   :  { %2681 = vmatpush.bf16.msra.mxu2 %v4351_v9  ;;  %v5567_v30 = vld [vmem:[%s8650_s2 + $0x404] sm:$0xf]  ;;  %v4607_v34 = vor.u32 %v5671_v25, %v4604_v27  ;;  %v4316_v35 = vld [vmem:[%s8650_s2 + $0x510] sm:$0xf0] }
  0x9f   :  { %v5599_v32 = vld [vmem:[%s8650_s2 + $0x504] sm:$0xf]  ;;  %2694 = vmatpush.bf16.msra.mxu3 %v4479_v12  ;;  %v4444_v37 = vld [vmem:[%s8650_s2 + $0x610] sm:$0xf0]  ;;  %v4191_v44 = vor.u32 %v5567_v30, %v4188_v31 }
  0xa0   :  { %2706 = vmatpush.bf16.msrb.mxu0 %v4623_v13  ;;  %v5631_v36 = vld [vmem:[%s8650_s2 + $0x604] sm:$0xf]  ;;  %v4588_v39 = vld [vmem:[%s8650_s2 + $0x730] sm:$0xf0]  ;;  %v4319_v45 = vor.u32 %v5599_v32, %v4316_v35 }
  0xa1   :  { %v5667_v38 = vld [vmem:[%s8650_s2 + $0x724] sm:$0xf]  ;;  %v4812_v41 = vld [vmem:[%s8650_s2 + $0x8f0] sm:$0xf0]  ;;  %2669 = vmatpush.bf16.msra.mxu1 %v4207_v28  ;;  %v4447_v48 = vor.u32 %v5631_v36, %v4444_v37 }
  0xa2   :  { %v5723_v40 = vld [vmem:[%s8650_s2 + $0x8e4] sm:$0xf]  ;;  %v4940_v43 = vld [vmem:[%s8650_s2 + $0x9f0] sm:$0xf0]  ;;  %2682 = vmatpush.bf16.msra.mxu2 %v4335_v29  ;;  %v4591_v49 = vor.u32 %v5667_v38, %v4588_v39 }
  0xa3   :  { %v5755_v42 = vld [vmem:[%s8650_s2 + $0x9e4] sm:$0xf]  ;;  %v5068_v47 = vld [vmem:[%s8650_s2 + $0xaf0] sm:$0xf0]  ;;  %2695 = vmatpush.bf16.msra.mxu3 %v4463_v33  ;;  %v4815_v51 = vor.u32 %v5723_v40, %v4812_v41 }
  0xa4   :  { %v5787_v46 = vld [vmem:[%s8650_s2 + $0xae4] sm:$0xf]  ;;  %2707 = vmatpush.bf16.msrb.mxu0 %v4607_v34  ;;  %v4943_v52 = vor.u32 %v5755_v42, %v4940_v43  ;;  %v4572_v53 = vld [vmem:[%s8650_s2 + $0x710] sm:$0xf0] }
  0xa5   :  { %v5663_v50 = vld [vmem:[%s8650_s2 + $0x704] sm:$0xf]  ;;  %v4796_v55 = vld [vmem:[%s8650_s2 + $0x8d0] sm:$0xf0]  ;;  %v5071_v56 = vor.u32 %v5787_v46, %v5068_v47  ;;  %2670 = vmatpush.bf16.msra.mxu1 %v4191_v44  ;;  %v7127_v46 = vld [vmem:[%s8651_s3] sm:$0xf] }
  0xa6   :  { %v5719_v54 = vld [vmem:[%s8650_s2 + $0x8c4] sm:$0xf]  ;;  %v4924_v58 = vld [vmem:[%s8650_s2 + $0x9d0] sm:$0xf0]  ;;  %2683 = vmatpush.bf16.msra.mxu2 %v4319_v45  ;;  %v4575_v3 = vor.u32 %v5663_v50, %v4572_v53 }
  0xa7   :  { %v5751_v57 = vld [vmem:[%s8650_s2 + $0x9c4] sm:$0xf]  ;;  %v5052_v61 = vld [vmem:[%s8650_s2 + $0xad0] sm:$0xf0]  ;;  %2696 = vmatpush.bf16.msra.mxu3 %v4447_v48  ;;  %v4799_v4 = vor.u32 %v5719_v54, %v4796_v55  ;;  %v442_v54 = vperm.slane %v7127_v46, 0 }
  0xa8   :  { %v5783_v59 = vld [vmem:[%s8650_s2 + $0xac4] sm:$0xf]  ;;  %v5196_v63 = vld [vmem:[%s8650_s2 + $0xbf0] sm:$0xf0]  ;;  %2708 = vmatpush.bf16.msrb.mxu0 %v4591_v49  ;;  %v4927_v5 = vor.u32 %v5751_v57, %v4924_v58  ;;  %2671 = vmatmul.bf16.vlgmr.msra.gmra.mxu1 %v6391_v0 }
  0xa9   :  { %v5819_v62 = vld [vmem:[%s8650_s2 + $0xbe4] sm:$0xf]  ;;  %2715 = vmatpush.bf16.msrb.mxu1 %v4815_v51  ;;  %v4780_v8 = vld [vmem:[%s8650_s2 + $0x8b0] sm:$0xf0]  ;;  %2684 = vmatmul.bf16.vlgmr.msra.gmra.mxu2 %v6395_v2  ;;  %v5055_v9 = vor.u32 %v5783_v59, %v5052_v61 }
  0xaa   :  { %2728 = vmatpush.bf16.msrb.mxu2 %v4943_v52  ;;  %v5715_v7 = vld [vmem:[%s8650_s2 + $0x8a4] sm:$0xf]  ;;  %v5199_v10 = vor.u32 %v5819_v62, %v5196_v63  ;;  %v4908_v12 = vld [vmem:[%s8650_s2 + $0x9b0] sm:$0xf0]  ;;  %2697 = vmatmul.bf16.vlgmr.msra.gmra.mxu3 %v6386_v60 }
  0xab   :  { %2741 = vmatpush.bf16.msrb.mxu3 %v5071_v56  ;;  %v5747_v11 = vld [vmem:[%s8650_s2 + $0x9a4] sm:$0xf]  ;;  %v5036_v15 = vld [vmem:[%s8650_s2 + $0xab0] sm:$0xf0]  ;;  %v4783_v24 = vor.u32 %v5715_v7, %v4780_v8 }
  0xac   :  { %v5779_v13 = vld [vmem:[%s8650_s2 + $0xaa4] sm:$0xf]  ;;  %v5180_v19 = vld [vmem:[%s8650_s2 + $0xbd0] sm:$0xf0]  ;;  %2709 = vmatpush.bf16.msrb.mxu0 %v4575_v3  ;;  %v4911_v25 = vor.u32 %v5747_v11, %v4908_v12 }
  0xad   :  { %v5815_v16 = vld [vmem:[%s8650_s2 + $0xbc4] sm:$0xf]  ;;  %2716 = vmatpush.bf16.msrb.mxu1 %v4799_v4  ;;  %v4764_v28 = vld [vmem:[%s8650_s2 + $0x890] sm:$0xf0]  ;;  %v5039_v29 = vor.u32 %v5779_v13, %v5036_v15 }
  0xae   :  { %2729 = vmatpush.bf16.msrb.mxu2 %v4927_v5  ;;  %v5711_v27 = vld [vmem:[%s8650_s2 + $0x884] sm:$0xf]  ;;  %v5183_v30 = vor.u32 %v5815_v16, %v5180_v19  ;;  %v4892_v32 = vld [vmem:[%s8650_s2 + $0x990] sm:$0xf0] }
  0xaf   :  { %2742 = vmatpush.bf16.msrb.mxu3 %v5055_v9  ;;  %v5743_v31 = vld [vmem:[%s8650_s2 + $0x984] sm:$0xf]  ;;  %v5020_v34 = vld [vmem:[%s8650_s2 + $0xa90] sm:$0xf0]  ;;  %2710 = vmatmul.bf16.vlgmr.msrb.gmra.mxu0 %v6393_v1  ;;  %v4767_v37 = vor.u32 %v5711_v27, %v4764_v28 }
  0xb0   :  { %2754 = vmatpush.bf16.msra.mxu0 %v5199_v10  ;;  %v5775_v33 = vld [vmem:[%s8650_s2 + $0xa84] sm:$0xf]  ;;  %v5164_v36 = vld [vmem:[%s8650_s2 + $0xbb0] sm:$0xf0]  ;;  %v4895_v38 = vor.u32 %v5743_v31, %v4892_v32 }
  0xb1   :  { %v5811_v35 = vld [vmem:[%s8650_s2 + $0xba4] sm:$0xf]  ;;  %2717 = vmatpush.bf16.msrb.mxu1 %v4783_v24  ;;  %v4748_v40 = vld [vmem:[%s8650_s2 + $0x870] sm:$0xf0]  ;;  %v5023_v42 = vor.u32 %v5775_v33, %v5020_v34  ;;  %v2464_v10 = vpop.f32.mrf.mxu1 }
  0xb2   :  { %2730 = vmatpush.bf16.msrb.mxu2 %v4911_v25  ;;  %v5707_v39 = vld [vmem:[%s8650_s2 + $0x864] sm:$0xf]  ;;  %v5167_v43 = vor.u32 %v5811_v35, %v5164_v36  ;;  %v4876_v44 = vld [vmem:[%s8650_s2 + $0x970] sm:$0xf0]  ;;  %v2451_v3 = vpop.f32.mrf.mxu0 }
  0xb3   :  { %v5739_v41 = vld [vmem:[%s8650_s2 + $0x964] sm:$0xf]  ;;  %2743 = vmatpush.bf16.msrb.mxu3 %v5039_v29  ;;  %v5004_v47 = vld [vmem:[%s8650_s2 + $0xa70] sm:$0xf0]  ;;  %v4751_v50 = vor.u32 %v5707_v39, %v4748_v40  ;;  %v2452_v9 = vadd.f32 %v2451_v3, %v442_v54  ;;  %v3906_v3 = vld [vmem:[%s8650_s2 + $0x1c8] sm:$0xf] }
  0xb4   :  { %2755 = vmatpush.bf16.msra.mxu0 %v5183_v30  ;;  %v5771_v45 = vld [vmem:[%s8650_s2 + $0xa64] sm:$0xf]  ;;  %v5148_v49 = vld [vmem:[%s8650_s2 + $0xb90] sm:$0xf0]  ;;  %v4879_v51 = vor.u32 %v5739_v41, %v4876_v44  ;;  %v5470_v44 = vld [vmem:[%s8650_s2 + $0xf4] sm:$0xf0] }
  0xb5   :  { %v5807_v48 = vld [vmem:[%s8650_s2 + $0xb84] sm:$0xf]  ;;  %2718 = vmatpush.bf16.msrb.mxu1 %v4767_v37  ;;  %v4732_v53 = vld [vmem:[%s8650_s2 + $0x850] sm:$0xf0]  ;;  %v5007_v55 = vor.u32 %v5771_v45, %v5004_v47  ;;  %v2465_v27 = vadd.f32 %v2464_v10, %v2452_v9  ;;  %v3922_v45 = vld [vmem:[%s8650_s2 + $0x1e8] sm:$0xf] }
  0xb6   :  { %2731 = vmatpush.bf16.msrb.mxu2 %v4895_v38  ;;  %v5703_v52 = vld [vmem:[%s8650_s2 + $0x844] sm:$0xf]  ;;  %v5151_v56 = vor.u32 %v5807_v48, %v5148_v49  ;;  %v4860_v58 = vld [vmem:[%s8650_s2 + $0x950] sm:$0xf0]  ;;  %v5502_v47 = vld [vmem:[%s8650_s2 + $0x1f4] sm:$0xf0] }
  0xb7   :  { %2744 = vmatpush.bf16.msrb.mxu3 %v5023_v42  ;;  %v5735_v57 = vld [vmem:[%s8650_s2 + $0x944] sm:$0xf]  ;;  %v4988_v61 = vld [vmem:[%s8650_s2 + $0xa50] sm:$0xf0]  ;;  %v4735_v4 = vor.u32 %v5703_v52, %v4732_v53  ;;  %v2477_v33 = vpop.f32.mrf.mxu2 }
  0xb8   :  { %2756 = vmatpush.bf16.msra.mxu0 %v5167_v43  ;;  %v5767_v59 = vld [vmem:[%s8650_s2 + $0xa44] sm:$0xf]  ;;  %v5132_v63 = vld [vmem:[%s8650_s2 + $0xb70] sm:$0xf0]  ;;  %v4863_v5 = vor.u32 %v5735_v57, %v4860_v58  ;;  %v2478_v39 = vadd.f32 %v2477_v33, %v2465_v27  ;;  %v3794_v43 = vld [vmem:[%s8650_s2 + $0xe8] sm:$0xf]  ;;  %v3923_v58 = vor.u32 %v5502_v47, %v3922_v45 }
  0xb9   :  { %v5803_v62 = vld [vmem:[%s8650_s2 + $0xb64] sm:$0xf]  ;;  %2719 = vmatpush.bf16.msrb.mxu1 %v4751_v50  ;;  %v4716_v8 = vld [vmem:[%s8650_s2 + $0x830] sm:$0xf0]  ;;  %v4991_v11 = vor.u32 %v5767_v59, %v4988_v61  ;;  %v2490_v40 = vpop.f32.mrf.mxu3  ;;  %v2466_v52 = vpop.f32.mrf.mxu1  ;;  %v3795_v57 = vor.u32 %v5470_v44, %v3794_v43 }
  0xba   :  { %2732 = vmatpush.bf16.msrb.mxu2 %v4879_v51  ;;  %v5699_v7 = vld [vmem:[%s8650_s2 + $0x824] sm:$0xf]  ;;  %v5135_v12 = vor.u32 %v5803_v62, %v5132_v63  ;;  %v4844_v15 = vld [vmem:[%s8650_s2 + $0x930] sm:$0xf0]  ;;  %v7223_v48 = vadd.f32 %v2490_v40, %v2478_v39  ;;  %v2453_v49 = vpop.f32.mrf.mxu0  ;;  %v3778_v62 = vld [vmem:[%s8650_s2 + $0xc8] sm:$0xf] }
  0xbb   :  { %2745 = vmatpush.bf16.msrb.mxu3 %v5007_v55  ;;  %v5731_v13 = vld [vmem:[%s8650_s2 + $0x924] sm:$0xf]  ;;  %v4972_v19 = vld [vmem:[%s8650_s2 + $0xa30] sm:$0xf0]  ;;  %v4719_v28 = vor.u32 %v5699_v7, %v4716_v8  ;;  %v5466_v63 = vld [vmem:[%s8650_s2 + $0xd4] sm:$0xf0] }
  0xbc   :  { %2757 = vmatpush.bf16.msra.mxu0 %v5151_v56  ;;  %v5763_v16 = vld [vmem:[%s8650_s2 + $0xa24] sm:$0xf]  ;;  %v5116_v25 = vld [vmem:[%s8650_s2 + $0xb50] sm:$0xf0]  ;;  %v4847_v29 = vor.u32 %v5731_v13, %v4844_v15  ;;  %v4050_v7 = vld [vmem:[%s8650_s2 + $0x2e8] sm:$0xf]  ;;  %v3779_v15 = vor.u32 %v5466_v63, %v3778_v62 }
  0xbd   :  { %v5799_v24 = vld [vmem:[%s8650_s2 + $0xb44] sm:$0xf]  ;;  %2720 = vmatpush.bf16.msrb.mxu1 %v4735_v4  ;;  %v4700_v31 = vld [vmem:[%s8650_s2 + $0x810] sm:$0xf0]  ;;  %v4975_v34 = vor.u32 %v5763_v16, %v4972_v19  ;;  %v5498_v4 = vld [vmem:[%s8650_s2 + $0x1d4] sm:$0xf0] }
  0xbe   :  { %2733 = vmatpush.bf16.msrb.mxu2 %v4863_v5  ;;  %v5695_v30 = vld [vmem:[%s8650_s2 + $0x804] sm:$0xf]  ;;  %v5119_v35 = vor.u32 %v5799_v24, %v5116_v25  ;;  %v4828_v36 = vld [vmem:[%s8650_s2 + $0x910] sm:$0xf0]  ;;  %v5534_v8 = vld [vmem:[%s8650_s2 + $0x2f4] sm:$0xf0]  ;;  %v3907_v16 = vor.u32 %v5498_v4, %v3906_v3 }
  0xbf   :  { %v5727_v32 = vld [vmem:[%s8650_s2 + $0x904] sm:$0xf]  ;;  %2746 = vmatpush.bf16.msrb.mxu3 %v4991_v11  ;;  %v4956_v38 = vld [vmem:[%s8650_s2 + $0xa10] sm:$0xf0]  ;;  %v4703_v50 = vor.u32 %v5695_v30, %v4700_v31  ;;  %v2479_v9 = vpop.f32.mrf.mxu2  ;;  %v3762_v19 = vld [vmem:[%s8650_s2 + $0xa8] sm:$0xf]  ;;  %v4051_v27 = vor.u32 %v5534_v8, %v4050_v7 }
  0xc0   :  { %2758 = vmatpush.bf16.msra.mxu0 %v5135_v12  ;;  %v5759_v37 = vld [vmem:[%s8650_s2 + $0xa04] sm:$0xf]  ;;  %v5100_v42 = vld [vmem:[%s8650_s2 + $0xb30] sm:$0xf0]  ;;  %v4831_v51 = vor.u32 %v5727_v32, %v4828_v36  ;;  %v4178_v24 = vld [vmem:[%s8650_s2 + $0x3e8] sm:$0xf] }
  0xc1   :  { %v5795_v41 = vld [vmem:[%s8650_s2 + $0xb24] sm:$0xf]  ;;  %2721 = vmatpush.bf16.msrb.mxu1 %v4719_v28  ;;  %v4959_v53 = vor.u32 %v5759_v37, %v4956_v38  ;;  %v5228_v56 = vld [vmem:[%s8650_s2 + $0xc30] sm:$0xf0]  ;;  %v2492_v13 = vpop.f32.mrf.mxu3  ;;  %v5566_v25 = vld [vmem:[%s8650_s2 + $0x3f4] sm:$0xf0] }
  0xc2   :  { %2734 = vmatpush.bf16.msrb.mxu2 %v4847_v29  ;;  %v5103_v54 = vor.u32 %v5795_v41, %v5100_v42  ;;  %v5827_v55 = vld [vmem:[%s8650_s2 + $0xc24] sm:$0xf]  ;;  %v5084_v61 = vld [vmem:[%s8650_s2 + $0xb10] sm:$0xf0]  ;;  %v5462_v28 = vld [vmem:[%s8650_s2 + $0xb4] sm:$0xf0]  ;;  %v4179_v32 = vor.u32 %v5566_v25, %v4178_v24 }
  0xc3   :  { %2747 = vmatpush.bf16.msrb.mxu3 %v4975_v34  ;;  %v5791_v59 = vld [vmem:[%s8650_s2 + $0xb04] sm:$0xf]  ;;  %v5231_v5 = vor.u32 %v5827_v55, %v5228_v56  ;;  %v5212_v12 = vld [vmem:[%s8650_s2 + $0xc10] sm:$0xf0]  ;;  %v3890_v29 = vld [vmem:[%s8650_s2 + $0x1a8] sm:$0xf]  ;;  %v3763_v33 = vor.u32 %v5462_v28, %v3762_v19  ;;  %v2503_v44 = vpop.f32.mrf.mxu0 }
  0xc4   :  { %2759 = vmatpush.bf16.msra.mxu0 %v5119_v35  ;;  %v5087_v10 = vor.u32 %v5791_v59, %v5084_v61  ;;  %v5823_v11 = vld [vmem:[%s8650_s2 + $0xc04] sm:$0xf]  ;;  %v5494_v30 = vld [vmem:[%s8650_s2 + $0x1b4] sm:$0xf0]  ;;  %v4162_v35 = vld [vmem:[%s8650_s2 + $0x3c8] sm:$0xf]  ;;  %v2516_v52 = vpop.f32.mrf.mxu1 }
  0xc5   :  { %2722 = vmatpush.bf16.msrb.mxu1 %v4703_v50  ;;  %v5215_v31 = vor.u32 %v5823_v11, %v5212_v12  ;;  %v3891_v34 = vor.u32 %v5494_v30, %v3890_v29  ;;  %v5562_v36 = vld [vmem:[%s8650_s2 + $0x3d4] sm:$0xf0]  ;;  %v3874_v39 = vld [vmem:[%s8650_s2 + $0x188] sm:$0xf] }
  0xc6   :  { %2735 = vmatpush.bf16.msrb.mxu2 %v4831_v51  ;;  %v5458_v38 = vld [vmem:[%s8650_s2 + $0x94] sm:$0xf0]  ;;  %v4018_v41 = vld [vmem:[%s8650_s2 + $0x2a8] sm:$0xf]  ;;  %v4163_v43 = vor.u32 %v5562_v36, %v4162_v35 }
  0xc7   :  { %2748 = vmatpush.bf16.msrb.mxu3 %v4959_v53  ;;  %v5490_v40 = vld [vmem:[%s8650_s2 + $0x194] sm:$0xf0]  ;;  %v3730_v49 = vld [vmem:[%s8650_s2 + $0x68] sm:$0xf] }
  0xc8   :  { %2760 = vmatpush.bf16.msra.mxu0 %v5103_v54  ;;  %2723 = vmatmul.bf16.vlgmr.msrb.gmra.mxu1 %v6626_v6  ;;  %v4034_v6 = vld [vmem:[%s8650_s2 + $0x2c8] sm:$0xf]  ;;  %v5526_v42 = vld [vmem:[%s8650_s2 + $0x2b4] sm:$0xf0]  ;;  %v3875_v47 = vor.u32 %v5490_v40, %v3874_v39 }
  0xc9   :  { %2736 = vmatmul.bf16.vlgmr.msrb.gmra.mxu2 %v6657_v18  ;;  %2773 = vmatpush.bf16.msra.mxu1 %v5231_v5  ;;  %v5530_v18 = vld [vmem:[%s8650_s2 + $0x2d4] sm:$0xf0]  ;;  %v4146_v50 = vld [vmem:[%s8650_s2 + $0x3a8] sm:$0xf]  ;;  %v4019_v53 = vor.u32 %v5526_v42, %v4018_v41 }
  0xca   :  { %2780 = vmatpush.bf16.msra.mxu2 %v3795_v57  ;;  %2749 = vmatmul.bf16.vlgmr.msrb.gmra.mxu3 %v6655_v17  ;;  %v3746_v17 = vld [vmem:[%s8650_s2 + $0x88] sm:$0xf]  ;;  %v4035_v37 = vor.u32 %v5530_v18, %v4034_v6  ;;  %v5558_v51 = vld [vmem:[%s8650_s2 + $0x3b4] sm:$0xf0] }
  0xcb   :  { %2793 = vmatpush.bf16.msra.mxu3 %v3923_v58  ;;  %v3747_v45 = vor.u32 %v5458_v38, %v3746_v17  ;;  %v5454_v54 = vld [vmem:[%s8650_s2 + $0x74] sm:$0xf0]  ;;  %v3858_v55 = vld [vmem:[%s8650_s2 + $0x168] sm:$0xf]  ;;  %v4147_v59 = vor.u32 %v5558_v51, %v4146_v50  ;;  %v2529_v3 = vpop.f32.mrf.mxu2  ;;  %v2505_v24 = vpop.f32.mrf.mxu0 }
  0xcc   :  { %2761 = vmatpush.bf16.msra.mxu0 %v5087_v10  ;;  %v4002_v56 = vld [vmem:[%s8650_s2 + $0x288] sm:$0xf]  ;;  %v5522_v57 = vld [vmem:[%s8650_s2 + $0x294] sm:$0xf0]  ;;  %v3731_v61 = vor.u32 %v5454_v54, %v3730_v49 }
  0xcd   :  { %2774 = vmatpush.bf16.msra.mxu1 %v5215_v31  ;;  %v3714_v63 = vld [vmem:[%s8650_s2 + $0x48] sm:$0xf]  ;;  %v5554_v5 = vld [vmem:[%s8650_s2 + $0x394] sm:$0xf0]  ;;  %v4003_v7 = vor.u32 %v5522_v57, %v4002_v56  ;;  %v2542_v12 = vpop.f32.mrf.mxu3  ;;  %v2518_v31 = vpop.f32.mrf.mxu1 }
  0xce   :  { %2781 = vmatpush.bf16.msra.mxu2 %v3779_v15  ;;  %v4130_v4 = vld [vmem:[%s8650_s2 + $0x388] sm:$0xf]  ;;  %v5450_v8 = vld [vmem:[%s8650_s2 + $0x54] sm:$0xf0] }
  0xcf   :  { %2794 = vmatpush.bf16.msra.mxu3 %v3907_v16  ;;  %2762 = vmatmul.bf16.vlgmr.msra.gmra.mxu0 %v6659_v23  ;;  %v2504_v23 = vadd.f32 %v2503_v44, %v7223_v48  ;;  %v5486_v48 = vld [vmem:[%s8650_s2 + $0x174] sm:$0xf0]  ;;  %v3842_v9 = vld [vmem:[%s8650_s2 + $0x148] sm:$0xf]  ;;  %v4131_v16 = vor.u32 %v5554_v5, %v4130_v4  ;;  %v3715_v25 = vor.u32 %v5450_v8, %v3714_v63 }
  0xd0   :  { %2806 = vmatpush.bf16.msrb.mxu0 %v4051_v27  ;;  %v3859_v62 = vor.u32 %v5486_v48, %v3858_v55  ;;  %v5482_v10 = vld [vmem:[%s8650_s2 + $0x154] sm:$0xf0]  ;;  %v3986_v13 = vld [vmem:[%s8650_s2 + $0x268] sm:$0xf] }
  0xd1   :  { %2819 = vmatpush.bf16.msrb.mxu1 %v4179_v32  ;;  %v2517_v58 = vadd.f32 %v2516_v52, %v2504_v23  ;;  %v5518_v15 = vld [vmem:[%s8650_s2 + $0x274] sm:$0xf0]  ;;  %v3843_v27 = vor.u32 %v5482_v10, %v3842_v9  ;;  %v3698_v28 = vld [vmem:[%s8650_s2 + $0x28] sm:$0xf] }
  0xd2   :  { %2782 = vmatpush.bf16.msra.mxu2 %v3763_v33  ;;  %v4114_v29 = vld [vmem:[%s8650_s2 + $0x368] sm:$0xf]  ;;  %v5550_v30 = vld [vmem:[%s8650_s2 + $0x374] sm:$0xf0]  ;;  %v3987_v6 = vor.u32 %v5518_v15, %v3986_v13 }
  0xd3   :  { %2795 = vmatpush.bf16.msra.mxu3 %v3891_v34  ;;  %v2530_v11 = vadd.f32 %v2529_v3, %v2517_v58  ;;  %v5446_v18 = vld [vmem:[%s8650_s2 + $0x34] sm:$0xf0]  ;;  %v3826_v32 = vld [vmem:[%s8650_s2 + $0x128] sm:$0xf]  ;;  %v4115_v17 = vor.u32 %v5550_v30, %v4114_v29  ;;  %v2531_v41 = vpop.f32.mrf.mxu2 }
  0xd4   :  { %2807 = vmatpush.bf16.msrb.mxu0 %v4035_v37  ;;  %v5478_v33 = vld [vmem:[%s8650_s2 + $0x134] sm:$0xf0]  ;;  %v3970_v34 = vld [vmem:[%s8650_s2 + $0x248] sm:$0xf]  ;;  %v3699_v36 = vor.u32 %v5446_v18, %v3698_v28 }
  0xd5   :  { %2820 = vmatpush.bf16.msrb.mxu1 %v4163_v43  ;;  %v7362_v19 = vadd.f32 %v2542_v12, %v2530_v11  ;;  %v3682_v35 = vld [vmem:[%s8650_s2 + $0x8] sm:$0xf]  ;;  %v3827_v37 = vor.u32 %v5478_v33, %v3826_v32  ;;  %v5442_v38 = vld [vmem:[%s8650_s2 + $0x14] sm:$0xf0] }
  0xd6   :  { %2783 = vmatpush.bf16.msra.mxu2 %v3747_v45  ;;  %v4098_v39 = vld [vmem:[%s8650_s2 + $0x348] sm:$0xf]  ;;  %v5546_v40 = vld [vmem:[%s8650_s2 + $0x354] sm:$0xf0]  ;;  %v3683_v54 = vor.u32 %v5442_v38, %v3682_v35 }
  0xd7   :  { %2796 = vmatpush.bf16.msra.mxu3 %v3875_v47  ;;  %v3810_v43 = vld [vmem:[%s8650_s2 + $0x108] sm:$0xf]  ;;  %v5474_v44 = vld [vmem:[%s8650_s2 + $0x114] sm:$0xf0]  ;;  %v2544_v47 = vpop.f32.mrf.mxu3 }
  0xd8   :  { %2808 = vmatpush.bf16.msrb.mxu0 %v4019_v53  ;;  %5241 = vmatmul.msk.bf16.vlgmr.msra.gmra.mxu1 %vm2439_vm0, %v6761_v14  ;;  %v5514_v14 = vld [vmem:[%s8650_s2 + $0x254] sm:$0xf0]  ;;  %v3954_v45 = vld [vmem:[%s8650_s2 + $0x228] sm:$0xf]  ;;  %v4099_v53 = vor.u32 %v5546_v40, %v4098_v39  ;;  %v3811_v55 = vor.u32 %v5474_v44, %v3810_v43 }
  0xd9   :  { %2821 = vmatpush.bf16.msrb.mxu1 %v4147_v59  ;;  %v3971_v42 = vor.u32 %v5514_v14, %v3970_v34  ;;  %v5510_v49 = vld [vmem:[%s8650_s2 + $0x234] sm:$0xf0]  ;;  %v4306_v23 = vld [vmem:[%s8650_s2 + $0x4e8] sm:$0xf] }
  0xda   :  { %2784 = vmatpush.bf16.msra.mxu2 %v3731_v61  ;;  %v5598_v50 = vld [vmem:[%s8650_s2 + $0x4f4] sm:$0xf0]  ;;  %v4434_v51 = vld [vmem:[%s8650_s2 + $0x5e8] sm:$0xf]  ;;  %v3955_v57 = vor.u32 %v5510_v49, %v3954_v45 }
  0xdb   :  { %2797 = vmatpush.bf16.msra.mxu3 %v3859_v62  ;;  %v5630_v52 = vld [vmem:[%s8650_s2 + $0x5f4] sm:$0xf0]  ;;  %v4082_v48 = vld [vmem:[%s8650_s2 + $0x328] sm:$0xf]  ;;  %v4307_v58 = vor.u32 %v5598_v50, %v4306_v23 }
  0xdc   :  { %2809 = vmatpush.bf16.msrb.mxu0 %v4003_v7  ;;  %v5542_v56 = vld [vmem:[%s8650_s2 + $0x334] sm:$0xf0]  ;;  %v3938_v59 = vld [vmem:[%s8650_s2 + $0x208] sm:$0xf]  ;;  %v4435_v62 = vor.u32 %v5630_v52, %v4434_v51 }
  0xdd   :  { %2822 = vmatpush.bf16.msrb.mxu1 %v4131_v16  ;;  %v5506_v61 = vld [vmem:[%s8650_s2 + $0x214] sm:$0xf0]  ;;  %v4290_v63 = vld [vmem:[%s8650_s2 + $0x4c8] sm:$0xf]  ;;  %v4083_v7 = vor.u32 %v5542_v56, %v4082_v48 }
  0xde   :  { %2785 = vmatpush.bf16.msra.mxu2 %v3715_v25  ;;  %v5594_v3 = vld [vmem:[%s8650_s2 + $0x4d4] sm:$0xf0]  ;;  %v4418_v4 = vld [vmem:[%s8650_s2 + $0x5c8] sm:$0xf]  ;;  %v3939_v12 = vor.u32 %v5506_v61, %v3938_v59 }
  0xdf   :  { %2798 = vmatpush.bf16.msra.mxu3 %v3843_v27  ;;  %v5626_v5 = vld [vmem:[%s8650_s2 + $0x5d4] sm:$0xf0]  ;;  %v4562_v8 = vld [vmem:[%s8650_s2 + $0x6e8] sm:$0xf]  ;;  %v4291_v13 = vor.u32 %v5594_v3, %v4290_v63 }
  0xe0   :  { %2810 = vmatpush.bf16.msrb.mxu0 %v3987_v6  ;;  %v5662_v9 = vld [vmem:[%s8650_s2 + $0x6f4] sm:$0xf0]  ;;  %v4066_v10 = vld [vmem:[%s8650_s2 + $0x308] sm:$0xf]  ;;  %v4419_v24 = vor.u32 %v5626_v5, %v4418_v4 }
  0xe1   :  { %2823 = vmatpush.bf16.msrb.mxu1 %v4115_v17  ;;  %v5538_v11 = vld [vmem:[%s8650_s2 + $0x314] sm:$0xf0]  ;;  %v4690_v15 = vld [vmem:[%s8650_s2 + $0x7e8] sm:$0xf]  ;;  %v4563_v25 = vor.u32 %v5662_v9, %v4562_v8 }
  0xe2   :  { %2786 = vmatpush.bf16.msra.mxu2 %v3699_v36  ;;  %v5694_v16 = vld [vmem:[%s8650_s2 + $0x7f4] sm:$0xf0]  ;;  %v4274_v27 = vld [vmem:[%s8650_s2 + $0x4a8] sm:$0xf]  ;;  %v4067_v31 = vor.u32 %v5538_v11, %v4066_v10 }
  0xe3   :  { %2799 = vmatpush.bf16.msra.mxu3 %v3827_v37  ;;  %v5590_v28 = vld [vmem:[%s8650_s2 + $0x4b4] sm:$0xf0]  ;;  %v4402_v29 = vld [vmem:[%s8650_s2 + $0x5a8] sm:$0xf]  ;;  %v4691_v32 = vor.u32 %v5694_v16, %v4690_v15 }
  0xe4   :  { %2811 = vmatpush.bf16.msrb.mxu0 %v3971_v42  ;;  %v5622_v30 = vld [vmem:[%s8650_s2 + $0x5b4] sm:$0xf0]  ;;  %v4546_v6 = vld [vmem:[%s8650_s2 + $0x6c8] sm:$0xf]  ;;  %v4275_v33 = vor.u32 %v5590_v28, %v4274_v27 }
  0xe5   :  { %2824 = vmatpush.bf16.msrb.mxu1 %v4099_v53  ;;  %v5658_v18 = vld [vmem:[%s8650_s2 + $0x6d4] sm:$0xf0]  ;;  %v4674_v34 = vld [vmem:[%s8650_s2 + $0x7c8] sm:$0xf]  ;;  %v4403_v17 = vor.u32 %v5622_v30, %v4402_v29  ;;  %v2568_v47 = vpop.f32.mrf.mxu1 }
  0xe6   :  { %2787 = vmatpush.bf16.msra.mxu2 %v3683_v54  ;;  %v5690_v14 = vld [vmem:[%s8650_s2 + $0x7d4] sm:$0xf0]  ;;  %v4547_v35 = vor.u32 %v5658_v18, %v4546_v6  ;;  %v4258_v36 = vld [vmem:[%s8650_s2 + $0x488] sm:$0xf]  ;;  %v2555_v42 = vpop.f32.mrf.mxu0 }
  0xe7   :  { %2800 = vmatpush.bf16.msra.mxu3 %v3811_v55  ;;  %v5586_v37 = vld [vmem:[%s8650_s2 + $0x494] sm:$0xf0]  ;;  %v4386_v38 = vld [vmem:[%s8650_s2 + $0x588] sm:$0xf]  ;;  %v4675_v43 = vor.u32 %v5690_v14, %v4674_v34  ;;  %v2556_v44 = vadd.f32 %v2555_v42, %v7362_v19 }
  0xe8   :  { %2812 = vmatpush.bf16.msrb.mxu0 %v3955_v57  ;;  %v5618_v39 = vld [vmem:[%s8650_s2 + $0x594] sm:$0xf0]  ;;  %v4530_v40 = vld [vmem:[%s8650_s2 + $0x6a8] sm:$0xf]  ;;  %v4259_v45 = vor.u32 %v5586_v37, %v4258_v36 }
  0xe9   :  { %2825 = vmatpush.bf16.msrb.mxu1 %v4083_v7  ;;  %2788 = vmatmul.bf16.vlgmr.msra.gmra.mxu2 %v6298_v21  ;;  %v5654_v41 = vld [vmem:[%s8650_s2 + $0x6b4] sm:$0xf0]  ;;  %v4658_v49 = vld [vmem:[%s8650_s2 + $0x7a8] sm:$0xf]  ;;  %v4387_v50 = vor.u32 %v5618_v39, %v4386_v38  ;;  %v2569_v54 = vadd.f32 %v2568_v47, %v2556_v44 }
  0xea   :  { %2832 = vmatpush.bf16.msrb.mxu2 %v4307_v58  ;;  %2801 = vmatmul.bf16.vlgmr.msra.gmra.mxu3 %v6309_v26  ;;  %v5686_v23 = vld [vmem:[%s8650_s2 + $0x7b4] sm:$0xf0]  ;;  %v4531_v51 = vor.u32 %v5654_v41, %v4530_v40  ;;  %v4242_v52 = vld [vmem:[%s8650_s2 + $0x468] sm:$0xf] }
  0xeb   :  { %2845 = vmatpush.bf16.msrb.mxu3 %v4435_v62  ;;  %v5582_v19 = vld [vmem:[%s8650_s2 + $0x474] sm:$0xf0]  ;;  %v4370_v53 = vld [vmem:[%s8650_s2 + $0x568] sm:$0xf]  ;;  %v4659_v57 = vor.u32 %v5686_v23, %v4658_v49 }
  0xec   :  { %2813 = vmatpush.bf16.msrb.mxu0 %v3939_v12  ;;  %v5614_v55 = vld [vmem:[%s8650_s2 + $0x574] sm:$0xf0]  ;;  %v4514_v48 = vld [vmem:[%s8650_s2 + $0x688] sm:$0xf]  ;;  %v4243_v58 = vor.u32 %v5582_v19, %v4242_v52 }
  0xed   :  { %2826 = vmatpush.bf16.msrb.mxu1 %v4067_v31  ;;  %v5650_v56 = vld [vmem:[%s8650_s2 + $0x694] sm:$0xf0]  ;;  %v4642_v59 = vld [vmem:[%s8650_s2 + $0x788] sm:$0xf]  ;;  %v4371_v62 = vor.u32 %v5614_v55, %v4370_v53  ;;  %v2570_v27 = vpop.f32.mrf.mxu1 }
  0xee   :  { %2833 = vmatpush.bf16.msrb.mxu2 %v4291_v13  ;;  %v5682_v61 = vld [vmem:[%s8650_s2 + $0x794] sm:$0xf0]  ;;  %v4515_v63 = vor.u32 %v5650_v56, %v4514_v48  ;;  %v4226_v3 = vld [vmem:[%s8650_s2 + $0x448] sm:$0xf]  ;;  %v2581_v7 = vpop.f32.mrf.mxu2  ;;  %v2557_v12 = vpop.f32.mrf.mxu0 }
  0xef   :  { %2846 = vmatpush.bf16.msrb.mxu3 %v4419_v24  ;;  %2814 = vmatmul.bf16.vlgmr.msrb.gmra.mxu0 %v6296_v20  ;;  %v5578_v4 = vld [vmem:[%s8650_s2 + $0x454] sm:$0xf0]  ;;  %v4354_v5 = vld [vmem:[%s8650_s2 + $0x548] sm:$0xf]  ;;  %v2582_v11 = vadd.f32 %v2581_v7, %v2569_v54  ;;  %v2594_v13 = vpop.f32.mrf.mxu3  ;;  %v4643_v15 = vor.u32 %v5682_v61, %v4642_v59 }
  0xf0   :  { %2858 = vmatpush.bf16.msra.mxu0 %v4563_v25  ;;  %2827 = vmatmul.bf16.vlgmr.msrb.gmra.mxu1 %v6300_v22  ;;  %v5610_v8 = vld [vmem:[%s8650_s2 + $0x554] sm:$0xf0]  ;;  %v4498_v9 = vld [vmem:[%s8650_s2 + $0x668] sm:$0xf]  ;;  %v4227_v16 = vor.u32 %v5578_v4, %v4226_v3 }
  0xf1   :  { %2871 = vmatpush.bf16.msra.mxu1 %v4691_v32  ;;  %v5646_v10 = vld [vmem:[%s8650_s2 + $0x674] sm:$0xf0]  ;;  %v4626_v24 = vld [vmem:[%s8650_s2 + $0x768] sm:$0xf]  ;;  %v2595_v28 = vadd.f32 %v2594_v13, %v2582_v11  ;;  %v4355_v29 = vor.u32 %v5610_v8, %v4354_v5 }
  0xf2   :  { %2834 = vmatpush.bf16.msrb.mxu2 %v4275_v33  ;;  %v5678_v25 = vld [vmem:[%s8650_s2 + $0x774] sm:$0xf0]  ;;  %v4499_v30 = vor.u32 %v5646_v10, %v4498_v9  ;;  %v4210_v31 = vld [vmem:[%s8650_s2 + $0x428] sm:$0xf] }
  0xf3   :  { %2847 = vmatpush.bf16.msrb.mxu3 %v4403_v17  ;;  %v5574_v6 = vld [vmem:[%s8650_s2 + $0x434] sm:$0xf0]  ;;  %v4338_v18 = vld [vmem:[%s8650_s2 + $0x528] sm:$0xf]  ;;  %v4627_v14 = vor.u32 %v5678_v25, %v4626_v24 }
  0xf4   :  { %2859 = vmatpush.bf16.msra.mxu0 %v4547_v35  ;;  %v5606_v32 = vld [vmem:[%s8650_s2 + $0x534] sm:$0xf0]  ;;  %v4482_v33 = vld [vmem:[%s8650_s2 + $0x648] sm:$0xf]  ;;  %v4211_v17 = vor.u32 %v5574_v6, %v4210_v31 }
  0xf5   :  { %2872 = vmatpush.bf16.msra.mxu1 %v4675_v43  ;;  %v5642_v34 = vld [vmem:[%s8650_s2 + $0x654] sm:$0xf0]  ;;  %v4194_v35 = vld [vmem:[%s8650_s2 + $0x408] sm:$0xf]  ;;  %v4339_v38 = vor.u32 %v5606_v32, %v4338_v18 }
  0xf6   :  { %2835 = vmatpush.bf16.msrb.mxu2 %v4259_v45  ;;  %v4610_v36 = vld [vmem:[%s8650_s2 + $0x748] sm:$0xf]  ;;  %v5674_v37 = vld [vmem:[%s8650_s2 + $0x754] sm:$0xf0]  ;;  %v4483_v39 = vor.u32 %v5642_v34, %v4482_v33  ;;  %v2583_v47 = vpop.f32.mrf.mxu2 }
  0xf7   :  { %2848 = vmatpush.bf16.msrb.mxu3 %v4387_v50  ;;  %v5570_v40 = vld [vmem:[%s8650_s2 + $0x414] sm:$0xf0]  ;;  %v4322_v41 = vld [vmem:[%s8650_s2 + $0x508] sm:$0xf]  ;;  %v2596_v52 = vpop.f32.mrf.mxu3  ;;  %v2607_v19 = vpop.f32.mrf.mxu0 }
  0xf8   :  { %2860 = vmatpush.bf16.msra.mxu0 %v4531_v51  ;;  %v5602_v42 = vld [vmem:[%s8650_s2 + $0x514] sm:$0xf0]  ;;  %v4466_v43 = vld [vmem:[%s8650_s2 + $0x628] sm:$0xf]  ;;  %v4611_v51 = vor.u32 %v5674_v37, %v4610_v36  ;;  %v4195_v53 = vor.u32 %v5570_v40, %v4194_v35  ;;  %v7629_v48 = vadd.f32 %v2607_v19, %v2595_v28 }
  0xf9   :  { %2873 = vmatpush.bf16.msra.mxu1 %v4659_v57  ;;  %v5638_v44 = vld [vmem:[%s8650_s2 + $0x634] sm:$0xf0]  ;;  %v4818_v45 = vld [vmem:[%s8650_s2 + $0x8e8] sm:$0xf]  ;;  %v4323_v56 = vor.u32 %v5602_v42, %v4322_v41 }
  0xfa   :  { %2836 = vmatpush.bf16.msrb.mxu2 %v4243_v58  ;;  %v5726_v49 = vld [vmem:[%s8650_s2 + $0x8f4] sm:$0xf0]  ;;  %v4946_v23 = vld [vmem:[%s8650_s2 + $0x9e8] sm:$0xf]  ;;  %v4467_v57 = vor.u32 %v5638_v44, %v4466_v43  ;;  %v443_v44 = vperm.slane %v7127_v46, 1 }
  0xfb   :  { %2849 = vmatpush.bf16.msrb.mxu3 %v4371_v62  ;;  %v5758_v50 = vld [vmem:[%s8650_s2 + $0x9f4] sm:$0xf0]  ;;  %v4594_v54 = vld [vmem:[%s8650_s2 + $0x728] sm:$0xf]  ;;  %v4819_v59 = vor.u32 %v5726_v49, %v4818_v45 }
  0xfc   :  { %2861 = vmatpush.bf16.msra.mxu0 %v4515_v63  ;;  %v5670_v55 = vld [vmem:[%s8650_s2 + $0x734] sm:$0xf0]  ;;  %v4450_v58 = vld [vmem:[%s8650_s2 + $0x608] sm:$0xf]  ;;  %v4947_v61 = vor.u32 %v5758_v50, %v4946_v23 }
  0xfd   :  { %2874 = vmatpush.bf16.msra.mxu1 %v4643_v15  ;;  %v5634_v62 = vld [vmem:[%s8650_s2 + $0x614] sm:$0xf0]  ;;  %v4802_v63 = vld [vmem:[%s8650_s2 + $0x8c8] sm:$0xf]  ;;  %v4595_v7 = vor.u32 %v5670_v55, %v4594_v54 }
  0xfe   :  { %2837 = vmatpush.bf16.msrb.mxu2 %v4227_v16  ;;  %v5722_v3 = vld [vmem:[%s8650_s2 + $0x8d4] sm:$0xf0]  ;;  %v4930_v4 = vld [vmem:[%s8650_s2 + $0x9c8] sm:$0xf]  ;;  %v4451_v12 = vor.u32 %v5634_v62, %v4450_v58 }
  0xff   :  { %2850 = vmatpush.bf16.msrb.mxu3 %v4355_v29  ;;  %v5754_v5 = vld [vmem:[%s8650_s2 + $0x9d4] sm:$0xf0]  ;;  %v5074_v8 = vld [vmem:[%s8650_s2 + $0xae8] sm:$0xf]  ;;  %v4803_v16 = vor.u32 %v5722_v3, %v4802_v63  ;;  %v2609_v33 = vpop.f32.mrf.mxu0 }
 0x100   :  { %2862 = vmatpush.bf16.msra.mxu0 %v4499_v30  ;;  %v5790_v9 = vld [vmem:[%s8650_s2 + $0xaf4] sm:$0xf0]  ;;  %v4578_v10 = vld [vmem:[%s8650_s2 + $0x708] sm:$0xf]  ;;  %v4931_v24 = vor.u32 %v5754_v5, %v4930_v4 }
 0x101   :  { %2875 = vmatpush.bf16.msra.mxu1 %v4627_v14  ;;  %v5666_v11 = vld [vmem:[%s8650_s2 + $0x714] sm:$0xf0]  ;;  %v5202_v13 = vld [vmem:[%s8650_s2 + $0xbe8] sm:$0xf]  ;;  %v5075_v27 = vor.u32 %v5790_v9, %v5074_v8 }
 0x102   :  { %2838 = vmatpush.bf16.msrb.mxu2 %v4211_v17  ;;  %v5822_v15 = vld [vmem:[%s8650_s2 + $0xbf4] sm:$0xf0]  ;;  %v4786_v25 = vld [vmem:[%s8650_s2 + $0x8a8] sm:$0xf]  ;;  %v4579_v31 = vor.u32 %v5666_v11, %v4578_v10 }
 0x103   :  { %2851 = vmatpush.bf16.msrb.mxu3 %v4339_v38  ;;  %v5718_v28 = vld [vmem:[%s8650_s2 + $0x8b4] sm:$0xf0]  ;;  %v4914_v29 = vld [vmem:[%s8650_s2 + $0x9a8] sm:$0xf]  ;;  %v5203_v32 = vor.u32 %v5822_v15, %v5202_v13 }
 0x104   :  { %2863 = vmatpush.bf16.msra.mxu0 %v4483_v39  ;;  %v5750_v30 = vld [vmem:[%s8650_s2 + $0x9b4] sm:$0xf0]  ;;  %v5058_v6 = vld [vmem:[%s8650_s2 + $0xac8] sm:$0xf]  ;;  %v4787_v17 = vor.u32 %v5718_v28, %v4786_v25 }
 0x105   :  { %2876 = vmatpush.bf16.msra.mxu1 %v4611_v51  ;;  %v5786_v18 = vld [vmem:[%s8650_s2 + $0xad4] sm:$0xf0]  ;;  %v5186_v34 = vld [vmem:[%s8650_s2 + $0xbc8] sm:$0xf]  ;;  %v4915_v35 = vor.u32 %v5750_v30, %v4914_v29  ;;  %v2620_v51 = vpop.f32.mrf.mxu1 }
 0x106   :  { %2839 = vmatpush.bf16.msrb.mxu2 %v4195_v53  ;;  %v5818_v14 = vld [vmem:[%s8650_s2 + $0xbd4] sm:$0xf0]  ;;  %v4770_v36 = vld [vmem:[%s8650_s2 + $0x888] sm:$0xf]  ;;  %v5059_v37 = vor.u32 %v5786_v18, %v5058_v6 }
 0x107   :  { %2852 = vmatpush.bf16.msrb.mxu3 %v4323_v56  ;;  %v5714_v38 = vld [vmem:[%s8650_s2 + $0x894] sm:$0xf0]  ;;  %v4898_v39 = vld [vmem:[%s8650_s2 + $0x988] sm:$0xf]  ;;  %v5187_v43 = vor.u32 %v5818_v14, %v5186_v34 }
 0x108   :  { %2864 = vmatpush.bf16.msra.mxu0 %v4467_v57  ;;  %v5746_v40 = vld [vmem:[%s8650_s2 + $0x994] sm:$0xf0]  ;;  %v5042_v41 = vld [vmem:[%s8650_s2 + $0xaa8] sm:$0xf]  ;;  %v4771_v49 = vor.u32 %v5714_v38, %v4770_v36  ;;  %v2621_v57 = vadd.f32 %v2620_v51, %v443_v44 }
 0x109   :  { %2840 = vmatmul.bf16.vlgmr.msrb.gmra.mxu2 %v6391_v0  ;;  %2877 = vmatpush.bf16.msra.mxu1 %v4595_v7  ;;  %v5782_v42 = vld [vmem:[%s8650_s2 + $0xab4] sm:$0xf0]  ;;  %v5170_v45 = vld [vmem:[%s8650_s2 + $0xba8] sm:$0xf]  ;;  %v4899_v23 = vor.u32 %v5746_v40, %v4898_v39 }
 0x10a   :  { %2884 = vmatpush.bf16.msra.mxu2 %v4819_v59  ;;  %2853 = vmatmul.bf16.vlgmr.msrb.gmra.mxu3 %v6395_v2  ;;  %v5814_v47 = vld [vmem:[%s8650_s2 + $0xbb4] sm:$0xf0]  ;;  %v4754_v50 = vld [vmem:[%s8650_s2 + $0x868] sm:$0xf]  ;;  %v5043_v52 = vor.u32 %v5782_v42, %v5042_v41 }
 0x10b   :  { %2897 = vmatpush.bf16.msra.mxu3 %v4947_v61  ;;  %v5710_v46 = vld [vmem:[%s8650_s2 + $0x874] sm:$0xf0]  ;;  %v4882_v19 = vld [vmem:[%s8650_s2 + $0x968] sm:$0xf]  ;;  %v5171_v56 = vor.u32 %v5814_v47, %v5170_v45 }
 0x10c   :  { %2865 = vmatpush.bf16.msra.mxu0 %v4451_v12  ;;  %v5742_v53 = vld [vmem:[%s8650_s2 + $0x974] sm:$0xf0]  ;;  %v5026_v54 = vld [vmem:[%s8650_s2 + $0xa88] sm:$0xf]  ;;  %v4755_v61 = vor.u32 %v5710_v46, %v4754_v50  ;;  %v2659_v3 = vpop.f32.mrf.mxu0  ;;  %v2633_v9 = vpop.f32.mrf.mxu2  ;;  %v3796_v50 = vld [vmem:[%s8650_s2 + $0xf8] sm:$0xf0] }
 0x10d   :  { %2878 = vmatpush.bf16.msra.mxu1 %v4579_v31  ;;  %v5778_v55 = vld [vmem:[%s8650_s2 + $0xa94] sm:$0xf0]  ;;  %v5154_v58 = vld [vmem:[%s8650_s2 + $0xb88] sm:$0xf]  ;;  %v4883_v62 = vor.u32 %v5742_v53, %v4882_v19  ;;  %v2634_v13 = vadd.f32 %v2633_v9, %v2621_v57  ;;  %v2646_v15 = vpop.f32.mrf.mxu3  ;;  %v2622_v30 = vpop.f32.mrf.mxu1  ;;  %v3924_v9 = vld [vmem:[%s8650_s2 + $0x1f8] sm:$0xf0] }
 0x10e   :  { %2885 = vmatpush.bf16.msra.mxu2 %v4803_v16  ;;  %v5810_v59 = vld [vmem:[%s8650_s2 + $0xb94] sm:$0xf0]  ;;  %v4738_v63 = vld [vmem:[%s8650_s2 + $0x848] sm:$0xf]  ;;  %v5027_v4 = vor.u32 %v5778_v55, %v5026_v54  ;;  %v3764_v30 = vld [vmem:[%s8650_s2 + $0xb8] sm:$0xf0] }
 0x10f   :  { %2898 = vmatpush.bf16.msra.mxu3 %v4931_v24  ;;  %2866 = vmatmul.bf16.vlgmr.msra.gmra.mxu0 %v6386_v60  ;;  %v5706_v5 = vld [vmem:[%s8650_s2 + $0x854] sm:$0xf0]  ;;  %v4866_v7 = vld [vmem:[%s8650_s2 + $0x948] sm:$0xf]  ;;  %v5155_v12 = vor.u32 %v5810_v59, %v5154_v58  ;;  %v2647_v29 = vadd.f32 %v2646_v15, %v2634_v13 }
 0x110   :  { %2910 = vmatpush.bf16.msrb.mxu0 %v5075_v27  ;;  %2879 = vmatmul.bf16.vlgmr.msra.gmra.mxu1 %v6393_v1  ;;  %v5738_v8 = vld [vmem:[%s8650_s2 + $0x954] sm:$0xf0]  ;;  %v5010_v10 = vld [vmem:[%s8650_s2 + $0xa68] sm:$0xf]  ;;  %v4739_v25 = vor.u32 %v5706_v5, %v4738_v63 }
 0x111   :  { %2923 = vmatpush.bf16.msrb.mxu1 %v5203_v32  ;;  %v5774_v11 = vld [vmem:[%s8650_s2 + $0xa74] sm:$0xf0]  ;;  %v5138_v16 = vld [vmem:[%s8650_s2 + $0xb68] sm:$0xf]  ;;  %v4867_v27 = vor.u32 %v5738_v8, %v4866_v7  ;;  %v5500_v8 = vld [vmem:[%s8650_s2 + $0x1ec] sm:$0xf] }
 0x112   :  { %2886 = vmatpush.bf16.msra.mxu2 %v4787_v17  ;;  %v5806_v24 = vld [vmem:[%s8650_s2 + $0xb74] sm:$0xf0]  ;;  %v4722_v28 = vld [vmem:[%s8650_s2 + $0x828] sm:$0xf]  ;;  %v5011_v31 = vor.u32 %v5774_v11, %v5010_v10  ;;  %v7786_v17 = vadd.f32 %v2659_v3, %v2647_v29  ;;  %v3780_v3 = vld [vmem:[%s8650_s2 + $0xd8] sm:$0xf0] }
 0x113   :  { %2899 = vmatpush.bf16.msra.mxu3 %v4915_v35  ;;  %v5702_v6 = vld [vmem:[%s8650_s2 + $0x834] sm:$0xf0]  ;;  %v4850_v18 = vld [vmem:[%s8650_s2 + $0x928] sm:$0xf]  ;;  %v5139_v14 = vor.u32 %v5806_v24, %v5138_v16  ;;  %v5564_v10 = vld [vmem:[%s8650_s2 + $0x3ec] sm:$0xf] }
 0x114   :  { %2911 = vmatpush.bf16.msrb.mxu0 %v5059_v37  ;;  %v5734_v32 = vld [vmem:[%s8650_s2 + $0x934] sm:$0xf0]  ;;  %v4994_v33 = vld [vmem:[%s8650_s2 + $0xa48] sm:$0xf]  ;;  %v4723_v37 = vor.u32 %v5702_v6, %v4722_v28  ;;  %v2661_v42 = vpop.f32.mrf.mxu0  ;;  %v4180_v11 = vld [vmem:[%s8650_s2 + $0x3f8] sm:$0xf0]  ;;  %v3927_v28 = vor.u32 %v5500_v8, %v3924_v9 }
 0x115   :  { %2924 = vmatpush.bf16.msrb.mxu1 %v5187_v43  ;;  %v5770_v34 = vld [vmem:[%s8650_s2 + $0xa54] sm:$0xf0]  ;;  %v5122_v35 = vld [vmem:[%s8650_s2 + $0xb48] sm:$0xf]  ;;  %v4851_v38 = vor.u32 %v5734_v32, %v4850_v18  ;;  %v2648_v46 = vpop.f32.mrf.mxu3  ;;  %v5532_v24 = vld [vmem:[%s8650_s2 + $0x2ec] sm:$0xf]  ;;  %v4183_v18 = vor.u32 %v5564_v10, %v4180_v11 }
 0x116   :  { %2887 = vmatpush.bf16.msra.mxu2 %v4771_v49  ;;  %v5802_v36 = vld [vmem:[%s8650_s2 + $0xb54] sm:$0xf0]  ;;  %v4706_v39 = vld [vmem:[%s8650_s2 + $0x808] sm:$0xf]  ;;  %v4995_v43 = vor.u32 %v5770_v34, %v4994_v33  ;;  %v2635_v49 = vpop.f32.mrf.mxu2  ;;  %v5460_v29 = vld [vmem:[%s8650_s2 + $0xac] sm:$0xf] }
 0x117   :  { %2900 = vmatpush.bf16.msra.mxu3 %v4899_v23  ;;  %v5698_v40 = vld [vmem:[%s8650_s2 + $0x814] sm:$0xf0]  ;;  %v4834_v41 = vld [vmem:[%s8650_s2 + $0x908] sm:$0xf]  ;;  %v5468_v23 = vld [vmem:[%s8650_s2 + $0xec] sm:$0xf]  ;;  %v5123_v51 = vor.u32 %v5802_v36, %v5122_v35 }
 0x118   :  { %2912 = vmatpush.bf16.msrb.mxu0 %v5043_v52  ;;  %v5730_v44 = vld [vmem:[%s8650_s2 + $0x914] sm:$0xf0]  ;;  %v4978_v45 = vld [vmem:[%s8650_s2 + $0xa28] sm:$0xf]  ;;  %v4707_v55 = vor.u32 %v5698_v40, %v4706_v39  ;;  %v3799_v58 = vor.u32 %v5468_v23, %v3796_v50  ;;  %v5496_v33 = vld [vmem:[%s8650_s2 + $0x1cc] sm:$0xf] }
 0x119   :  { %2925 = vmatpush.bf16.msrb.mxu1 %v5171_v56  ;;  %v5766_v47 = vld [vmem:[%s8650_s2 + $0xa34] sm:$0xf0]  ;;  %v5234_v52 = vld [vmem:[%s8650_s2 + $0xc28] sm:$0xf]  ;;  %v4835_v56 = vor.u32 %v5730_v44, %v4834_v41  ;;  %v3908_v34 = vld [vmem:[%s8650_s2 + $0x1d8] sm:$0xf0] }
 0x11a   :  { %2888 = vmatpush.bf16.msra.mxu2 %v4755_v61  ;;  %v5830_v19 = vld [vmem:[%s8650_s2 + $0xc34] sm:$0xf0]  ;;  %v5106_v53 = vld [vmem:[%s8650_s2 + $0xb28] sm:$0xf]  ;;  %v4979_v57 = vor.u32 %v5766_v47, %v4978_v45  ;;  %v5560_v35 = vld [vmem:[%s8650_s2 + $0x3cc] sm:$0xf]  ;;  %v3911_v40 = vor.u32 %v5496_v33, %v3908_v34 }
 0x11b   :  { %2901 = vmatpush.bf16.msra.mxu3 %v4883_v62  ;;  %v5798_v54 = vld [vmem:[%s8650_s2 + $0xb34] sm:$0xf0]  ;;  %v4962_v59 = vld [vmem:[%s8650_s2 + $0xa08] sm:$0xf]  ;;  %v5464_v62 = vld [vmem:[%s8650_s2 + $0xcc] sm:$0xf]  ;;  %v5235_v63 = vor.u32 %v5830_v19, %v5234_v52 }
 0x11c   :  { %2913 = vmatpush.bf16.msrb.mxu0 %v5027_v4  ;;  %v5762_v61 = vld [vmem:[%s8650_s2 + $0xa14] sm:$0xf0]  ;;  %v5107_v4 = vor.u32 %v5798_v54, %v5106_v53  ;;  %v5218_v5 = vld [vmem:[%s8650_s2 + $0xc08] sm:$0xf]  ;;  %v3783_v16 = vor.u32 %v5464_v62, %v3780_v3  ;;  %v4164_v36 = vld [vmem:[%s8650_s2 + $0x3d8] sm:$0xf0] }
 0x11d   :  { %2926 = vmatpush.bf16.msrb.mxu1 %v5155_v12  ;;  %v5826_v7 = vld [vmem:[%s8650_s2 + $0xc14] sm:$0xf0]  ;;  %v5090_v12 = vld [vmem:[%s8650_s2 + $0xb08] sm:$0xf]  ;;  %v4963_v15 = vor.u32 %v5762_v61, %v4962_v59  ;;  %v4036_v39 = vld [vmem:[%s8650_s2 + $0x2d8] sm:$0xf0] }
 0x11e   :  { %2889 = vmatpush.bf16.msra.mxu2 %v4739_v25  ;;  %v5794_v13 = vld [vmem:[%s8650_s2 + $0xb14] sm:$0xf0]  ;;  %v4052_v25 = vld [vmem:[%s8650_s2 + $0x2f8] sm:$0xf0]  ;;  %v7881_v6 = vld [vmem:[#allocation1 + $0x9] sm:$0xff] }
 0x11f   :  { %2902 = vmatpush.bf16.msra.mxu3 %v4867_v27  ;;  %v5219_v27 = vor.u32 %v5826_v7, %v5218_v5  ;;  %v5091_v32 = vor.u32 %v5794_v13, %v5090_v12  ;;  %v5456_v41 = vld [vmem:[%s8650_s2 + $0x8c] sm:$0xf]  ;;  %v3748_v42 = vld [vmem:[%s8650_s2 + $0x98] sm:$0xf0]  ;;  %v7914_v47 = vld [vmem:[#allocation1 + $0x12] sm:$0xff] }
 0x120   :  { %2914 = vmatpush.bf16.msrb.mxu0 %v5011_v31  ;;  %v7878_v31 = vld [vmem:[#allocation1] sm:$0xff]  ;;  %v5492_v44 = vld [vmem:[%s8650_s2 + $0x1ac] sm:$0xf]  ;;  %v3892_v45 = vld [vmem:[%s8650_s2 + $0x1b8] sm:$0xf0] }
 0x121   :  { %2927 = vmatpush.bf16.msrb.mxu1 %v5139_v14  ;;  %v4055_v14 = vor.u32 %v5532_v24, %v4052_v25  ;;  %v5556_v23 = vld [vmem:[%s8650_s2 + $0x3ac] sm:$0xf]  ;;  %v4148_v50 = vld [vmem:[%s8650_s2 + $0x3b8] sm:$0xf0]  ;;  %v3895_v19 = vor.u32 %v5492_v44, %v3892_v45 }
 0x122   :  { %2890 = vmatpush.bf16.msra.mxu2 %v4723_v37  ;;  %v3767_v37 = vor.u32 %v5460_v29, %v3764_v30  ;;  %v5524_v52 = vld [vmem:[%s8650_s2 + $0x2ac] sm:$0xf]  ;;  %v4020_v46 = vld [vmem:[%s8650_s2 + $0x2b8] sm:$0xf0] }
 0x123   :  { %2903 = vmatpush.bf16.msra.mxu3 %v4851_v38  ;;  %v5528_v38 = vld [vmem:[%s8650_s2 + $0x2cc] sm:$0xf]  ;;  %v7929_v53 = vld [vmem:[#allocation1 + $0x1b] sm:$0xff]  ;;  %v4023_v62 = vor.u32 %v5524_v52, %v4020_v46 }
 0x124   :  { %2915 = vmatpush.bf16.msrb.mxu0 %v4995_v43  ;;  %v4167_v43 = vor.u32 %v5560_v35, %v4164_v36  ;;  %v4039_v49 = vor.u32 %v5528_v38, %v4036_v39  ;;  %v5488_v59 = vld [vmem:[%s8650_s2 + $0x18c] sm:$0xf]  ;;  %v3876_v61 = vld [vmem:[%s8650_s2 + $0x198] sm:$0xf0]  ;;  %v7987_v36 = vld [vmem:[#allocation1 + $0x24] sm:$0xff] }
 0x125   :  { %2928 = vmatpush.bf16.msrb.mxu1 %v5123_v51  ;;  %v3751_v51 = vor.u32 %v5456_v41, %v3748_v42  ;;  %v2672_v54 = vpop.f32.mrf.mxu1  ;;  %v4004_v5 = vld [vmem:[%s8650_s2 + $0x298] sm:$0xf0]  ;;  %v3879_v7 = vor.u32 %v5488_v59, %v3876_v61  ;;  %v5448_v8 = vld [vmem:[%s8650_s2 + $0x4c] sm:$0xf] }
 0x126   :  { %2891 = vmatpush.bf16.msra.mxu2 %v4707_v55  ;;  %v5452_v55 = vld [vmem:[%s8650_s2 + $0x6c] sm:$0xf]  ;;  %v3716_v9 = vld [vmem:[%s8650_s2 + $0x58] sm:$0xf0] }
 0x127   :  { %2904 = vmatpush.bf16.msra.mxu3 %v4835_v56  ;;  %v3732_v56 = vld [vmem:[%s8650_s2 + $0x78] sm:$0xf0]  ;;  %v5484_v12 = vld [vmem:[%s8650_s2 + $0x16c] sm:$0xf] }
 0x128   :  { %2916 = vmatpush.bf16.msrb.mxu0 %v4979_v57  ;;  %v4151_v57 = vor.u32 %v5556_v23, %v4148_v50  ;;  %v3735_v3 = vor.u32 %v5452_v55, %v3732_v56  ;;  %v3860_v13 = vld [vmem:[%s8650_s2 + $0x178] sm:$0xf0]  ;;  %v5516_v30 = vld [vmem:[%s8650_s2 + $0x26c] sm:$0xf] }
 0x129   :  { %2929 = vmatpush.bf16.msrb.mxu1 %v5107_v4  ;;  %2892 = vmatmul.bf16.vlgmr.msra.gmra.mxu2 %v7878_v31  ;;  %v5520_v4 = vld [vmem:[%s8650_s2 + $0x28c] sm:$0xf]  ;;  %v4116_v29 = vld [vmem:[%s8650_s2 + $0x378] sm:$0xf0]  ;;  %v3863_v33 = vor.u32 %v5484_v12, %v3860_v13 }
 0x12a   :  { %2942 = vmatpush.bf16.msrb.mxu2 %v5235_v63  ;;  %2905 = vmatmul.bf16.vlgmr.msra.gmra.mxu3 %v7881_v6  ;;  %v5552_v63 = vld [vmem:[%s8650_s2 + $0x38c] sm:$0xf]  ;;  %v4007_v25 = vor.u32 %v5520_v4, %v4004_v5  ;;  %v3844_v38 = vld [vmem:[%s8650_s2 + $0x158] sm:$0xf0] }
 0x12b   :  { %2949 = vmatpush.bf16.msrb.mxu3 %v3799_v58  ;;  %v2673_v58 = vadd.f32 %v2672_v54, %v7786_v17  ;;  %v4132_v17 = vld [vmem:[%s8650_s2 + $0x398] sm:$0xf0]  ;;  %v5444_v34 = vld [vmem:[%s8650_s2 + $0x2c] sm:$0xf] }
 0x12c   :  { %2917 = vmatpush.bf16.msrb.mxu0 %v4963_v15  ;;  %v2711_v10 = vpop.f32.mrf.mxu0  ;;  %v2685_v11 = vpop.f32.mrf.mxu2  ;;  %v5544_v42 = vld [vmem:[%s8650_s2 + $0x34c] sm:$0xf]  ;;  %v4100_v44 = vld [vmem:[%s8650_s2 + $0x358] sm:$0xf0] }
 0x12d   :  { %2930 = vmatpush.bf16.msrb.mxu1 %v5091_v32  ;;  %v2686_v15 = vadd.f32 %v2685_v11, %v2673_v58  ;;  %v2698_v24 = vpop.f32.mrf.mxu3  ;;  %v2674_v35 = vpop.f32.mrf.mxu1  ;;  %v5512_v45 = vld [vmem:[%s8650_s2 + $0x24c] sm:$0xf]  ;;  %v4308_v55 = vld [vmem:[%s8650_s2 + $0x4f8] sm:$0xf0] }
 0x12e   :  { %2943 = vmatpush.bf16.msrb.mxu2 %v5219_v27  ;;  %v5548_v27 = vld [vmem:[%s8650_s2 + $0x36c] sm:$0xf]  ;;  %v4276_v35 = vld [vmem:[%s8650_s2 + $0x4b8] sm:$0xf0] }
 0x12f   :  { %2950 = vmatpush.bf16.msrb.mxu3 %v3783_v16  ;;  %2918 = vmatmul.bf16.vlgmr.msrb.gmra.mxu0 %v7914_v47  ;;  %v4135_v16 = vor.u32 %v5552_v63, %v4132_v17  ;;  %v2699_v32 = vadd.f32 %v2698_v24, %v2686_v15  ;;  %v5440_v50 = vld [vmem:[%s8650_s2 + $0xc] sm:$0xf]  ;;  %v4084_v63 = vld [vmem:[%s8650_s2 + $0x338] sm:$0xf0] }
 0x130   :  { %2962 = vmatpush.bf16.msra.mxu0 %v3927_v28  ;;  %2931 = vmatmul.bf16.vlgmr.msrb.gmra.mxu1 %v7929_v53  ;;  %v3719_v28 = vor.u32 %v5448_v8, %v3716_v9  ;;  %v5476_v52 = vld [vmem:[%s8650_s2 + $0x12c] sm:$0xf]  ;;  %v3956_v17 = vld [vmem:[%s8650_s2 + $0x238] sm:$0xf0] }
 0x131   :  { %2975 = vmatpush.bf16.msra.mxu1 %v4055_v14  ;;  %v3700_v14 = vld [vmem:[%s8650_s2 + $0x38] sm:$0xf0]  ;;  %v7997_v39 = vadd.f32 %v2711_v10, %v2699_v32  ;;  %v5596_v54 = vld [vmem:[%s8650_s2 + $0x4ec] sm:$0xf] }
 0x132   :  { %2988 = vmatpush.bf16.msra.mxu2 %v4183_v18  ;;  %v3988_v18 = vld [vmem:[%s8650_s2 + $0x278] sm:$0xf0]  ;;  %v5540_v59 = vld [vmem:[%s8650_s2 + $0x32c] sm:$0xf]  ;;  %v4311_v5 = vor.u32 %v5596_v54, %v4308_v55 }
 0x133   :  { %2951 = vmatpush.bf16.msrb.mxu3 %v3767_v37  ;;  %v5480_v37 = vld [vmem:[%s8650_s2 + $0x14c] sm:$0xf]  ;;  %v3991_v41 = vor.u32 %v5516_v30, %v3988_v18  ;;  %v3812_v8 = vld [vmem:[%s8650_s2 + $0x118] sm:$0xf0]  ;;  %v4087_v12 = vor.u32 %v5540_v59, %v4084_v63 }
 0x134   :  { %2963 = vmatpush.bf16.msra.mxu0 %v3911_v40  ;;  %v4119_v40 = vor.u32 %v5548_v27, %v4116_v29  ;;  %v3847_v23 = vor.u32 %v5480_v37, %v3844_v38  ;;  %v2713_v46 = vpop.f32.mrf.mxu0  ;;  %v2687_v56 = vpop.f32.mrf.mxu2  ;;  %v5592_v9 = vld [vmem:[%s8650_s2 + $0x4cc] sm:$0xf]  ;;  %v4292_v10 = vld [vmem:[%s8650_s2 + $0x4d8] sm:$0xf0] }
 0x135   :  { %2976 = vmatpush.bf16.msra.mxu1 %v4039_v49  ;;  %v3972_v49 = vld [vmem:[%s8650_s2 + $0x258] sm:$0xf0]  ;;  %v2700_v61 = vpop.f32.mrf.mxu3  ;;  %v5536_v11 = vld [vmem:[%s8650_s2 + $0x30c] sm:$0xf]  ;;  %v4295_v30 = vor.u32 %v5592_v9, %v4292_v10 }
 0x136   :  { %2989 = vmatpush.bf16.msra.mxu2 %v4167_v43  ;;  %v3703_v43 = vor.u32 %v5444_v34, %v3700_v14  ;;  %v3975_v58 = vor.u32 %v5512_v45, %v3972_v49  ;;  %v4068_v15 = vld [vmem:[%s8650_s2 + $0x318] sm:$0xf0]  ;;  %v5504_v27 = vld [vmem:[%s8650_s2 + $0x20c] sm:$0xf] }
 0x137   :  { %2952 = vmatpush.bf16.msrb.mxu3 %v3751_v51  ;;  %v3684_v51 = vld [vmem:[%s8650_s2 + $0x18] sm:$0xf0]  ;;  %v5660_v32 = vld [vmem:[%s8650_s2 + $0x6ec] sm:$0xf]  ;;  %v4071_v37 = vor.u32 %v5536_v11, %v4068_v15 }
 0x138   :  { %2964 = vmatpush.bf16.msra.mxu0 %v3895_v19  ;;  %v3828_v19 = vld [vmem:[%s8650_s2 + $0x138] sm:$0xf0]  ;;  %v5588_v14 = vld [vmem:[%s8650_s2 + $0x4ac] sm:$0xf] }
 0x139   :  { %2977 = vmatpush.bf16.msra.mxu1 %v4023_v62  ;;  %5242 = vmatmul.msk.bf16.vlgmr.msrb.gmra.mxu2 %vm2439_vm0, %v7987_v36  ;;  %v3687_v62 = vor.u32 %v5440_v50, %v3684_v51  ;;  %v3831_v4 = vor.u32 %v5476_v52, %v3828_v19  ;;  %v4436_v24 = vld [vmem:[%s8650_s2 + $0x5f8] sm:$0xf0]  ;;  %v4279_v45 = vor.u32 %v5588_v14, %v4276_v35  ;;  %v5620_v46 = vld [vmem:[%s8650_s2 + $0x5ac] sm:$0xf] }
 0x13a   :  { %2990 = vmatpush.bf16.msra.mxu2 %v4151_v57  ;;  %v4103_v57 = vor.u32 %v5544_v42, %v4100_v44  ;;  %v4692_v18 = vld [vmem:[%s8650_s2 + $0x7f8] sm:$0xf0]  ;;  %v5688_v44 = vld [vmem:[%s8650_s2 + $0x7cc] sm:$0xf] }
 0x13b   :  { %2953 = vmatpush.bf16.msrb.mxu3 %v3735_v3  ;;  %v5508_v3 = vld [vmem:[%s8650_s2 + $0x22c] sm:$0xf]  ;;  %v4676_v49 = vld [vmem:[%s8650_s2 + $0x7d8] sm:$0xf0] }
 0x13c   :  { %2965 = vmatpush.bf16.msra.mxu0 %v3879_v7  ;;  %v5472_v7 = vld [vmem:[%s8650_s2 + $0x10c] sm:$0xf]  ;;  %v3959_v13 = vor.u32 %v5508_v3, %v3956_v17  ;;  %v4548_v50 = vld [vmem:[%s8650_s2 + $0x6d8] sm:$0xf0]  ;;  %v4679_v54 = vor.u32 %v5688_v44, %v4676_v49 }
 0x13d   :  { %2978 = vmatpush.bf16.msra.mxu1 %v4007_v25  ;;  %v5692_v25 = vld [vmem:[%s8650_s2 + $0x7ec] sm:$0xf]  ;;  %v3815_v29 = vor.u32 %v5472_v7, %v3812_v8  ;;  %v4260_v52 = vld [vmem:[%s8650_s2 + $0x498] sm:$0xf0] }
 0x13e   :  { %2991 = vmatpush.bf16.msra.mxu2 %v4135_v16  ;;  %v5628_v16 = vld [vmem:[%s8650_s2 + $0x5ec] sm:$0xf]  ;;  %v4695_v42 = vor.u32 %v5692_v25, %v4692_v18  ;;  %v4404_v19 = vld [vmem:[%s8650_s2 + $0x5b8] sm:$0xf0] }
 0x13f   :  { %2954 = vmatpush.bf16.msrb.mxu3 %v3719_v28  ;;  %v3940_v28 = vld [vmem:[%s8650_s2 + $0x218] sm:$0xf0]  ;;  %v4439_v34 = vor.u32 %v5628_v16, %v4436_v24  ;;  %v5684_v56 = vld [vmem:[%s8650_s2 + $0x7ac] sm:$0xf]  ;;  %v4407_v63 = vor.u32 %v5620_v46, %v4404_v19 }
 0x140   :  { %2966 = vmatpush.bf16.msra.mxu0 %v3863_v33  ;;  %v4564_v33 = vld [vmem:[%s8650_s2 + $0x6f8] sm:$0xf0]  ;;  %v3943_v38 = vor.u32 %v5504_v27, %v3940_v28  ;;  %v5652_v59 = vld [vmem:[%s8650_s2 + $0x6ac] sm:$0xf] }
 0x141   :  { %2979 = vmatpush.bf16.msra.mxu1 %v3991_v41  ;;  %v4420_v41 = vld [vmem:[%s8650_s2 + $0x5d8] sm:$0xf0]  ;;  %v5580_v3 = vld [vmem:[%s8650_s2 + $0x46c] sm:$0xf] }
 0x142   :  { %2992 = vmatpush.bf16.msra.mxu2 %v4119_v40  ;;  %v5624_v40 = vld [vmem:[%s8650_s2 + $0x5cc] sm:$0xf]  ;;  %v4532_v61 = vld [vmem:[%s8650_s2 + $0x6b8] sm:$0xf0] }
 0x143   :  { %2955 = vmatpush.bf16.msrb.mxu3 %v3703_v43  ;;  %v4567_v43 = vor.u32 %v5660_v32, %v4564_v33  ;;  %v4423_v51 = vor.u32 %v5624_v40, %v4420_v41  ;;  %v4244_v17 = vld [vmem:[%s8650_s2 + $0x478] sm:$0xf0]  ;;  %v4535_v8 = vor.u32 %v5652_v59, %v4532_v61  ;;  %v5648_v10 = vld [vmem:[%s8650_s2 + $0x68c] sm:$0xf] }
 0x144   :  { %2967 = vmatpush.bf16.msra.mxu0 %v3847_v23  ;;  %v5656_v23 = vld [vmem:[%s8650_s2 + $0x6cc] sm:$0xf]  ;;  %v4644_v9 = vld [vmem:[%s8650_s2 + $0x798] sm:$0xf0] }
 0x145   :  { %2980 = vmatpush.bf16.msra.mxu1 %v3975_v58  ;;  %v4551_v55 = vor.u32 %v5656_v23, %v4548_v50  ;;  %v4660_v58 = vld [vmem:[%s8650_s2 + $0x7b8] sm:$0xf0]  ;;  %v5612_v16 = vld [vmem:[%s8650_s2 + $0x56c] sm:$0xf] }
 0x146   :  { %2993 = vmatpush.bf16.msra.mxu2 %v4103_v57  ;;  %v4663_v7 = vor.u32 %v5684_v56, %v4660_v58  ;;  %v4372_v24 = vld [vmem:[%s8650_s2 + $0x578] sm:$0xf0]  ;;  %v5672_v49 = vld [vmem:[%s8650_s2 + $0x74c] sm:$0xf] }
 0x147   :  { %2956 = vmatpush.bf16.msrb.mxu3 %v3687_v62  ;;  %v2724_v62 = vpop.f32.mrf.mxu1  ;;  %v4628_v33 = vld [vmem:[%s8650_s2 + $0x778] sm:$0xf0]  ;;  %v5568_v19 = vld [vmem:[%s8650_s2 + $0x40c] sm:$0xf] }
 0x148   :  { %2968 = vmatpush.bf16.msra.mxu0 %v3831_v4  ;;  %v2725_v4 = vadd.f32 %v2724_v62, %v7997_v39  ;;  %v4247_v39 = vor.u32 %v5580_v3, %v4244_v17  ;;  %v4500_v14 = vld [vmem:[%s8650_s2 + $0x678] sm:$0xf0]  ;;  %v5668_v17 = vld [vmem:[%s8650_s2 + $0x72c] sm:$0xf] }
 0x149   :  { %2981 = vmatpush.bf16.msra.mxu1 %v3959_v13  ;;  %v4228_v13 = vld [vmem:[%s8650_s2 + $0x458] sm:$0xf0] }
 0x14a   :  { %2994 = vmatpush.bf16.msra.mxu2 %v4087_v12  ;;  %2957 = vmatmul.bf16.vlgmr.msrb.gmra.mxu3 %v6298_v21  ;;  %v5584_v21 = vld [vmem:[%s8650_s2 + $0x48c] sm:$0xf]  ;;  %v4212_v40 = vld [vmem:[%s8650_s2 + $0x438] sm:$0xf0] }
 0x14b   :  { %3001 = vmatpush.bf16.msra.mxu3 %v4311_v5  ;;  %v4263_v57 = vor.u32 %v5584_v21, %v4260_v52  ;;  %v5616_v5 = vld [vmem:[%s8650_s2 + $0x58c] sm:$0xf]  ;;  %v4484_v52 = vld [vmem:[%s8650_s2 + $0x658] sm:$0xf0] }
 0x14c   :  { %2969 = vmatpush.bf16.msra.mxu0 %v3815_v29  ;;  %v5576_v12 = vld [vmem:[%s8650_s2 + $0x44c] sm:$0xf]  ;;  %v2763_v15 = vpop.f32.mrf.mxu0  ;;  %v2737_v25 = vpop.f32.mrf.mxu2  ;;  %v4340_v56 = vld [vmem:[%s8650_s2 + $0x538] sm:$0xf0] }
 0x14d   :  { %2982 = vmatpush.bf16.msra.mxu1 %v3943_v38  ;;  %v5676_v29 = vld [vmem:[%s8650_s2 + $0x76c] sm:$0xf]  ;;  %v2750_v18 = vpop.f32.mrf.mxu3  ;;  %v4231_v32 = vor.u32 %v5576_v12, %v4228_v13  ;;  %v4820_v58 = vld [vmem:[%s8650_s2 + $0x8f8] sm:$0xf0] }
 0x14e   :  { %2995 = vmatpush.bf16.msra.mxu2 %v4071_v37  ;;  %v4375_v37 = vor.u32 %v5612_v16, %v4372_v24  ;;  %v5572_v38 = vld [vmem:[%s8650_s2 + $0x42c] sm:$0xf]  ;;  %v4631_v44 = vor.u32 %v5676_v29, %v4628_v33  ;;  %v4804_v12 = vld [vmem:[%s8650_s2 + $0x8d8] sm:$0xf0] }
 0x14f   :  { %3002 = vmatpush.bf16.msra.mxu3 %v4295_v30  ;;  %2970 = vmatmul.bf16.vlgmr.msra.gmra.mxu0 %v6309_v26  ;;  %v4388_v26 = vld [vmem:[%s8650_s2 + $0x598] sm:$0xf0]  ;;  %v2738_v30 = vadd.f32 %v2737_v25, %v2725_v4  ;;  %v2726_v35 = vpop.f32.mrf.mxu1  ;;  %v4215_v50 = vor.u32 %v5572_v38, %v4212_v40  ;;  %v5640_v21 = vld [vmem:[%s8650_s2 + $0x64c] sm:$0xf] }
 0x150   :  { %3014 = vmatpush.bf16.msrb.mxu0 %v4439_v34  ;;  %2983 = vmatmul.bf16.vlgmr.msra.gmra.mxu1 %v6296_v20  ;;  %v4516_v20 = vld [vmem:[%s8650_s2 + $0x698] sm:$0xf0]  ;;  %v4391_v11 = vor.u32 %v5616_v5, %v4388_v26  ;;  %v5644_v34 = vld [vmem:[%s8650_s2 + $0x66c] sm:$0xf]  ;;  %v4487_v62 = vor.u32 %v5640_v21, %v4484_v52 }
 0x151   :  { %3027 = vmatpush.bf16.msrb.mxu1 %v4567_v43  ;;  %2996 = vmatmul.bf16.vlgmr.msra.gmra.mxu2 %v6300_v22  ;;  %v5680_v22 = vld [vmem:[%s8650_s2 + $0x78c] sm:$0xf]  ;;  %v4519_v28 = vor.u32 %v5648_v10, %v4516_v20  ;;  %v2751_v41 = vadd.f32 %v2750_v18, %v2738_v30  ;;  %v4356_v43 = vld [vmem:[%s8650_s2 + $0x558] sm:$0xf0] }
 0x152   :  { %3040 = vmatpush.bf16.msrb.mxu2 %v4695_v42  ;;  %v4647_v27 = vor.u32 %v5680_v22, %v4644_v9  ;;  %v5608_v42 = vld [vmem:[%s8650_s2 + $0x54c] sm:$0xf]  ;;  %v4596_v4 = vld [vmem:[%s8650_s2 + $0x738] sm:$0xf0] }
 0x153   :  { %3003 = vmatpush.bf16.msra.mxu3 %v4279_v45  ;;  %v4503_v45 = vor.u32 %v5644_v34, %v4500_v14  ;;  %v2764_v23 = vadd.f32 %v2763_v15, %v2751_v41  ;;  %v4359_v46 = vor.u32 %v5608_v42, %v4356_v43  ;;  %v5600_v22 = vld [vmem:[%s8650_s2 + $0x50c] sm:$0xf]  ;;  %v4468_v9 = vld [vmem:[%s8650_s2 + $0x638] sm:$0xf0]  ;;  %v4599_v13 = vor.u32 %v5668_v17, %v4596_v4 }
 0x154   :  { %3015 = vmatpush.bf16.msrb.mxu0 %v4423_v51  ;;  %v4612_v51 = vld [vmem:[%s8650_s2 + $0x758] sm:$0xf0]  ;;  %v2765_v59 = vpop.f32.mrf.mxu0  ;;  %v5664_v15 = vld [vmem:[%s8650_s2 + $0x70c] sm:$0xf] }
 0x155   :  { %3028 = vmatpush.bf16.msrb.mxu1 %v4551_v55  ;;  %v5604_v55 = vld [vmem:[%s8650_s2 + $0x52c] sm:$0xf]  ;;  %v4615_v61 = vor.u32 %v5672_v49, %v4612_v51  ;;  %v2752_v5 = vpop.f32.mrf.mxu3  ;;  %v4324_v20 = vld [vmem:[%s8650_s2 + $0x518] sm:$0xf0] }
 0x156   :  { %3041 = vmatpush.bf16.msrb.mxu2 %v4679_v54  ;;  %v4196_v54 = vld [vmem:[%s8650_s2 + $0x418] sm:$0xf0]  ;;  %v5756_v16 = vld [vmem:[%s8650_s2 + $0x9ec] sm:$0xf]  ;;  %v4327_v30 = vor.u32 %v5600_v22, %v4324_v20 }
 0x157   :  { %3004 = vmatpush.bf16.msra.mxu3 %v4263_v57  ;;  %v5724_v57 = vld [vmem:[%s8650_s2 + $0x8ec] sm:$0xf]  ;;  %v4199_v3 = vor.u32 %v5568_v19, %v4196_v54  ;;  %v2776_v26 = vpop.f32.mrf.mxu1  ;;  %v4948_v24 = vld [vmem:[%s8650_s2 + $0x9f8] sm:$0xf0] }
 0x158   :  { %3016 = vmatpush.bf16.msrb.mxu0 %v4407_v63  ;;  %v2739_v63 = vpop.f32.mrf.mxu2  ;;  %v8241_v10 = vadd.f32 %v2776_v26, %v2764_v23  ;;  %v5204_v29 = vld [vmem:[%s8650_s2 + $0xbf8] sm:$0xf0]  ;;  %v5632_v33 = vld [vmem:[%s8650_s2 + $0x60c] sm:$0xf]  ;;  %v4951_v14 = vor.u32 %v5756_v16, %v4948_v24 }
 0x159   :  { %3029 = vmatpush.bf16.msrb.mxu1 %v4535_v8  ;;  %v4823_v8 = vor.u32 %v5724_v57, %v4820_v58  ;;  %v4452_v34 = vld [vmem:[%s8650_s2 + $0x618] sm:$0xf0]  ;;  %v5752_v41 = vld [vmem:[%s8650_s2 + $0x9cc] sm:$0xf] }
 0x15a   :  { %3042 = vmatpush.bf16.msrb.mxu2 %v4663_v7  ;;  %v4343_v7 = vor.u32 %v5604_v55, %v4340_v56  ;;  %v4788_v35 = vld [vmem:[%s8650_s2 + $0x8b8] sm:$0xf0]  ;;  %v5748_v54 = vld [vmem:[%s8650_s2 + $0x9ac] sm:$0xf] }
 0x15b   :  { %3005 = vmatpush.bf16.msra.mxu3 %v4247_v39  ;;  %v5636_v39 = vld [vmem:[%s8650_s2 + $0x62c] sm:$0xf]  ;;  %v5076_v38 = vld [vmem:[%s8650_s2 + $0xaf8] sm:$0xf0] }
 0x15c   :  { %3017 = vmatpush.bf16.msrb.mxu0 %v4391_v11  ;;  %v5720_v11 = vld [vmem:[%s8650_s2 + $0x8cc] sm:$0xf]  ;;  %v4471_v25 = vor.u32 %v5636_v39, %v4468_v9  ;;  %v4932_v42 = vld [vmem:[%s8650_s2 + $0x9d8] sm:$0xf0] }
 0x15d   :  { %3030 = vmatpush.bf16.msrb.mxu1 %v4519_v28  ;;  %v5820_v28 = vld [vmem:[%s8650_s2 + $0xbec] sm:$0xf]  ;;  %v4807_v18 = vor.u32 %v5720_v11, %v4804_v12  ;;  %v5188_v23 = vld [vmem:[%s8650_s2 + $0xbd8] sm:$0xf0]  ;;  %v4935_v21 = vor.u32 %v5752_v41, %v4932_v42  ;;  %v8367_v12 = vld [vmem:[%s8651_s3] sm:$0xf] }
 0x15e   :  { %3043 = vmatpush.bf16.msrb.mxu2 %v4647_v27  ;;  %v4580_v27 = vld [vmem:[%s8650_s2 + $0x718] sm:$0xf0]  ;;  %v5207_v43 = vor.u32 %v5820_v28, %v5204_v29  ;;  %v5812_v59 = vld [vmem:[%s8650_s2 + $0xbac] sm:$0xf] }
 0x15f   :  { %3006 = vmatpush.bf16.msra.mxu3 %v4231_v32  ;;  %v5716_v32 = vld [vmem:[%s8650_s2 + $0x8ac] sm:$0xf]  ;;  %v4583_v40 = vor.u32 %v5664_v15, %v4580_v27  ;;  %v2778_v51 = vpop.f32.mrf.mxu1  ;;  %v4772_v52 = vld [vmem:[%s8650_s2 + $0x898] sm:$0xf0] }
 0x160   :  { %3018 = vmatpush.bf16.msrb.mxu0 %v4375_v37  ;;  %v5788_v37 = vld [vmem:[%s8650_s2 + $0xaec] sm:$0xf]  ;;  %v5060_v19 = vld [vmem:[%s8650_s2 + $0xad8] sm:$0xf0] }
 0x161   :  { %3031 = vmatpush.bf16.msrb.mxu1 %v4503_v45  ;;  %v4791_v45 = vor.u32 %v5716_v32, %v4788_v35  ;;  %v5079_v49 = vor.u32 %v5788_v37, %v5076_v38  ;;  %v4916_v55 = vld [vmem:[%s8650_s2 + $0x9b8] sm:$0xf0]  ;;  %v5780_v17 = vld [vmem:[%s8650_s2 + $0xaac] sm:$0xf] }
 0x162   :  { %3044 = vmatpush.bf16.msrb.mxu2 %v4631_v44  ;;  %v4455_v44 = vor.u32 %v5632_v33, %v4452_v34  ;;  %v4919_v63 = vor.u32 %v5748_v54, %v4916_v55  ;;  %v5044_v4 = vld [vmem:[%s8650_s2 + $0xab8] sm:$0xf0]  ;;  %v5704_v22 = vld [vmem:[%s8650_s2 + $0x84c] sm:$0xf] }
 0x163   :  { %3007 = vmatpush.bf16.msra.mxu3 %v4215_v50  ;;  %v5712_v50 = vld [vmem:[%s8650_s2 + $0x88c] sm:$0xf]  ;;  %v4900_v5 = vld [vmem:[%s8650_s2 + $0x998] sm:$0xf0] }
 0x164   :  { %3019 = vmatpush.bf16.msrb.mxu0 %v4359_v46  ;;  %v5784_v46 = vld [vmem:[%s8650_s2 + $0xacc] sm:$0xf]  ;;  %v4775_v57 = vor.u32 %v5712_v50, %v4772_v52  ;;  %v4740_v39 = vld [vmem:[%s8650_s2 + $0x858] sm:$0xf0] }
 0x165   :  { %3032 = vmatpush.bf16.msrb.mxu1 %v4487_v62  ;;  %v5063_v58 = vor.u32 %v5784_v46, %v5060_v19  ;;  %v5708_v62 = vld [vmem:[%s8650_s2 + $0x86c] sm:$0xf]  ;;  %v5028_v11 = vld [vmem:[%s8650_s2 + $0xa98] sm:$0xf0]  ;;  %v4743_v27 = vor.u32 %v5704_v22, %v4740_v39 }
 0x166   :  { %3045 = vmatpush.bf16.msrb.mxu2 %v4615_v61  ;;  %v5172_v61 = vld [vmem:[%s8650_s2 + $0xbb8] sm:$0xf0]  ;;  %v5776_v20 = vld [vmem:[%s8650_s2 + $0xa8c] sm:$0xf] }
 0x167   :  { %3008 = vmatpush.bf16.msra.mxu3 %v4199_v3  ;;  %v4756_v3 = vld [vmem:[%s8650_s2 + $0x878] sm:$0xf0]  ;;  %v5175_v26 = vor.u32 %v5812_v59, %v5172_v61  ;;  %v5740_v15 = vld [vmem:[%s8650_s2 + $0x96c] sm:$0xf]  ;;  %v5031_v28 = vor.u32 %v5776_v20, %v5028_v11 }
 0x168   :  { %3020 = vmatpush.bf16.msrb.mxu0 %v4343_v7  ;;  %v5808_v7 = vld [vmem:[%s8650_s2 + $0xb8c] sm:$0xf]  ;;  %v4884_v16 = vld [vmem:[%s8650_s2 + $0x978] sm:$0xf0] }
 0x169   :  { %3033 = vmatpush.bf16.msrb.mxu1 %v4471_v25  ;;  %v5804_v29 = vld [vmem:[%s8650_s2 + $0xb6c] sm:$0xf]  ;;  %v4887_v33 = vor.u32 %v5740_v15, %v4884_v16  ;;  %v4724_v34 = vld [vmem:[%s8650_s2 + $0x838] sm:$0xf0]  ;;  %v3123_v16 = vld [vmem:[%s8652_s4] sm:$0xf] }
 0x16a   :  { %3046 = vmatpush.bf16.msrb.mxu2 %v4599_v13  ;;  %3009 = vmatmul.bf16.vlgmr.msra.gmra.mxu3 %v6391_v0  ;;  %v5816_v0 = vld [vmem:[%s8650_s2 + $0xbcc] sm:$0xf]  ;;  %v444_v13 = vperm.slane %v8367_v12, 2  ;;  %v5012_v35 = vld [vmem:[%s8650_s2 + $0xa78] sm:$0xf0] }
 0x16b   :  { %3053 = vmatpush.bf16.msrb.mxu3 %v4823_v8  ;;  %v5191_v56 = vor.u32 %v5816_v0, %v5188_v23  ;;  %v4759_v8 = vor.u32 %v5708_v62, %v4756_v3  ;;  %v4868_v41 = vld [vmem:[%s8650_s2 + $0x958] sm:$0xf0]  ;;  %v5696_v50 = vld [vmem:[%s8650_s2 + $0x80c] sm:$0xf] }
 0x16c   :  { %3021 = vmatpush.bf16.msrb.mxu0 %v4327_v30  ;;  %v2815_v25 = vpop.f32.mrf.mxu0  ;;  %v5140_v30 = vld [vmem:[%s8650_s2 + $0xb78] sm:$0xf0]  ;;  %v2789_v32 = vpop.f32.mrf.mxu2  ;;  %v5732_v52 = vld [vmem:[%s8650_s2 + $0x92c] sm:$0xf] }
 0x16d   :  { %3034 = vmatpush.bf16.msrb.mxu1 %v4455_v44  ;;  %v2790_v37 = vadd.f32 %v2789_v32, %v444_v13  ;;  %v2802_v38 = vpop.f32.mrf.mxu3  ;;  %v2828_v42 = vpop.f32.mrf.mxu1  ;;  %v5800_v44 = vld [vmem:[%s8650_s2 + $0xb4c] sm:$0xf]  ;;  %v5124_v23 = vld [vmem:[%s8650_s2 + $0xb58] sm:$0xf0] }
 0x16e   :  { %3047 = vmatpush.bf16.msrb.mxu2 %v4583_v40  ;;  %v5736_v40 = vld [vmem:[%s8650_s2 + $0x94c] sm:$0xf]  ;;  %v4708_v51 = vld [vmem:[%s8650_s2 + $0x818] sm:$0xf0] }
 0x16f   :  { %3054 = vmatpush.bf16.msrb.mxu3 %v4807_v18  ;;  %3022 = vmatmul.bf16.vlgmr.msrb.gmra.mxu0 %v6395_v2  ;;  %v5047_v2 = vor.u32 %v5780_v17, %v5044_v4  ;;  %v5700_v18 = vld [vmem:[%s8650_s2 + $0x82c] sm:$0xf]  ;;  %v4996_v19 = vld [vmem:[%s8650_s2 + $0xa58] sm:$0xf0]  ;;  %v4711_v62 = vor.u32 %v5696_v50, %v4708_v51  ;;  %v5845_v50 = vld [vmem:[%s8656_s8 + $0x50] sm:$0xff] }
 0x170   :  { %3066 = vmatpush.bf16.msra.mxu0 %v4951_v14  ;;  %3035 = vmatmul.bf16.vlgmr.msrb.gmra.mxu1 %v6386_v60  ;;  %v5156_v60 = vld [vmem:[%s8650_s2 + $0xb98] sm:$0xf0]  ;;  %v5772_v14 = vld [vmem:[%s8650_s2 + $0xa6c] sm:$0xf] }
 0x171   :  { %3079 = vmatpush.bf16.msra.mxu1 %v5079_v49  ;;  %3048 = vmatmul.bf16.vlgmr.msrb.gmra.mxu2 %v6393_v1  ;;  %v5744_v1 = vld [vmem:[%s8650_s2 + $0x98c] sm:$0xf]  ;;  %v5159_v24 = vor.u32 %v5808_v7, %v5156_v60  ;;  %v4727_v49 = vor.u32 %v5700_v18, %v4724_v34  ;;  %v5015_v0 = vor.u32 %v5772_v14, %v5012_v35  ;;  %v4852_v55 = vld [vmem:[%s8650_s2 + $0x938] sm:$0xf0]  ;;  %v3134_v18 = vsel %vm3132_vm1, %v3123_v16, 0  ;;  %v5841_v34 = vld [vmem:[%s8656_s8 + $0x30] sm:$0xff] }
 0x172   :  { %3092 = vmatpush.bf16.msra.mxu2 %v5207_v43  ;;  %v4903_v9 = vor.u32 %v5744_v1, %v4900_v5  ;;  %v5143_v43 = vor.u32 %v5804_v29, %v5140_v30  ;;  %v5768_v46 = vld [vmem:[%s8650_s2 + $0xa4c] sm:$0xf]  ;;  %v5108_v17 = vld [vmem:[%s8650_s2 + $0xb38] sm:$0xf0]  ;;  %v4855_v1 = vor.u32 %v5732_v52, %v4852_v55  ;;  %v5839_v35 = vld [vmem:[%s8656_s8 + $0x20] sm:$0xff]  ;;  %v3118_v55 = vmax.f32 %v7629_v48, 0.0 }
 0x173   :  { %3055 = vmatpush.bf16.msrb.mxu3 %v4791_v45  ;;  %v2803_v45 = vadd.f32 %v2802_v38, %v2790_v37  ;;  %v5796_v3 = vld [vmem:[%s8650_s2 + $0xb2c] sm:$0xf]  ;;  %v4836_v60 = vld [vmem:[%s8650_s2 + $0x918] sm:$0xf0]  ;;  %v5847_v38 = vld [vmem:[%s8656_s8 + $0x60] sm:$0xff] }
 0x174   :  { %3067 = vmatpush.bf16.msra.mxu0 %v4935_v21  ;;  %v4871_v21 = vor.u32 %v5736_v40, %v4868_v41  ;;  %v2817_v61 = vpop.f32.mrf.mxu0  ;;  %v2791_v4 = vpop.f32.mrf.mxu2  ;;  %v5764_v7 = vld [vmem:[%s8650_s2 + $0xa2c] sm:$0xf]  ;;  %v5220_v39 = vld [vmem:[%s8650_s2 + $0xc18] sm:$0xf0]  ;;  %v5111_v20 = vor.u32 %v5796_v3, %v5108_v17 }
 0x175   :  { %3080 = vmatpush.bf16.msra.mxu1 %v5063_v58  ;;  %v2816_v54 = vadd.f32 %v2815_v25, %v2803_v45  ;;  %v5127_v58 = vor.u32 %v5800_v44, %v5124_v23  ;;  %v5824_v22 = vld [vmem:[%s8650_s2 + $0xc0c] sm:$0xf]  ;;  %v5092_v15 = vld [vmem:[%s8650_s2 + $0xb18] sm:$0xf0]  ;;  %v3122_v44 = vld [vmem:[%s8649_s1] sm:$0x1] }
 0x176   :  { %3093 = vmatpush.bf16.msra.mxu2 %v5191_v56  ;;  %v5828_v56 = vld [vmem:[%s8650_s2 + $0xc2c] sm:$0xf]  ;;  %v5223_v25 = vor.u32 %v5824_v22, %v5220_v39  ;;  %v5842_v29 = vld [vmem:[%s8656_s8 + $0x38] sm:$0xff]  ;;  %v445_v22 = vperm.slane %v8367_v12, 3  ;;  %v5833_v12 = vld [vmem:[%s8654_s6 + $0x10] sm:$0xff] }
 0x177   :  { %3056 = vmatpush.bf16.msrb.mxu3 %v4775_v57  ;;  %v5236_v57 = vld [vmem:[%s8650_s2 + $0xc38] sm:$0xf0]  ;;  %v8430_v59 = vadd.f32 %v2828_v42, %v2816_v54  ;;  %v5792_v11 = vld [vmem:[%s8650_s2 + $0xb0c] sm:$0xf]  ;;  %v5835_v54 = vld [vmem:[%s8656_s8] sm:$0xff] }
 0x178   :  { %3068 = vmatpush.bf16.msra.mxu0 %v4919_v63  ;;  %v4999_v63 = vor.u32 %v5768_v46, %v4996_v19  ;;  %v5239_v5 = vor.u32 %v5828_v56, %v5236_v57  ;;  %v5095_v30 = vor.u32 %v5792_v11, %v5092_v15  ;;  %v5840_v14 = vld [vmem:[%s8656_s8 + $0x28] sm:$0xff]  ;;  %v5838_v41 = vld [vmem:[%s8656_s8 + $0x18] sm:$0xff]  ;;  %v5843_v56 = vld [vmem:[%s8656_s8 + $0x40] sm:$0xff]  ;;  %v3119_v57 = vmax.f32 %v8241_v10, 0.0 }
 0x179   :  { %3081 = vmatpush.bf16.msra.mxu1 %v5047_v2  ;;  %v2804_v2 = vpop.f32.mrf.mxu3  ;;  %v5846_v45 = vld [vmem:[%s8656_s8 + $0x58] sm:$0xff]  ;;  %v5844_v19 = vld [vmem:[%s8656_s8 + $0x48] sm:$0xff] }
 0x17a   :  { %3094 = vmatpush.bf16.msra.mxu2 %v5175_v26  ;;  %v5728_v26 = vld [vmem:[%s8650_s2 + $0x90c] sm:$0xf] }
 0x17b   :  { %3057 = vmatpush.bf16.msrb.mxu3 %v4759_v8  ;;  %v4980_v8 = vld [vmem:[%s8650_s2 + $0xa38] sm:$0xf0] }
 0x17c   :  { %3069 = vmatpush.bf16.msra.mxu0 %v4903_v9  ;;  %v2830_v9 = vpop.f32.mrf.mxu1  ;;  %v4983_v13 = vor.u32 %v5764_v7, %v4980_v8 }
 0x17d   :  { %3082 = vmatpush.bf16.msra.mxu1 %v5031_v28  ;;  %v4964_v28 = vld [vmem:[%s8650_s2 + $0xa18] sm:$0xf0] }
 0x17e   :  { %3095 = vmatpush.bf16.msra.mxu2 %v5159_v24  ;;  %v4839_v24 = vor.u32 %v5728_v26, %v4836_v60 }
 0x17f   :  { %3058 = vmatpush.bf16.msrb.mxu3 %v4743_v27  ;;  %v5760_v27 = vld [vmem:[%s8650_s2 + $0xa0c] sm:$0xf] }
 0x180   :  { %3070 = vmatpush.bf16.msra.mxu0 %v4887_v33  ;;  %v4967_v32 = vor.u32 %v5760_v27, %v4964_v28  ;;  %v5850_v33 = vld [vmem:[%s8656_s8 + $0x78] sm:$0xff] }
 0x181   :  { %3083 = vmatpush.bf16.msra.mxu1 %v5015_v0  ;;  %v5837_v0 = vld [vmem:[%s8656_s8 + $0x10] sm:$0xff] }
 0x182   :  { %3096 = vmatpush.bf16.msra.mxu2 %v5143_v43 }
 0x183   :  { %3059 = vmatpush.bf16.msrb.mxu3 %v4727_v49 }
 0x184   :  { %3071 = vmatpush.bf16.msra.mxu0 %v4871_v21  ;;  %v5836_v21 = vld [vmem:[%s8656_s8 + $0x8] sm:$0xff] }
 0x185   :  { %3084 = vmatpush.bf16.msra.mxu1 %v4999_v63 }
 0x186   :  { %3097 = vmatpush.bf16.msra.mxu2 %v5127_v58  ;;  %v3205_v58 = vpack.c.bf16 %v3118_v55, %v3118_v55  ;;  %v5851_v55 = vld [vmem:[%s8656_s8 + $0x80] sm:$0xff] }
 0x187   :  { %3060 = vmatpush.bf16.msrb.mxu3 %v4711_v62 }
 0x188   :  { %3072 = vmatpush.bf16.msra.mxu0 %v4855_v1 }
 0x189   :  { %3085 = vmatpush.bf16.msra.mxu1 %v4983_v13 }
 0x18a   :  { %3098 = vmatpush.bf16.msra.mxu2 %v5111_v20  ;;  %3061 = vmatmul.bf16.vlgmr.msrb.gmra.mxu3 %v7878_v31  ;;  %v5849_v31 = vld [vmem:[%s8656_s8 + $0x70] sm:$0xff] }
 0x18b   :  { %3111 = vmatpush.bf16.msra.mxu3 %v5239_v5 }
 0x18c   :  { %3073 = vmatpush.bf16.msra.mxu0 %v4839_v24  ;;  %v2867_v37 = vpop.f32.mrf.mxu0 }
 0x18d   :  { %3086 = vmatpush.bf16.msra.mxu1 %v4967_v32  ;;  %v2854_v40 = vpop.f32.mrf.mxu3  ;;  %v2880_v42 = vpop.f32.mrf.mxu1 }
 0x18e   :  { %3099 = vmatpush.bf16.msra.mxu2 %v5095_v30  ;;  %v5834_v30 = vld [vmem:[%s8654_s6 + $0x18] sm:$0xff] }
 0x18f   :  { %3112 = vmatpush.bf16.msra.mxu3 %v5223_v25  ;;  %3074 = vmatmul.bf16.vlgmr.msra.gmra.mxu0 %v7881_v6  ;;  %v5848_v6 = vld [vmem:[%s8656_s8 + $0x68] sm:$0xff] }
 0x190   :  { %3143 = vmatpush.bf16.msrb.mxu0 %v3134_v18  ;;  %3087 = vmatmul.bf16.vlgmr.msra.gmra.mxu1 %v7914_v47 }
 0x191   :  { %3100 = vmatmul.bf16.vlgmr.msra.gmra.mxu2 %v7929_v53  ;;  %v2841_v53 = vpop.f32.mrf.mxu2  ;;  %3195 = vmatpush.bf16.msrb.mxu1 %v5834_v30  ;;  %v5881_v30 = vld [vmem:[%s8655_s7] ss:$0 sm:$0xff] }
 0x192   :  { %v2842_v47 = vadd.f32 %v2841_v53, %v8430_v59  ;;  %v3206_v59 = vpack.c.bf16 %v3119_v57, %v3119_v57 }
 0x193   :  { %3514 = vmatpush.bf16.msrb.mxu3 %v5842_v29 }
 0x194   :  { %3527 = vmatpush.bf16.msra.mxu0 %v5850_v33  ;;  %v2855_v43 = vadd.f32 %v2854_v40, %v2842_v47  ;;  %v2869_v23 = vpop.f32.mrf.mxu0 }
 0x195   :  { %v2856_v52 = vpop.f32.mrf.mxu3  ;;  %v2882_v46 = vpop.f32.mrf.mxu1  ;;  %3196 = vmatpush.bf16.msrb.mxu1 %v5833_v12 }
 0x196   :  { %v2868_v49 = vadd.f32 %v2867_v37, %v2855_v43  ;;  %v5858_v37 = vld [vmem:[%s8656_s8 + $0xb8] sm:$0xff] }
 0x197   :  { %3515 = vmatpush.bf16.msrb.mxu3 %v5841_v34 }
 0x198   :  { %3528 = vmatpush.bf16.msra.mxu0 %v5849_v31 }
 0x199   :  { %v2843_v51 = vpop.f32.mrf.mxu2 }
 0x19a   :  { %5243 = vmatmul.msk.bf16.vlgmr.msra.gmra.mxu3 %vm2439_vm0, %v7987_v36  ;;  %v2881_v36 = vadd.f32 %v2880_v42, %v2868_v49  ;;  %v5857_v42 = vld [vmem:[%s8656_s8 + $0xb0] sm:$0xff]  ;;  %v5854_v49 = vld [vmem:[%s8656_s8 + $0x98] sm:$0xff] }
 0x19b   :  { %3516 = vmatpush.bf16.msrb.mxu3 %v5840_v14  ;;  %v5832_v14 = vld [vmem:[%s8654_s6 + $0x8] sm:$0xff] }
 0x19c   :  { %3529 = vmatpush.bf16.msra.mxu0 %v5848_v6  ;;  %3197 = vmatpush.bf16.msrb.mxu1 %v5832_v14 }
 0x19f   :  { %3517 = vmatpush.bf16.msrb.mxu3 %v5839_v35  ;;  %5244 = vmatmul.msk.bf16.vlgmr.msrb.gmra.mxu0 %vm3128_vm2, %v3122_v44  ;;  %v5831_v35 = vld [vmem:[%s8654_s6] sm:$0xff]  ;;  %v5856_v44 = vld [vmem:[%s8656_s8 + $0xa8] sm:$0xff] }
 0x1a0   :  { %3530 = vmatpush.bf16.msra.mxu0 %v5847_v38  ;;  %3198 = vmatpush.bf16.msrb.mxu1 %v5831_v35 }
 0x1a3   :  { %3518 = vmatpush.bf16.msrb.mxu3 %v5838_v41 }
 0x1a4   :  { %3531 = vmatpush.bf16.msra.mxu0 %v5846_v45  ;;  %3540 = vmatpush.bf16.msra.mxu1 %v5858_v37  ;;  %v5855_v45 = vld [vmem:[%s8656_s8 + $0xa0] sm:$0xff]  ;;  %v5877_v37 = vld [vmem:[%s8659_s11 + $0x30] sm:$0xff] }
 0x1a7   :  { %3519 = vmatpush.bf16.msrb.mxu3 %v5837_v0 }
 0x1a8   :  { %3532 = vmatpush.bf16.msra.mxu0 %v5845_v50  ;;  %3541 = vmatpush.bf16.msra.mxu1 %v5857_v42  ;;  %v5871_v42 = vld [vmem:[%s8659_s11] sm:$0xff] }
 0x1ab   :  { %3520 = vmatpush.bf16.msrb.mxu3 %v5836_v21  ;;  %v5852_v21 = vld [vmem:[%s8656_s8 + $0x88] sm:$0xff] }
 0x1ac   :  { %3533 = vmatpush.bf16.msra.mxu0 %v5844_v19  ;;  %v2919_v61 = vpop.f32.mrf.mxu0  ;;  %v2893_v62 = vpop.f32.mrf.mxu2  ;;  %3542 = vmatpush.bf16.msra.mxu1 %v5856_v44 }
 0x1ad   :  { %v2906_v63 = vpop.f32.mrf.mxu3  ;;  %v2894_v3 = vadd.f32 %v2893_v62, %v2881_v36  ;;  %v2932_v17 = vpop.f32.mrf.mxu1  ;;  %v5853_v36 = vld [vmem:[%s8656_s8 + $0x90] sm:$0xff] }
 0x1ae   :  { %v5869_v62 = vld [vmem:[%s8657_s9 + $0x10] sm:$0xff] }
 0x1af   :  { %3521 = vmatpush.bf16.msrb.mxu3 %v5835_v54  ;;  %v2907_v4 = vadd.f32 %v2906_v63, %v2894_v3 }
 0x1b0   :  { %3534 = vmatpush.bf16.msra.mxu0 %v5843_v56  ;;  %3543 = vmatpush.bf16.msra.mxu1 %v5855_v45 }
 0x1b1   :  { %v2920_v48 = vadd.f32 %v2919_v61, %v2907_v4  ;;  %v5880_v61 = vld [vmem:[%s8653_s5] ss:$0 sm:$0xff] }
 0x1b2   :  { %3522 = vmatmul.bf16.vlgmr.msrb.gmra.mxu3 %v3205_v58 }
 0x1b3   :  { %3535 = vmatmul.bf16.vlgmr.msra.gmra.mxu0 %v3206_v59  ;;  %v2933_v1 = vadd.f32 %v2932_v17, %v2920_v48  ;;  %v5870_v59 = vld [vmem:[%s8657_s9 + $0x18] sm:$0xff] }
 0x1b4   :  { %v2921_v5 = vpop.f32.mrf.mxu0  ;;  %v2895_v26 = vpop.f32.mrf.mxu2  ;;  %3544 = vmatpush.bf16.msra.mxu1 %v5854_v49  ;;  %3313 = vmatpush.bf16.msrb.mxu2 %v5870_v59 }
 0x1b5   :  { %v2908_v7 = vpop.f32.mrf.mxu3  ;;  %v2934_v8 = vpop.f32.mrf.mxu1  ;;  %v5867_v5 = vld [vmem:[%s8657_s9] sm:$0xff]  ;;  %v5866_v26 = vld [vmem:[%s8656_s8 + $0xf8] sm:$0xff] }
 0x1b8   :  { %3545 = vmatpush.bf16.msra.mxu1 %v5853_v36  ;;  %3314 = vmatpush.bf16.msrb.mxu2 %v5869_v62  ;;  %v5882_v36 = vld [vmem:[%s8658_s10] ss:$0 sm:$0xff] }
 0x1bc   :  { %v2945_v2 = vpop.f32.mrf.mxu2  ;;  %3546 = vmatpush.bf16.msra.mxu1 %v5852_v21 }
 0x1bd   :  { %v8531_v10 = vadd.f32 %v2945_v2, %v2933_v1  ;;  %v5868_v1 = vld [vmem:[%s8657_s9 + $0x8] sm:$0xff] }
 0x1be   :  { %3315 = vmatpush.bf16.msrb.mxu2 %v5868_v1 }
 0x1c0   :  { %3547 = vmatpush.bf16.msra.mxu1 %v5851_v55 }
 0x1c2   :  { %3316 = vmatpush.bf16.msrb.mxu2 %v5867_v5 }
 0x1c4   :  { %v2947_v60 = vpop.f32.mrf.mxu2 }
 0x1c6   :  { %3553 = vmatpush.bf16.msra.mxu2 %v5866_v26 }
 0x1cc   :  { %v2971_v39 = vpop.f32.mrf.mxu0 }
 0x1cd   :  { %v2958_v9 = vpop.f32.mrf.mxu3  ;;  %v2984_v11 = vpop.f32.mrf.mxu1 }
 0x1ce   :  { %v2959_v20 = vadd.f32 %v2958_v9, %v445_v22  ;;  %v3120_v9 = vmax.f32 %v8531_v10, 0.0  ;;  %v5862_v10 = vld [vmem:[%s8656_s8 + $0xd8] sm:$0xff] }
 0x1d0   :  { %v2972_v13 = vadd.f32 %v2971_v39, %v2959_v20 }
 0x1d2   :  { %v2985_v15 = vadd.f32 %v2984_v11, %v2972_v13  ;;  %v3207_v11 = vpack.c.bf16 %v3120_v9, %v3120_v9 }
 0x1d4   :  { %v2997_v16 = vpop.f32.mrf.mxu2  ;;  %v2973_v25 = vpop.f32.mrf.mxu0 }
 0x1d5   :  { %v2998_v24 = vadd.f32 %v2997_v16, %v2985_v15  ;;  %v2960_v27 = vpop.f32.mrf.mxu3  ;;  %v2986_v28 = vpop.f32.mrf.mxu1  ;;  %v5865_v15 = vld [vmem:[%s8656_s8 + $0xf0] sm:$0xff]  ;;  %v5864_v16 = vld [vmem:[%s8656_s8 + $0xe8] sm:$0xff] }
 0x1d6   :  { %3554 = vmatpush.bf16.msra.mxu2 %v5865_v15  ;;  %v5861_v25 = vld [vmem:[%s8656_s8 + $0xd0] sm:$0xff]  ;;  %v5860_v27 = vld [vmem:[%s8656_s8 + $0xc8] sm:$0xff]  ;;  %v5859_v28 = vld [vmem:[%s8656_s8 + $0xc0] sm:$0xff] }
 0x1da   :  { %3555 = vmatpush.bf16.msra.mxu2 %v5864_v16 }
 0x1dc   :  { %v2999_v29 = vpop.f32.mrf.mxu2 }
 0x1dd   :  { %v5878_v29 = vld [vmem:[%s8659_s11 + $0x38] sm:$0xff] }
 0x1de   :  { %3641 = vmatpush.bf16.msra.mxu3 %v5878_v29 }
 0x1e2   :  { %3642 = vmatpush.bf16.msra.mxu3 %v5877_v37 }
 0x1ec   :  { %v3023_v33 = vpop.f32.mrf.mxu0 }
 0x1ed   :  { %v3010_v18 = vpop.f32.mrf.mxu3  ;;  %v3036_v34 = vpop.f32.mrf.mxu1 }
 0x1ee   :  { %v3011_v32 = vadd.f32 %v3010_v18, %v2998_v24  ;;  %v5863_v24 = vld [vmem:[%s8656_s8 + $0xe0] sm:$0xff] }
 0x1ef   :  { %3556 = vmatpush.bf16.msra.mxu2 %v5863_v24 }
 0x1f0   :  { %v3024_v31 = vadd.f32 %v3023_v33, %v3011_v32 }
 0x1f2   :  { %v3037_v6 = vadd.f32 %v3036_v34, %v3024_v31 }
 0x1f3   :  { %3557 = vmatpush.bf16.msra.mxu2 %v5862_v10 }
 0x1f4   :  { %v3049_v53 = vpop.f32.mrf.mxu2  ;;  %v3025_v40 = vpop.f32.mrf.mxu0 }
 0x1f5   :  { %v3050_v38 = vadd.f32 %v3049_v53, %v3037_v6  ;;  %v3012_v47 = vpop.f32.mrf.mxu3  ;;  %v3038_v41 = vpop.f32.mrf.mxu1  ;;  %v5876_v53 = vld [vmem:[%s8659_s11 + $0x28] sm:$0xff]  ;;  %v5873_v40 = vld [vmem:[%s8659_s11 + $0x10] sm:$0xff] }
 0x1f6   :  { %3643 = vmatpush.bf16.msra.mxu3 %v5876_v53  ;;  %v5874_v47 = vld [vmem:[%s8659_s11 + $0x18] sm:$0xff]  ;;  %v5872_v41 = vld [vmem:[%s8659_s11 + $0x8] sm:$0xff] }
 0x1f7   :  { %3558 = vmatpush.bf16.msra.mxu2 %v5861_v25 }
 0x1fb   :  { %3559 = vmatpush.bf16.msra.mxu2 %v5860_v27 }
 0x1fc   :  { %v3051_v43 = vpop.f32.mrf.mxu2 }
 0x1ff   :  { %3560 = vmatpush.bf16.msra.mxu2 %v5859_v28 }
 0x20c   :  { %v3075_v0 = vpop.f32.mrf.mxu0 }
 0x20d   :  { %v3062_v23 = vpop.f32.mrf.mxu3  ;;  %v3088_v51 = vpop.f32.mrf.mxu1 }
 0x20e   :  { %v3063_v50 = vadd.f32 %v3062_v23, %v3050_v38  ;;  %v5875_v38 = vld [vmem:[%s8659_s11 + $0x20] sm:$0xff] }
 0x20f   :  { %3644 = vmatpush.bf16.msra.mxu3 %v5875_v38 }
 0x210   :  { %v3076_v52 = vadd.f32 %v3075_v0, %v3063_v50 }
 0x212   :  { %v3089_v46 = vadd.f32 %v3088_v51, %v3076_v52 }
 0x213   :  { %3645 = vmatpush.bf16.msra.mxu3 %v5874_v47 }
 0x214   :  { %v3101_v19 = vpop.f32.mrf.mxu2  ;;  %v3077_v54 = vpop.f32.mrf.mxu0 }
 0x215   :  { %v3102_v56 = vadd.f32 %v3101_v19, %v3089_v46  ;;  %v3064_v57 = vpop.f32.mrf.mxu3  ;;  %v3090_v58 = vpop.f32.mrf.mxu1  ;;  %v5883_v19 = vld [vmem:[%s8660_s12] ss:$0 sm:$0xff] }
 0x217   :  { %3646 = vmatpush.bf16.msra.mxu3 %v5873_v40 }
 0x21b   :  { %3647 = vmatpush.bf16.msra.mxu3 %v5872_v41 }
 0x21c   :  { %v3145_v63 = vpop.f32.mrf.mxu0  ;;  %v3103_v3 = vpop.f32.mrf.mxu2 }
 0x21d   :  { %v3146_v17 = vadd.f32 %v5880_v61, %v3145_v63  ;;  %v3114_v4 = vpop.f32.mrf.mxu3 }
 0x21e   :  { %v3115_v48 = vadd.f32 %v3114_v4, %v3102_v56 }
 0x21f   :  { %5884 = vtanh.f32 %v3146_v17  ;;  %3648 = vmatpush.bf16.msra.mxu3 %v5871_v42 }
 0x220   :  { %v3121_v14 = vmax.f32 %v3115_v48, 0.0 }
 0x222   :  { %v3208_v35 = vpack.c.bf16 %v3121_v14, %v3121_v14 }
 0x224   :  { %v3147_v7 = vpop.f32.mrf.mxu0 }
 0x225   :  { %v5885_v8 = vpop.eup %5884  ;;  %v3116_v2 = vpop.f32.mrf.mxu3 }
 0x226   :  { %v3150_v60 = vpack.c.bf16 %v5885_v8, %v5885_v8 }
 0x228   :  { %5261 = vmatmul.msk.bf16.vlgmr.msrb.gmra.mxu1 %vm3187_vm3, %v3150_v60 }
 0x230   :  { %v3536_v22 = vpop.f32.mrf.mxu0 }
 0x235   :  { %v3523_v39 = vpop.f32.mrf.mxu3 }
 0x238   :  { %v3538_v20 = vpop.f32.mrf.mxu0  ;;  %3548 = vmatmul.bf16.vlgmr.msra.gmra.mxu1 %v3207_v11 }
 0x23d   :  { %v3525_v13 = vpop.f32.mrf.mxu3 }
 0x2a5   :  { %v3200_v12 = vpop.f32.mrf.mxu1 }
 0x2a6   :  { %v3201_v18 = vadd.f32 %v5881_v30, %v3200_v12 }
 0x2a8   :  { %5886 = vtanh.f32 %v3201_v18 }
 0x2ad   :  { %v3202_v32 = vpop.f32.mrf.mxu1 }
 0x2ae   :  { %v5887_v33 = vpop.eup %5886 }
 0x2af   :  { %v3273_v34 = vpack.c.bf16 %v5887_v33, %v5887_v33 }
 0x2b1   :  { %5278 = vmatmul.msk.bf16.vlgmr.msrb.gmra.mxu2 %vm3187_vm3, %v3273_v34 }
 0x2b5   :  { %v3549_v31 = vpop.f32.mrf.mxu1 }
 0x2bd   :  { %v3551_v6 = vpop.f32.mrf.mxu1 }
 0x2c1   :  { %3561 = vmatmul.bf16.vlgmr.msra.gmra.mxu2 %v3208_v35 }
 0x334   :  { %v3318_v43 = vpop.f32.mrf.mxu2 }
 0x335   :  { %v3524_v44 = vadd.f32 %v3523_v39, %v3318_v43 }
 0x337   :  { %v3537_v49 = vadd.f32 %v3536_v22, %v3524_v44 }
 0x339   :  { %v3550_v0 = vadd.f32 %v3549_v31, %v3537_v49 }
 0x33c   :  { %v3320_v45 = vpop.f32.mrf.mxu2 }
 0x344   :  { %v3562_v23 = vpop.f32.mrf.mxu2 }
 0x345   :  { %v3563_v50 = vadd.f32 %v3562_v23, %v3550_v0 }
 0x347   :  { %v3570_v51 = vadd.f32 %v5882_v36, %v3563_v50 }
 0x349   :  { %5888 = vtanh.f32 %v3570_v51 }
 0x34c   :  { %v3564_v21 = vpop.f32.mrf.mxu2 }
 0x34f   :  { %v5889_v52 = vpop.eup %5888 }
 0x350   :  { %v3572_v46 = vpack.c.bf16 %v5889_v52, %v5889_v52 }
 0x352   :  { %3649 = vmatmul.bf16.vlgmr.msra.gmra.mxu3 %v3572_v46 }
 0x3d5   :  { %v3650_v54 = vpop.f32.mrf.mxu3 }
 0x3d6   :  { %v3651_v55 = vadd.f32 %v5883_v19, %v3650_v54 }
 0x3d8   :  { %3655 = vst.msk [vmem:[#allocation2] sm:$0x3] %vm3654_vm4, %v3651_v55 }
 0x3d9   :  { %3666 = dma.vmem_to_hbm [thread:$0]  %s3662_s19, 32, %s3664_s22, [#allocation3]  }
 0x3dd   :  { %v3652_v56 = vpop.f32.mrf.mxu3 }
 0x3de   :  { %5920 = dma.done.wait [#allocation3], 32  }
 0x3df   :  { %5921 = vsyncadd [#allocation3], 4294967264 }
 0x3e0   :  { %3671 = vsyncpa [#allocation3], 1 }

</bundles_post_ra>
